<compile_context>
chip_gen: v7x
topology: tpu7x:2x2x1
jax: 0.10.0
libtpu: 0.0.40
codegen_flags: <defaults>
</compile_context>

<pallas_src>
import functools
import math

import jax
import jax.numpy as jnp
from jax.experimental import pallas as pl
from jax.experimental.pallas import tpu as pltpu

LANE = 128


def conv_output_size(size: int, padding: int, kernel: int, stride: int) -> int:
    return (size + 2 * padding - kernel) // stride + 1


def pad_to(n: int, m: int = LANE) -> int:
    return ((n + m - 1) // m) * m


# ----------------------------------------------------------------------------
# Pallas kernels
# ----------------------------------------------------------------------------
def _conv_block_kernel(x_ref, w_ref, b_ref, o_ref, tmp_ref, *,
                       KH, KW, Ho, Wo, stride, psize, po_h, po_w):
    """Fused conv + bias + ReLU + maxpool for one batch element.

    x_ref:   (1, Hp, Wp, Cin_p)      f32  (spatially padded, channel-padded input)
    w_ref:   (KH*KW, Cin_p, Cout_p)  bf16 (per-tap matrices)
    b_ref:   (1, Cout_p)             f32
    o_ref:   (1, po_h, po_w, Cout_p) f32
    tmp_ref: (Ho*Wo, Cout_p)         f32  VMEM scratch (pre-pool activation)
    """
    cout_p = w_ref.shape[2]

    # conv = sum over KH*KW taps of (Ho*Wo, Cin_p) @ (Cin_p, Cout_p) on the MXU (bf16 in, f32 acc)
    acc = jnp.zeros((Ho * Wo, cout_p), jnp.float32)
    for kh in range(KH):
        for kw in range(KW):
            if stride == 1:
                win = x_ref[0, kh:kh + Ho, kw:kw + Wo, :]
            else:
                # TODO(synk): strided-conv path is untested in this config (all strides are 1).
                win = x_ref[0, pl.ds(kh, Ho, stride=stride),
                            pl.ds(kw, Wo, stride=stride), :]
            patch = win.reshape(Ho * Wo, win.shape[-1]).astype(jnp.bfloat16)
            acc = acc + jnp.dot(patch, w_ref[kh * KW + kw],
                                preferred_element_type=jnp.float32)

    # bias + ReLU epilogue in f32, staged to VMEM scratch for the pooling epilogue
    tmp_ref[...] = jnp.maximum(acc + b_ref[...], 0.0)

    # fused max pool (stride == kernel == psize) on the lane-dense (rows, Cout_p) layout:
    # stage 1 — pool along W with sublane-strided loads (valid since Wo % psize == 0)
    n_w = Ho * po_w
    pw = tmp_ref[pl.ds(0, n_w, stride=psize), :]
    for j in range(1, psize):
        pw = jnp.maximum(pw, tmp_ref[pl.ds(j, n_w, stride=psize), :])
    tmp_ref[pl.ds(0, n_w), :] = pw            # rows now ordered (h, w_out) row-major
    # stage 2 — pool along H with contiguous row-block loads, store one output row at a time
    for ho in range(po_h):
        row = tmp_ref[pl.ds(ho * psize * po_w, po_w), :]
        for i in range(1, psize):
            row = jnp.maximum(row, tmp_ref[pl.ds((ho * psize + i) * po_w, po_w), :])
        o_ref[0, ho] = row.astype(o_ref.dtype)


def _fc_stack_kernel(*refs, n_layers):
    """Fused FC stack: hidden Linear+ReLU layers followed by the output Linear.

    refs = (x_ref, w0, b0, w1, b1, ..., o_ref); w* bf16, b* f32, x/o f32.
    """
    x_ref, o_ref = refs[0], refs[-1]
    h = x_ref[...]
    for l in range(n_layers):
        w = refs[1 + 2 * l][...]
        b = refs[2 + 2 * l][...]
        h = jnp.dot(h.astype(jnp.bfloat16), w,
                    preferred_element_type=jnp.float32) + b
        if l < n_layers - 1:
            h = jnp.maximum(h, 0.0)   # hidden layers: ReLU (+ dropout == identity at inference)
    o_ref[...] = h.astype(o_ref.dtype)


# ----------------------------------------------------------------------------
# pallas_call wrappers
# ----------------------------------------------------------------------------
def conv_relu_pool_block(x, layer):
    """x: (N, H, W, Cin_p) f32 NHWC with channels already padded to the layer's Cin_p."""
    w_p, b_p = layer["w"], layer["b"]
    KH, KW = layer["kh"], layer["kw"]
    stride, padding = layer["stride"], layer["padding"]
    psize, pstride, ppad = layer["psize"], layer["pstride"], layer["ppad"]

    N, H, W, cin_x = x.shape
    KK, cin_p, cout_p = w_p.shape
    assert cin_x == cin_p
    assert pstride == psize and ppad == 0, "only stride==size, padding==0 pooling is fused"

    Ho = conv_output_size(H, padding, KH, stride)
    Wo = conv_output_size(W, padding, KW, stride)
    # TODO(synk): floor-crop pooling (Ho/Wo not divisible by pool size) is not fused.
    assert Ho % psize == 0 and Wo % psize == 0
    po_h, po_w = Ho // psize, Wo // psize

    xp = jnp.pad(x, ((0, 0), (padding, padding), (padding, padding), (0, 0)))
    Hp, Wp = H + 2 * padding, W + 2 * padding

    kernel = functools.partial(_conv_block_kernel, KH=KH, KW=KW, Ho=Ho, Wo=Wo,
                               stride=stride, psize=psize, po_h=po_h, po_w=po_w)
    return pl.pallas_call(
        kernel,
        out_shape=jax.ShapeDtypeStruct((N, po_h, po_w, cout_p), jnp.float32),
        grid=(N,),
        in_specs=[
            pl.BlockSpec((1, Hp, Wp, cin_p), lambda n: (n, 0, 0, 0)),
            pl.BlockSpec((KK, cin_p, cout_p), lambda n: (0, 0, 0)),
            pl.BlockSpec((1, cout_p), lambda n: (0, 0)),
        ],
        out_specs=pl.BlockSpec((1, po_h, po_w, cout_p), lambda n: (n, 0, 0, 0)),
        scratch_shapes=[pltpu.VMEM((Ho * Wo, cout_p), jnp.float32)],
        compiler_params=pltpu.CompilerParams(dimension_semantics=("parallel",)),
    )(xp, w_p, b_p)


def fc_stack(x, ws, bs):
    """One fused pallas_call for the whole FC stack. x: (M, K0) f32, padded widths."""
    M, K = x.shape
    n_out = ws[-1].shape[1]
    in_specs = [pl.BlockSpec((M, K), lambda i: (0, 0))]
    args = [x]
    for w, b in zip(ws, bs):
        in_specs.append(pl.BlockSpec(w.shape, lambda i: (0, 0)))
        in_specs.append(pl.BlockSpec(b.shape, lambda i: (0, 0)))
        args.append(w)
        args.append(b)
    kernel = functools.partial(_fc_stack_kernel, n_layers=len(ws))
    return pl.pallas_call(
        kernel,
        out_shape=jax.ShapeDtypeStruct((M, n_out), jnp.float32),
        grid=(1,),
        in_specs=in_specs,
        out_specs=pl.BlockSpec((M, n_out), lambda i: (0, 0)),
        compiler_params=pltpu.CompilerParams(dimension_semantics=("arbitrary",)),
    )(*args)


# ----------------------------------------------------------------------------
# Model forward pass
# ----------------------------------------------------------------------------
def cnn_forward(x_nchw, packed):
    # NCHW (PyTorch) -> NHWC, pad channels once to the first conv layer's padded Cin.
    x = jnp.transpose(x_nchw, (0, 2, 3, 1)).astype(jnp.float32)
    cin_p0 = packed["convs"][0]["w"].shape[1]
    x = jnp.pad(x, ((0, 0), (0, 0), (0, 0), (0, cin_p0 - x.shape[-1])))
    for layer in packed["convs"]:
        x = conv_relu_pool_block(x, layer)
    # Flatten directly in NHWC(+padded-C) order; the first FC weight was row-permuted at
    # pack time to consume exactly this order (equivalent to PyTorch's NCHW x.view(N,-1)).
    xf = x.reshape(x.shape[0], -1)
    logits_p = fc_stack(xf, packed["fc_ws"], packed["fc_bs"])
    return logits_p[:, : packed["num_classes"]]


# ----------------------------------------------------------------------------
# Deterministic parameter init (PyTorch-style U(-1/sqrt(fan_in), 1/sqrt(fan_in)))
# and one-time packing into TPU-friendly layouts (hoisted out of the forward path).
# ----------------------------------------------------------------------------
def init_params(key, input_channels, input_size, num_classes, filters, pools, fcls):
    params = {"convs": [], "pools": [], "fcs": []}
    c, s = input_channels, input_size
    for (fsize, fstride, fcount, fpad), (psize, pstride, ppad) in zip(filters, pools):
        key, k1, k2 = jax.random.split(key, 3)
        bound = 1.0 / math.sqrt(c * fsize * fsize)
        w = jax.random.uniform(k1, (fcount, c, fsize, fsize), jnp.float32, -bound, bound)
        b = jax.random.uniform(k2, (fcount,), jnp.float32, -bound, bound)
        params["convs"].append((w, b, fstride, fpad))
        params["pools"].append((psize, pstride, ppad))
        s = conv_output_size(s, fpad, fsize, fstride)
        s = conv_output_size(s, ppad, psize, pstride)
        c = fcount
    prev = c * s * s
    for n_out in fcls:
        key, k1, k2 = jax.random.split(key, 3)
        bound = 1.0 / math.sqrt(prev)
        w = jax.random.uniform(k1, (prev, n_out), jnp.float32, -bound, bound)
        b = jax.random.uniform(k2, (n_out,), jnp.float32, -bound, bound)
        params["fcs"].append((w, b))
        prev = n_out
    key, k1, k2 = jax.random.split(key, 3)
    bound = 1.0 / math.sqrt(prev)
    params["out"] = (
        jax.random.uniform(k1, (prev, num_classes), jnp.float32, -bound, bound),
        jax.random.uniform(k2, (num_classes,), jnp.float32, -bound, bound),
    )
    params["meta"] = dict(input_channels=input_channels, input_size=input_size,
                          num_classes=num_classes, final_channels=c, final_size=s)
    return params


def pack_params(params):
    """One-time repack: conv weights -> per-tap (KH*KW, Cin_p, Cout_p) bf16, FC weights bf16,
    all channel/feature dims zero-padded to multiples of 128, first FC weight row-permuted
    to consume the NHWC(+padded-C) flatten order."""
    meta = params["meta"]
    packed = {"convs": [], "num_classes": meta["num_classes"]}

    cin = meta["input_channels"]
    cin_p = pad_to(cin)
    for (w, b, stride, padding), (psize, pstride, ppad) in zip(params["convs"], params["pools"]):
        cout, cin2, kh, kw = w.shape
        assert cin2 == cin
        cout_p = pad_to(cout)
        w_t = jnp.transpose(w, (2, 3, 1, 0)).reshape(kh * kw, cin, cout)   # [tap, ci, co]
        w_p = jnp.zeros((kh * kw, cin_p, cout_p), jnp.bfloat16)
        w_p = w_p.at[:, :cin, :cout].set(w_t.astype(jnp.bfloat16))
        b_p = jnp.zeros((1, cout_p), jnp.float32).at[0, :cout].set(b)
        packed["convs"].append(dict(w=w_p, b=b_p, kh=kh, kw=kw,
                                    stride=stride, padding=padding,
                                    psize=psize, pstride=pstride, ppad=ppad))
        cin, cin_p = cout, cout_p

    c_real, s = meta["final_channels"], meta["final_size"]
    c_pad = cin_p                                    # == pad_to(final_channels)
    ws, bs = [], []
    fcs_all = params["fcs"] + [params["out"]]
    in_real = c_real * s * s
    for li, (w, b) in enumerate(fcs_all):
        k_real, n_real = w.shape
        n_pad = pad_to(n_real)
        if li == 0:
            # rows in PyTorch NCHW-flatten order (c*s*s + h*s + w) -> NHWC(+pad) order
            assert k_real == in_real
            w_hwc = jnp.transpose(w.reshape(c_real, s * s, n_real), (1, 0, 2))  # [spos, c, j]
            w_p = jnp.zeros((s * s, c_pad, n_pad), jnp.bfloat16)
            w_p = w_p.at[:, :c_real, :n_real].set(w_hwc.astype(jnp.bfloat16))
            w_p = w_p.reshape(s * s * c_pad, n_pad)
        else:
            k_pad = pad_to(k_real)
            w_p = jnp.zeros((k_pad, n_pad), jnp.bfloat16)
            w_p = w_p.at[:k_real, :n_real].set(w.astype(jnp.bfloat16))
        b_p = jnp.zeros((1, n_pad), jnp.float32).at[0, :n_real].set(b)
        ws.append(w_p)
        bs.append(b_p)
    packed["fc_ws"], packed["fc_bs"] = ws, bs
    return packed


if __name__ == "__main__":
    key = jax.random.PRNGKey(0)
    kx, kp = jax.random.split(key)

    # Config consistent with the module's __init__:
    #   input_channels=4, input_size=16, num_classes=10
    #   filters = [Filter(3,1,8,1), Filter(3,1,16,1)]
    #   pools   = [Pool(2,2,0),     Pool(2,2,0)]
    #   fcls    = [FullyConnectedLayer(32)]
    filters = [(3, 1, 8, 1), (3, 1, 16, 1)]   # (size, stride, count, padding)
    pools = [(2, 2, 0), (2, 2, 0)]            # (size, stride, padding)
    fcls = [32]
    num_classes = 10

    params = init_params(kp, 4, 16, num_classes, filters, pools, fcls)
    packed = pack_params(params)              # one-time weight repack, hoisted out of forward
    x = jax.random.normal(kx, (2, 4, 16, 16), jnp.float32)  # NCHW like PyTorch

    fwd = jax.jit(lambda inp: cnn_forward(inp, packed))
    out = jax.block_until_ready(fwd(x))
    assert out.shape == (2, num_classes), out.shape
    assert bool(jnp.all(jnp.isfinite(out)))
    print("KERNEL_OK")
</pallas_src>

<mosaic_0001>
module attributes {stable_mosaic.version = 11 : i64} {
  func.func @_conv_block_kernel(%arg0: i32, %arg1: memref<1x18x18x128xf32, #tpu.memory_space<vmem>>, %arg2: memref<9x128x128xbf16, #tpu.memory_space<vmem>>, %arg3: memref<1x128xf32, #tpu.memory_space<vmem>>, %arg4: memref<1x8x8x128xf32, #tpu.memory_space<vmem>>, %arg5: memref<256x128xf32, #tpu.memory_space<vmem>>) attributes {dimension_semantics = [#tpu.dimension_semantics<parallel>], iteration_bounds = array<i64: 2>, scalar_prefetch = 0 : i64, scratch_operands = 1 : i64, tpu.core_type = #tpu.core_type<tc>, window_params = [{transform_indices = @transform_0, window_bounds = array<i64: 1, 18, 18, 128>}, {pipeline_mode = #tpu.pipeline_mode<synchronous>, transform_indices = @transform_1, window_bounds = array<i64: 9, 128, 128>}, {pipeline_mode = #tpu.pipeline_mode<synchronous>, transform_indices = @transform_2, window_bounds = array<i64: 1, 128>}, {transform_indices = @transform_3, window_bounds = array<i64: 1, 8, 8, 128>}]} {
    %cst = arith.constant 0.000000e+00 : f32
    %0 = vector.broadcast %cst : f32 to vector<256x128xf32>
    %c0 = arith.constant 0 : index
    %c0_0 = arith.constant 0 : index
    %c0_1 = arith.constant 0 : index
    %c0_2 = arith.constant 0 : index
    %1 = vector.load %arg1[%c0, %c0_0, %c0_1, %c0_2] : memref<1x18x18x128xf32, #tpu.memory_space<vmem>>, vector<1x16x16x128xf32>
    %2 = vector.shape_cast %1 : vector<1x16x16x128xf32> to vector<16x16x128xf32>
    %3 = vector.shape_cast %2 : vector<16x16x128xf32> to vector<256x128xf32>
    %4 = arith.truncf %3 : vector<256x128xf32> to vector<256x128xbf16>
    %c0_3 = arith.constant 0 : index
    %c0_4 = arith.constant 0 : index
    %c0_5 = arith.constant 0 : index
    %5 = vector.load %arg2[%c0_3, %c0_4, %c0_5] : memref<9x128x128xbf16, #tpu.memory_space<vmem>>, vector<1x128x128xbf16>
    %6 = vector.shape_cast %5 : vector<1x128x128xbf16> to vector<128x128xbf16>
    %cst_6 = arith.constant dense<0.000000e+00> : vector<256x128xf32>
    %7 = tpu.matmul %4, %6, %cst_6 {dimension_numbers = #tpu.dot_dimension_numbers<[1], [0], [0], [1], [0, 0, 1, 1], [], []>} : vector<256x128xbf16>, vector<128x128xbf16>, vector<256x128xf32> -> vector<256x128xf32>
    %8 = arith.addf %0, %7 : vector<256x128xf32>
    %c0_7 = arith.constant 0 : index
    %c0_8 = arith.constant 0 : index
    %c1 = arith.constant 1 : index
    %c0_9 = arith.constant 0 : index
    %9 = vector.load %arg1[%c0_7, %c0_8, %c1, %c0_9] : memref<1x18x18x128xf32, #tpu.memory_space<vmem>>, vector<1x16x16x128xf32>
    %10 = vector.shape_cast %9 : vector<1x16x16x128xf32> to vector<16x16x128xf32>
    %11 = vector.shape_cast %10 : vector<16x16x128xf32> to vector<256x128xf32>
    %12 = arith.truncf %11 : vector<256x128xf32> to vector<256x128xbf16>
    %c1_10 = arith.constant 1 : index
    %c0_11 = arith.constant 0 : index
    %c0_12 = arith.constant 0 : index
    %13 = vector.load %arg2[%c1_10, %c0_11, %c0_12] : memref<9x128x128xbf16, #tpu.memory_space<vmem>>, vector<1x128x128xbf16>
    %14 = vector.shape_cast %13 : vector<1x128x128xbf16> to vector<128x128xbf16>
    %cst_13 = arith.constant dense<0.000000e+00> : vector<256x128xf32>
    %15 = tpu.matmul %12, %14, %cst_13 {dimension_numbers = #tpu.dot_dimension_numbers<[1], [0], [0], [1], [0, 0, 1, 1], [], []>} : vector<256x128xbf16>, vector<128x128xbf16>, vector<256x128xf32> -> vector<256x128xf32>
    %16 = arith.addf %8, %15 : vector<256x128xf32>
    %c0_14 = arith.constant 0 : index
    %c0_15 = arith.constant 0 : index
    %c2 = arith.constant 2 : index
    %c0_16 = arith.constant 0 : index
    %17 = vector.load %arg1[%c0_14, %c0_15, %c2, %c0_16] : memref<1x18x18x128xf32, #tpu.memory_space<vmem>>, vector<1x16x16x128xf32>
    %18 = vector.shape_cast %17 : vector<1x16x16x128xf32> to vector<16x16x128xf32>
    %19 = vector.shape_cast %18 : vector<16x16x128xf32> to vector<256x128xf32>
    %20 = arith.truncf %19 : vector<256x128xf32> to vector<256x128xbf16>
    %c2_17 = arith.constant 2 : index
    %c0_18 = arith.constant 0 : index
    %c0_19 = arith.constant 0 : index
    %21 = vector.load %arg2[%c2_17, %c0_18, %c0_19] : memref<9x128x128xbf16, #tpu.memory_space<vmem>>, vector<1x128x128xbf16>
    %22 = vector.shape_cast %21 : vector<1x128x128xbf16> to vector<128x128xbf16>
    %cst_20 = arith.constant dense<0.000000e+00> : vector<256x128xf32>
    %23 = tpu.matmul %20, %22, %cst_20 {dimension_numbers = #tpu.dot_dimension_numbers<[1], [0], [0], [1], [0, 0, 1, 1], [], []>} : vector<256x128xbf16>, vector<128x128xbf16>, vector<256x128xf32> -> vector<256x128xf32>
    %24 = arith.addf %16, %23 : vector<256x128xf32>
    %c0_21 = arith.constant 0 : index
    %c1_22 = arith.constant 1 : index
    %c0_23 = arith.constant 0 : index
    %c0_24 = arith.constant 0 : index
    %25 = vector.load %arg1[%c0_21, %c1_22, %c0_23, %c0_24] : memref<1x18x18x128xf32, #tpu.memory_space<vmem>>, vector<1x16x16x128xf32>
    %26 = vector.shape_cast %25 : vector<1x16x16x128xf32> to vector<16x16x128xf32>
    %27 = vector.shape_cast %26 : vector<16x16x128xf32> to vector<256x128xf32>
    %28 = arith.truncf %27 : vector<256x128xf32> to vector<256x128xbf16>
    %c3 = arith.constant 3 : index
    %c0_25 = arith.constant 0 : index
    %c0_26 = arith.constant 0 : index
    %29 = vector.load %arg2[%c3, %c0_25, %c0_26] : memref<9x128x128xbf16, #tpu.memory_space<vmem>>, vector<1x128x128xbf16>
    %30 = vector.shape_cast %29 : vector<1x128x128xbf16> to vector<128x128xbf16>
    %cst_27 = arith.constant dense<0.000000e+00> : vector<256x128xf32>
    %31 = tpu.matmul %28, %30, %cst_27 {dimension_numbers = #tpu.dot_dimension_numbers<[1], [0], [0], [1], [0, 0, 1, 1], [], []>} : vector<256x128xbf16>, vector<128x128xbf16>, vector<256x128xf32> -> vector<256x128xf32>
    %32 = arith.addf %24, %31 : vector<256x128xf32>
    %c0_28 = arith.constant 0 : index
    %c1_29 = arith.constant 1 : index
    %c1_30 = arith.constant 1 : index
    %c0_31 = arith.constant 0 : index
    %33 = vector.load %arg1[%c0_28, %c1_29, %c1_30, %c0_31] : memref<1x18x18x128xf32, #tpu.memory_space<vmem>>, vector<1x16x16x128xf32>
    %34 = vector.shape_cast %33 : vector<1x16x16x128xf32> to vector<16x16x128xf32>
    %35 = vector.shape_cast %34 : vector<16x16x128xf32> to vector<256x128xf32>
    %36 = arith.truncf %35 : vector<256x128xf32> to vector<256x128xbf16>
    %c4 = arith.constant 4 : index
    %c0_32 = arith.constant 0 : index
    %c0_33 = arith.constant 0 : index
    %37 = vector.load %arg2[%c4, %c0_32, %c0_33] : memref<9x128x128xbf16, #tpu.memory_space<vmem>>, vector<1x128x128xbf16>
    %38 = vector.shape_cast %37 : vector<1x128x128xbf16> to vector<128x128xbf16>
    %cst_34 = arith.constant dense<0.000000e+00> : vector<256x128xf32>
    %39 = tpu.matmul %36, %38, %cst_34 {dimension_numbers = #tpu.dot_dimension_numbers<[1], [0], [0], [1], [0, 0, 1, 1], [], []>} : vector<256x128xbf16>, vector<128x128xbf16>, vector<256x128xf32> -> vector<256x128xf32>
    %40 = arith.addf %32, %39 : vector<256x128xf32>
    %c0_35 = arith.constant 0 : index
    %c1_36 = arith.constant 1 : index
    %c2_37 = arith.constant 2 : index
    %c0_38 = arith.constant 0 : index
    %41 = vector.load %arg1[%c0_35, %c1_36, %c2_37, %c0_38] : memref<1x18x18x128xf32, #tpu.memory_space<vmem>>, vector<1x16x16x128xf32>
    %42 = vector.shape_cast %41 : vector<1x16x16x128xf32> to vector<16x16x128xf32>
    %43 = vector.shape_cast %42 : vector<16x16x128xf32> to vector<256x128xf32>
    %44 = arith.truncf %43 : vector<256x128xf32> to vector<256x128xbf16>
    %c5 = arith.constant 5 : index
    %c0_39 = arith.constant 0 : index
    %c0_40 = arith.constant 0 : index
    %45 = vector.load %arg2[%c5, %c0_39, %c0_40] : memref<9x128x128xbf16, #tpu.memory_space<vmem>>, vector<1x128x128xbf16>
    %46 = vector.shape_cast %45 : vector<1x128x128xbf16> to vector<128x128xbf16>
    %cst_41 = arith.constant dense<0.000000e+00> : vector<256x128xf32>
    %47 = tpu.matmul %44, %46, %cst_41 {dimension_numbers = #tpu.dot_dimension_numbers<[1], [0], [0], [1], [0, 0, 1, 1], [], []>} : vector<256x128xbf16>, vector<128x128xbf16>, vector<256x128xf32> -> vector<256x128xf32>
    %48 = arith.addf %40, %47 : vector<256x128xf32>
    %c0_42 = arith.constant 0 : index
    %c2_43 = arith.constant 2 : index
    %c0_44 = arith.constant 0 : index
    %c0_45 = arith.constant 0 : index
    %49 = vector.load %arg1[%c0_42, %c2_43, %c0_44, %c0_45] : memref<1x18x18x128xf32, #tpu.memory_space<vmem>>, vector<1x16x16x128xf32>
    %50 = vector.shape_cast %49 : vector<1x16x16x128xf32> to vector<16x16x128xf32>
    %51 = vector.shape_cast %50 : vector<16x16x128xf32> to vector<256x128xf32>
    %52 = arith.truncf %51 : vector<256x128xf32> to vector<256x128xbf16>
    %c6 = arith.constant 6 : index
    %c0_46 = arith.constant 0 : index
    %c0_47 = arith.constant 0 : index
    %53 = vector.load %arg2[%c6, %c0_46, %c0_47] : memref<9x128x128xbf16, #tpu.memory_space<vmem>>, vector<1x128x128xbf16>
    %54 = vector.shape_cast %53 : vector<1x128x128xbf16> to vector<128x128xbf16>
    %cst_48 = arith.constant dense<0.000000e+00> : vector<256x128xf32>
    %55 = tpu.matmul %52, %54, %cst_48 {dimension_numbers = #tpu.dot_dimension_numbers<[1], [0], [0], [1], [0, 0, 1, 1], [], []>} : vector<256x128xbf16>, vector<128x128xbf16>, vector<256x128xf32> -> vector<256x128xf32>
    %56 = arith.addf %48, %55 : vector<256x128xf32>
    %c0_49 = arith.constant 0 : index
    %c2_50 = arith.constant 2 : index
    %c1_51 = arith.constant 1 : index
    %c0_52 = arith.constant 0 : index
    %57 = vector.load %arg1[%c0_49, %c2_50, %c1_51, %c0_52] : memref<1x18x18x128xf32, #tpu.memory_space<vmem>>, vector<1x16x16x128xf32>
    %58 = vector.shape_cast %57 : vector<1x16x16x128xf32> to vector<16x16x128xf32>
    %59 = vector.shape_cast %58 : vector<16x16x128xf32> to vector<256x128xf32>
    %60 = arith.truncf %59 : vector<256x128xf32> to vector<256x128xbf16>
    %c7 = arith.constant 7 : index
    %c0_53 = arith.constant 0 : index
    %c0_54 = arith.constant 0 : index
    %61 = vector.load %arg2[%c7, %c0_53, %c0_54] : memref<9x128x128xbf16, #tpu.memory_space<vmem>>, vector<1x128x128xbf16>
    %62 = vector.shape_cast %61 : vector<1x128x128xbf16> to vector<128x128xbf16>
    %cst_55 = arith.constant dense<0.000000e+00> : vector<256x128xf32>
    %63 = tpu.matmul %60, %62, %cst_55 {dimension_numbers = #tpu.dot_dimension_numbers<[1], [0], [0], [1], [0, 0, 1, 1], [], []>} : vector<256x128xbf16>, vector<128x128xbf16>, vector<256x128xf32> -> vector<256x128xf32>
    %64 = arith.addf %56, %63 : vector<256x128xf32>
    %c0_56 = arith.constant 0 : index
    %c2_57 = arith.constant 2 : index
    %c2_58 = arith.constant 2 : index
    %c0_59 = arith.constant 0 : index
    %65 = vector.load %arg1[%c0_56, %c2_57, %c2_58, %c0_59] : memref<1x18x18x128xf32, #tpu.memory_space<vmem>>, vector<1x16x16x128xf32>
    %66 = vector.shape_cast %65 : vector<1x16x16x128xf32> to vector<16x16x128xf32>
    %67 = vector.shape_cast %66 : vector<16x16x128xf32> to vector<256x128xf32>
    %68 = arith.truncf %67 : vector<256x128xf32> to vector<256x128xbf16>
    %c8 = arith.constant 8 : index
    %c0_60 = arith.constant 0 : index
    %c0_61 = arith.constant 0 : index
    %69 = vector.load %arg2[%c8, %c0_60, %c0_61] : memref<9x128x128xbf16, #tpu.memory_space<vmem>>, vector<1x128x128xbf16>
    %70 = vector.shape_cast %69 : vector<1x128x128xbf16> to vector<128x128xbf16>
    %cst_62 = arith.constant dense<0.000000e+00> : vector<256x128xf32>
    %71 = tpu.matmul %68, %70, %cst_62 {dimension_numbers = #tpu.dot_dimension_numbers<[1], [0], [0], [1], [0, 0, 1, 1], [], []>} : vector<256x128xbf16>, vector<128x128xbf16>, vector<256x128xf32> -> vector<256x128xf32>
    %72 = arith.addf %64, %71 : vector<256x128xf32>
    %c0_63 = arith.constant 0 : index
    %c0_64 = arith.constant 0 : index
    %73 = vector.load %arg3[%c0_63, %c0_64] : memref<1x128xf32, #tpu.memory_space<vmem>>, vector<1x128xf32>
    %74 = vector.broadcast %73 : vector<1x128xf32> to vector<256x128xf32>
    %75 = arith.addf %72, %74 : vector<256x128xf32>
    %cst_65 = arith.constant 0.000000e+00 : f32
    %76 = vector.broadcast %cst_65 : f32 to vector<256x128xf32>
    %77 = arith.maximumf %75, %76 : vector<256x128xf32>
    %c0_66 = arith.constant 0 : index
    %c0_67 = arith.constant 0 : index
    %78 = vector.load %arg5[%c0_66, %c0_67] : memref<256x128xf32, #tpu.memory_space<vmem>>, vector<256x128xf32>
    tpu.vector_store %arg5[%c0_66, %c0_67], %77 {strides = array<i32>} : memref<256x128xf32, #tpu.memory_space<vmem>>, vector<256x128xf32>,
    %c0_68 = arith.constant 0 : index
    %c0_69 = arith.constant 0 : index
    %79 = tpu.strided_load %arg5[%c0_68, %c0_69] {strides = array<i32: 2, 1>} : memref<256x128xf32, #tpu.memory_space<vmem>>, vector<128x128xf32>
    %c1_70 = arith.constant 1 : index
    %c0_71 = arith.constant 0 : index
    %80 = tpu.strided_load %arg5[%c1_70, %c0_71] {strides = array<i32: 2, 1>} : memref<256x128xf32, #tpu.memory_space<vmem>>, vector<128x128xf32>
    %81 = arith.maximumf %79, %80 : vector<128x128xf32>
    %c0_72 = arith.constant 0 : index
    %c0_73 = arith.constant 0 : index
    %82 = vector.load %arg5[%c0_72, %c0_73] : memref<256x128xf32, #tpu.memory_space<vmem>>, vector<128x128xf32>
    tpu.vector_store %arg5[%c0_72, %c0_73], %81 {strides = array<i32>} : memref<256x128xf32, #tpu.memory_space<vmem>>, vector<128x128xf32>,
    %c0_74 = arith.constant 0 : index
    %c0_75 = arith.constant 0 : index
    %83 = vector.load %arg5[%c0_74, %c0_75] : memref<256x128xf32, #tpu.memory_space<vmem>>, vector<8x128xf32>
    %c8_76 = arith.constant 8 : index
    %c0_77 = arith.constant 0 : index
    %84 = vector.load %arg5[%c8_76, %c0_77] : memref<256x128xf32, #tpu.memory_space<vmem>>, vector<8x128xf32>
    %85 = arith.maximumf %83, %84 : vector<8x128xf32>
    %c0_78 = arith.constant 0 : index
    %c0_79 = arith.constant 0 : index
    %c0_80 = arith.constant 0 : index
    %c0_81 = arith.constant 0 : index
    %86 = vector.load %arg4[%c0_78, %c0_79, %c0_80, %c0_81] : memref<1x8x8x128xf32, #tpu.memory_space<vmem>>, vector<1x1x8x128xf32>
    %87 = vector.shape_cast %86 : vector<1x1x8x128xf32> to vector<8x128xf32>
    %88 = vector.shape_cast %85 : vector<8x128xf32> to vector<1x1x8x128xf32>
    tpu.vector_store %arg4[%c0_78, %c0_79, %c0_80, %c0_81], %88 {strides = array<i32>} : memref<1x8x8x128xf32, #tpu.memory_space<vmem>>, vector<1x1x8x128xf32>,
    %c16 = arith.constant 16 : index
    %c0_82 = arith.constant 0 : index
    %89 = vector.load %arg5[%c16, %c0_82] : memref<256x128xf32, #tpu.memory_space<vmem>>, vector<8x128xf32>
    %c24 = arith.constant 24 : index
    %c0_83 = arith.constant 0 : index
    %90 = vector.load %arg5[%c24, %c0_83] : memref<256x128xf32, #tpu.memory_space<vmem>>, vector<8x128xf32>
    %91 = arith.maximumf %89, %90 : vector<8x128xf32>
    %c0_84 = arith.constant 0 : index
    %c1_85 = arith.constant 1 : index
    %c0_86 = arith.constant 0 : index
    %c0_87 = arith.constant 0 : index
    %92 = vector.load %arg4[%c0_84, %c1_85, %c0_86, %c0_87] : memref<1x8x8x128xf32, #tpu.memory_space<vmem>>, vector<1x1x8x128xf32>
    %93 = vector.shape_cast %92 : vector<1x1x8x128xf32> to vector<8x128xf32>
    %94 = vector.shape_cast %91 : vector<8x128xf32> to vector<1x1x8x128xf32>
    tpu.vector_store %arg4[%c0_84, %c1_85, %c0_86, %c0_87], %94 {strides = array<i32>} : memref<1x8x8x128xf32, #tpu.memory_space<vmem>>, vector<1x1x8x128xf32>,
    %c32 = arith.constant 32 : index
    %c0_88 = arith.constant 0 : index
    %95 = vector.load %arg5[%c32, %c0_88] : memref<256x128xf32, #tpu.memory_space<vmem>>, vector<8x128xf32>
    %c40 = arith.constant 40 : index
    %c0_89 = arith.constant 0 : index
    %96 = vector.load %arg5[%c40, %c0_89] : memref<256x128xf32, #tpu.memory_space<vmem>>, vector<8x128xf32>
    %97 = arith.maximumf %95, %96 : vector<8x128xf32>
    %c0_90 = arith.constant 0 : index
    %c2_91 = arith.constant 2 : index
    %c0_92 = arith.constant 0 : index
    %c0_93 = arith.constant 0 : index
    %98 = vector.load %arg4[%c0_90, %c2_91, %c0_92, %c0_93] : memref<1x8x8x128xf32, #tpu.memory_space<vmem>>, vector<1x1x8x128xf32>
    %99 = vector.shape_cast %98 : vector<1x1x8x128xf32> to vector<8x128xf32>
    %100 = vector.shape_cast %97 : vector<8x128xf32> to vector<1x1x8x128xf32>
    tpu.vector_store %arg4[%c0_90, %c2_91, %c0_92, %c0_93], %100 {strides = array<i32>} : memref<1x8x8x128xf32, #tpu.memory_space<vmem>>, vector<1x1x8x128xf32>,
    %c48 = arith.constant 48 : index
    %c0_94 = arith.constant 0 : index
    %101 = vector.load %arg5[%c48, %c0_94] : memref<256x128xf32, #tpu.memory_space<vmem>>, vector<8x128xf32>
    %c56 = arith.constant 56 : index
    %c0_95 = arith.constant 0 : index
    %102 = vector.load %arg5[%c56, %c0_95] : memref<256x128xf32, #tpu.memory_space<vmem>>, vector<8x128xf32>
    %103 = arith.maximumf %101, %102 : vector<8x128xf32>
    %c0_96 = arith.constant 0 : index
    %c3_97 = arith.constant 3 : index
    %c0_98 = arith.constant 0 : index
    %c0_99 = arith.constant 0 : index
    %104 = vector.load %arg4[%c0_96, %c3_97, %c0_98, %c0_99] : memref<1x8x8x128xf32, #tpu.memory_space<vmem>>, vector<1x1x8x128xf32>
    %105 = vector.shape_cast %104 : vector<1x1x8x128xf32> to vector<8x128xf32>
    %106 = vector.shape_cast %103 : vector<8x128xf32> to vector<1x1x8x128xf32>
    tpu.vector_store %arg4[%c0_96, %c3_97, %c0_98, %c0_99], %106 {strides = array<i32>} : memref<1x8x8x128xf32, #tpu.memory_space<vmem>>, vector<1x1x8x128xf32>,
    %c64 = arith.constant 64 : index
    %c0_100 = arith.constant 0 : index
    %107 = vector.load %arg5[%c64, %c0_100] : memref<256x128xf32, #tpu.memory_space<vmem>>, vector<8x128xf32>
    %c72 = arith.constant 72 : index
    %c0_101 = arith.constant 0 : index
    %108 = vector.load %arg5[%c72, %c0_101] : memref<256x128xf32, #tpu.memory_space<vmem>>, vector<8x128xf32>
    %109 = arith.maximumf %107, %108 : vector<8x128xf32>
    %c0_102 = arith.constant 0 : index
    %c4_103 = arith.constant 4 : index
    %c0_104 = arith.constant 0 : index
    %c0_105 = arith.constant 0 : index
    %110 = vector.load %arg4[%c0_102, %c4_103, %c0_104, %c0_105] : memref<1x8x8x128xf32, #tpu.memory_space<vmem>>, vector<1x1x8x128xf32>
    %111 = vector.shape_cast %110 : vector<1x1x8x128xf32> to vector<8x128xf32>
    %112 = vector.shape_cast %109 : vector<8x128xf32> to vector<1x1x8x128xf32>
    tpu.vector_store %arg4[%c0_102, %c4_103, %c0_104, %c0_105], %112 {strides = array<i32>} : memref<1x8x8x128xf32, #tpu.memory_space<vmem>>, vector<1x1x8x128xf32>,
    %c80 = arith.constant 80 : index
    %c0_106 = arith.constant 0 : index
    %113 = vector.load %arg5[%c80, %c0_106] : memref<256x128xf32, #tpu.memory_space<vmem>>, vector<8x128xf32>
    %c88 = arith.constant 88 : index
    %c0_107 = arith.constant 0 : index
    %114 = vector.load %arg5[%c88, %c0_107] : memref<256x128xf32, #tpu.memory_space<vmem>>, vector<8x128xf32>
    %115 = arith.maximumf %113, %114 : vector<8x128xf32>
    %c0_108 = arith.constant 0 : index
    %c5_109 = arith.constant 5 : index
    %c0_110 = arith.constant 0 : index
    %c0_111 = arith.constant 0 : index
    %116 = vector.load %arg4[%c0_108, %c5_109, %c0_110, %c0_111] : memref<1x8x8x128xf32, #tpu.memory_space<vmem>>, vector<1x1x8x128xf32>
    %117 = vector.shape_cast %116 : vector<1x1x8x128xf32> to vector<8x128xf32>
    %118 = vector.shape_cast %115 : vector<8x128xf32> to vector<1x1x8x128xf32>
    tpu.vector_store %arg4[%c0_108, %c5_109, %c0_110, %c0_111], %118 {strides = array<i32>} : memref<1x8x8x128xf32, #tpu.memory_space<vmem>>, vector<1x1x8x128xf32>,
    %c96 = arith.constant 96 : index
    %c0_112 = arith.constant 0 : index
    %119 = vector.load %arg5[%c96, %c0_112] : memref<256x128xf32, #tpu.memory_space<vmem>>, vector<8x128xf32>
    %c104 = arith.constant 104 : index
    %c0_113 = arith.constant 0 : index
    %120 = vector.load %arg5[%c104, %c0_113] : memref<256x128xf32, #tpu.memory_space<vmem>>, vector<8x128xf32>
    %121 = arith.maximumf %119, %120 : vector<8x128xf32>
    %c0_114 = arith.constant 0 : index
    %c6_115 = arith.constant 6 : index
    %c0_116 = arith.constant 0 : index
    %c0_117 = arith.constant 0 : index
    %122 = vector.load %arg4[%c0_114, %c6_115, %c0_116, %c0_117] : memref<1x8x8x128xf32, #tpu.memory_space<vmem>>, vector<1x1x8x128xf32>
    %123 = vector.shape_cast %122 : vector<1x1x8x128xf32> to vector<8x128xf32>
    %124 = vector.shape_cast %121 : vector<8x128xf32> to vector<1x1x8x128xf32>
    tpu.vector_store %arg4[%c0_114, %c6_115, %c0_116, %c0_117], %124 {strides = array<i32>} : memref<1x8x8x128xf32, #tpu.memory_space<vmem>>, vector<1x1x8x128xf32>,
    %c112 = arith.constant 112 : index
    %c0_118 = arith.constant 0 : index
    %125 = vector.load %arg5[%c112, %c0_118] : memref<256x128xf32, #tpu.memory_space<vmem>>, vector<8x128xf32>
    %c120 = arith.constant 120 : index
    %c0_119 = arith.constant 0 : index
    %126 = vector.load %arg5[%c120, %c0_119] : memref<256x128xf32, #tpu.memory_space<vmem>>, vector<8x128xf32>
    %127 = arith.maximumf %125, %126 : vector<8x128xf32>
    %c0_120 = arith.constant 0 : index
    %c7_121 = arith.constant 7 : index
    %c0_122 = arith.constant 0 : index
    %c0_123 = arith.constant 0 : index
    %128 = vector.load %arg4[%c0_120, %c7_121, %c0_122, %c0_123] : memref<1x8x8x128xf32, #tpu.memory_space<vmem>>, vector<1x1x8x128xf32>
    %129 = vector.shape_cast %128 : vector<1x1x8x128xf32> to vector<8x128xf32>
    %130 = vector.shape_cast %127 : vector<8x128xf32> to vector<1x1x8x128xf32>
    tpu.vector_store %arg4[%c0_120, %c7_121, %c0_122, %c0_123], %130 {strides = array<i32>} : memref<1x8x8x128xf32, #tpu.memory_space<vmem>>, vector<1x1x8x128xf32>,
    return
  }
  func.func @transform_0(%arg0: i32) -> (i32, i32, i32, i32) {
    %c0_i32 = arith.constant 0 : i32
    %c0_i32_0 = arith.constant 0 : i32
    %c0_i32_1 = arith.constant 0 : i32
    %c0_i32_2 = arith.constant 0 : i32
    return %arg0, %c0_i32, %c0_i32_0, %c0_i32_1 : i32, i32, i32, i32
  }
  func.func @transform_1(%arg0: i32) -> (i32, i32, i32) {
    %c0_i32 = arith.constant 0 : i32
    %c0_i32_0 = arith.constant 0 : i32
    %c0_i32_1 = arith.constant 0 : i32
    %c0_i32_2 = arith.constant 0 : i32
    return %c0_i32, %c0_i32_0, %c0_i32_1 : i32, i32, i32
  }
  func.func @transform_2(%arg0: i32) -> (i32, i32) {
    %c0_i32 = arith.constant 0 : i32
    %c0_i32_0 = arith.constant 0 : i32
    %c0_i32_1 = arith.constant 0 : i32
    return %c0_i32, %c0_i32_0 : i32, i32
  }
  func.func @transform_3(%arg0: i32) -> (i32, i32, i32, i32) {
    %c0_i32 = arith.constant 0 : i32
    %c0_i32_0 = arith.constant 0 : i32
    %c0_i32_1 = arith.constant 0 : i32
    %c0_i32_2 = arith.constant 0 : i32
    return %arg0, %c0_i32, %c0_i32_0, %c0_i32_1 : i32, i32, i32, i32
  }
}

module attributes {stable_mosaic.version = 11 : i64} {
  func.func @_fc_stack_kernel(%arg0: i32, %arg1: memref<2x2048xf32, #tpu.memory_space<vmem>>, %arg2: memref<2048x128xbf16, #tpu.memory_space<vmem>>, %arg3: memref<1x128xf32, #tpu.memory_space<vmem>>, %arg4: memref<128x128xbf16, #tpu.memory_space<vmem>>, %arg5: memref<1x128xf32, #tpu.memory_space<vmem>>, %arg6: memref<2x128xf32, #tpu.memory_space<vmem>>) attributes {dimension_semantics = [#tpu.dimension_semantics<arbitrary>], iteration_bounds = array<i64: 1>, scalar_prefetch = 0 : i64, scratch_operands = 0 : i64, tpu.core_type = #tpu.core_type<tc>, window_params = [{pipeline_mode = #tpu.pipeline_mode<synchronous>, transform_indices = @transform_0, window_bounds = array<i64: 2, 2048>}, {pipeline_mode = #tpu.pipeline_mode<synchronous>, transform_indices = @transform_1, window_bounds = array<i64: 2048, 128>}, {pipeline_mode = #tpu.pipeline_mode<synchronous>, transform_indices = @transform_2, window_bounds = array<i64: 1, 128>}, {pipeline_mode = #tpu.pipeline_mode<synchronous>, transform_indices = @transform_3, window_bounds = array<i64: 128, 128>}, {pipeline_mode = #tpu.pipeline_mode<synchronous>, transform_indices = @transform_4, window_bounds = array<i64: 1, 128>}, {pipeline_mode = #tpu.pipeline_mode<synchronous>, transform_indices = @transform_5, window_bounds = array<i64: 2, 128>}]} {
    %c0 = arith.constant 0 : index
    %c0_0 = arith.constant 0 : index
    %0 = vector.load %arg1[%c0, %c0_0] : memref<2x2048xf32, #tpu.memory_space<vmem>>, vector<2x2048xf32>
    %c0_1 = arith.constant 0 : index
    %c0_2 = arith.constant 0 : index
    %1 = vector.load %arg2[%c0_1, %c0_2] : memref<2048x128xbf16, #tpu.memory_space<vmem>>, vector<2048x128xbf16>
    %c0_3 = arith.constant 0 : index
    %c0_4 = arith.constant 0 : index
    %2 = vector.load %arg3[%c0_3, %c0_4] : memref<1x128xf32, #tpu.memory_space<vmem>>, vector<1x128xf32>
    %3 = arith.truncf %0 : vector<2x2048xf32> to vector<2x2048xbf16>
    %cst = arith.constant dense<0.000000e+00> : vector<2x128xf32>
    %4 = tpu.matmul %3, %1, %cst {dimension_numbers = #tpu.dot_dimension_numbers<[1], [0], [0], [1], [0, 0, 1, 1], [], []>} : vector<2x2048xbf16>, vector<2048x128xbf16>, vector<2x128xf32> -> vector<2x128xf32>
    %5 = vector.broadcast %2 : vector<1x128xf32> to vector<2x128xf32>
    %6 = arith.addf %4, %5 : vector<2x128xf32>
    %cst_5 = arith.constant 0.000000e+00 : f32
    %7 = vector.broadcast %cst_5 : f32 to vector<2x128xf32>
    %8 = arith.maximumf %6, %7 : vector<2x128xf32>
    %c0_6 = arith.constant 0 : index
    %c0_7 = arith.constant 0 : index
    %9 = vector.load %arg4[%c0_6, %c0_7] : memref<128x128xbf16, #tpu.memory_space<vmem>>, vector<128x128xbf16>
    %c0_8 = arith.constant 0 : index
    %c0_9 = arith.constant 0 : index
    %10 = vector.load %arg5[%c0_8, %c0_9] : memref<1x128xf32, #tpu.memory_space<vmem>>, vector<1x128xf32>
    %11 = arith.truncf %8 : vector<2x128xf32> to vector<2x128xbf16>
    %cst_10 = arith.constant dense<0.000000e+00> : vector<2x128xf32>
    %12 = tpu.matmul %11, %9, %cst_10 {dimension_numbers = #tpu.dot_dimension_numbers<[1], [0], [0], [1], [0, 0, 1, 1], [], []>} : vector<2x128xbf16>, vector<128x128xbf16>, vector<2x128xf32> -> vector<2x128xf32>
    %13 = vector.broadcast %10 : vector<1x128xf32> to vector<2x128xf32>
    %14 = arith.addf %12, %13 : vector<2x128xf32>
    %c0_11 = arith.constant 0 : index
    %c0_12 = arith.constant 0 : index
    %15 = vector.load %arg6[%c0_11, %c0_12] : memref<2x128xf32, #tpu.memory_space<vmem>>, vector<2x128xf32>
    tpu.vector_store %arg6[%c0_11, %c0_12], %14 {strides = array<i32>} : memref<2x128xf32, #tpu.memory_space<vmem>>, vector<2x128xf32>,
    return
  }
  func.func @transform_0(%arg0: i32) -> (i32, i32) {
    %c0_i32 = arith.constant 0 : i32
    %c0_i32_0 = arith.constant 0 : i32
    %c0_i32_1 = arith.constant 0 : i32
    return %c0_i32, %c0_i32_0 : i32, i32
  }
  func.func @transform_1(%arg0: i32) -> (i32, i32) {
    %c0_i32 = arith.constant 0 : i32
    %c0_i32_0 = arith.constant 0 : i32
    %c0_i32_1 = arith.constant 0 : i32
    return %c0_i32, %c0_i32_0 : i32, i32
  }
  func.func @transform_2(%arg0: i32) -> (i32, i32) {
    %c0_i32 = arith.constant 0 : i32
    %c0_i32_0 = arith.constant 0 : i32
    %c0_i32_1 = arith.constant 0 : i32
    return %c0_i32, %c0_i32_0 : i32, i32
  }
  func.func @transform_3(%arg0: i32) -> (i32, i32) {
    %c0_i32 = arith.constant 0 : i32
    %c0_i32_0 = arith.constant 0 : i32
    %c0_i32_1 = arith.constant 0 : i32
    return %c0_i32, %c0_i32_0 : i32, i32
  }
  func.func @transform_4(%arg0: i32) -> (i32, i32) {
    %c0_i32 = arith.constant 0 : i32
    %c0_i32_0 = arith.constant 0 : i32
    %c0_i32_1 = arith.constant 0 : i32
    return %c0_i32, %c0_i32_0 : i32, i32
  }
  func.func @transform_5(%arg0: i32) -> (i32, i32) {
    %c0_i32 = arith.constant 0 : i32
    %c0_i32_0 = arith.constant 0 : i32
    %c0_i32_1 = arith.constant 0 : i32
    return %c0_i32, %c0_i32_0 : i32, i32
  }
}

module attributes {stable_mosaic.version = 11 : i64} {
  func.func @_conv_block_kernel(%arg0: i32, %arg1: memref<1x10x10x128xf32, #tpu.memory_space<vmem>>, %arg2: memref<9x128x128xbf16, #tpu.memory_space<vmem>>, %arg3: memref<1x128xf32, #tpu.memory_space<vmem>>, %arg4: memref<1x4x4x128xf32, #tpu.memory_space<vmem>>, %arg5: memref<64x128xf32, #tpu.memory_space<vmem>>) attributes {dimension_semantics = [#tpu.dimension_semantics<parallel>], iteration_bounds = array<i64: 2>, scalar_prefetch = 0 : i64, scratch_operands = 1 : i64, tpu.core_type = #tpu.core_type<tc>, window_params = [{transform_indices = @transform_0, window_bounds = array<i64: 1, 10, 10, 128>}, {pipeline_mode = #tpu.pipeline_mode<synchronous>, transform_indices = @transform_1, window_bounds = array<i64: 9, 128, 128>}, {pipeline_mode = #tpu.pipeline_mode<synchronous>, transform_indices = @transform_2, window_bounds = array<i64: 1, 128>}, {transform_indices = @transform_3, window_bounds = array<i64: 1, 4, 4, 128>}]} {
    %cst = arith.constant 0.000000e+00 : f32
    %0 = vector.broadcast %cst : f32 to vector<64x128xf32>
    %c0 = arith.constant 0 : index
    %c0_0 = arith.constant 0 : index
    %c0_1 = arith.constant 0 : index
    %c0_2 = arith.constant 0 : index
    %1 = vector.load %arg1[%c0, %c0_0, %c0_1, %c0_2] : memref<1x10x10x128xf32, #tpu.memory_space<vmem>>, vector<1x8x8x128xf32>
    %2 = vector.shape_cast %1 : vector<1x8x8x128xf32> to vector<8x8x128xf32>
    %3 = vector.shape_cast %2 : vector<8x8x128xf32> to vector<64x128xf32>
    %4 = arith.truncf %3 : vector<64x128xf32> to vector<64x128xbf16>
    %c0_3 = arith.constant 0 : index
    %c0_4 = arith.constant 0 : index
    %c0_5 = arith.constant 0 : index
    %5 = vector.load %arg2[%c0_3, %c0_4, %c0_5] : memref<9x128x128xbf16, #tpu.memory_space<vmem>>, vector<1x128x128xbf16>
    %6 = vector.shape_cast %5 : vector<1x128x128xbf16> to vector<128x128xbf16>
    %cst_6 = arith.constant dense<0.000000e+00> : vector<64x128xf32>
    %7 = tpu.matmul %4, %6, %cst_6 {dimension_numbers = #tpu.dot_dimension_numbers<[1], [0], [0], [1], [0, 0, 1, 1], [], []>} : vector<64x128xbf16>, vector<128x128xbf16>, vector<64x128xf32> -> vector<64x128xf32>
    %8 = arith.addf %0, %7 : vector<64x128xf32>
    %c0_7 = arith.constant 0 : index
    %c0_8 = arith.constant 0 : index
    %c1 = arith.constant 1 : index
    %c0_9 = arith.constant 0 : index
    %9 = vector.load %arg1[%c0_7, %c0_8, %c1, %c0_9] : memref<1x10x10x128xf32, #tpu.memory_space<vmem>>, vector<1x8x8x128xf32>
    %10 = vector.shape_cast %9 : vector<1x8x8x128xf32> to vector<8x8x128xf32>
    %11 = vector.shape_cast %10 : vector<8x8x128xf32> to vector<64x128xf32>
    %12 = arith.truncf %11 : vector<64x128xf32> to vector<64x128xbf16>
    %c1_10 = arith.constant 1 : index
    %c0_11 = arith.constant 0 : index
    %c0_12 = arith.constant 0 : index
    %13 = vector.load %arg2[%c1_10, %c0_11, %c0_12] : memref<9x128x128xbf16, #tpu.memory_space<vmem>>, vector<1x128x128xbf16>
    %14 = vector.shape_cast %13 : vector<1x128x128xbf16> to vector<128x128xbf16>
    %cst_13 = arith.constant dense<0.000000e+00> : vector<64x128xf32>
    %15 = tpu.matmul %12, %14, %cst_13 {dimension_numbers = #tpu.dot_dimension_numbers<[1], [0], [0], [1], [0, 0, 1, 1], [], []>} : vector<64x128xbf16>, vector<128x128xbf16>, vector<64x128xf32> -> vector<64x128xf32>
    %16 = arith.addf %8, %15 : vector<64x128xf32>
    %c0_14 = arith.constant 0 : index
    %c0_15 = arith.constant 0 : index
    %c2 = arith.constant 2 : index
    %c0_16 = arith.constant 0 : index
    %17 = vector.load %arg1[%c0_14, %c0_15, %c2, %c0_16] : memref<1x10x10x128xf32, #tpu.memory_space<vmem>>, vector<1x8x8x128xf32>
    %18 = vector.shape_cast %17 : vector<1x8x8x128xf32> to vector<8x8x128xf32>
    %19 = vector.shape_cast %18 : vector<8x8x128xf32> to vector<64x128xf32>
    %20 = arith.truncf %19 : vector<64x128xf32> to vector<64x128xbf16>
    %c2_17 = arith.constant 2 : index
    %c0_18 = arith.constant 0 : index
    %c0_19 = arith.constant 0 : index
    %21 = vector.load %arg2[%c2_17, %c0_18, %c0_19] : memref<9x128x128xbf16, #tpu.memory_space<vmem>>, vector<1x128x128xbf16>
    %22 = vector.shape_cast %21 : vector<1x128x128xbf16> to vector<128x128xbf16>
    %cst_20 = arith.constant dense<0.000000e+00> : vector<64x128xf32>
    %23 = tpu.matmul %20, %22, %cst_20 {dimension_numbers = #tpu.dot_dimension_numbers<[1], [0], [0], [1], [0, 0, 1, 1], [], []>} : vector<64x128xbf16>, vector<128x128xbf16>, vector<64x128xf32> -> vector<64x128xf32>
    %24 = arith.addf %16, %23 : vector<64x128xf32>
    %c0_21 = arith.constant 0 : index
    %c1_22 = arith.constant 1 : index
    %c0_23 = arith.constant 0 : index
    %c0_24 = arith.constant 0 : index
    %25 = vector.load %arg1[%c0_21, %c1_22, %c0_23, %c0_24] : memref<1x10x10x128xf32, #tpu.memory_space<vmem>>, vector<1x8x8x128xf32>
    %26 = vector.shape_cast %25 : vector<1x8x8x128xf32> to vector<8x8x128xf32>
    %27 = vector.shape_cast %26 : vector<8x8x128xf32> to vector<64x128xf32>
    %28 = arith.truncf %27 : vector<64x128xf32> to vector<64x128xbf16>
    %c3 = arith.constant 3 : index
    %c0_25 = arith.constant 0 : index
    %c0_26 = arith.constant 0 : index
    %29 = vector.load %arg2[%c3, %c0_25, %c0_26] : memref<9x128x128xbf16, #tpu.memory_space<vmem>>, vector<1x128x128xbf16>
    %30 = vector.shape_cast %29 : vector<1x128x128xbf16> to vector<128x128xbf16>
    %cst_27 = arith.constant dense<0.000000e+00> : vector<64x128xf32>
    %31 = tpu.matmul %28, %30, %cst_27 {dimension_numbers = #tpu.dot_dimension_numbers<[1], [0], [0], [1], [0, 0, 1, 1], [], []>} : vector<64x128xbf16>, vector<128x128xbf16>, vector<64x128xf32> -> vector<64x128xf32>
    %32 = arith.addf %24, %31 : vector<64x128xf32>
    %c0_28 = arith.constant 0 : index
    %c1_29 = arith.constant 1 : index
    %c1_30 = arith.constant 1 : index
    %c0_31 = arith.constant 0 : index
    %33 = vector.load %arg1[%c0_28, %c1_29, %c1_30, %c0_31] : memref<1x10x10x128xf32, #tpu.memory_space<vmem>>, vector<1x8x8x128xf32>
    %34 = vector.shape_cast %33 : vector<1x8x8x128xf32> to vector<8x8x128xf32>
    %35 = vector.shape_cast %34 : vector<8x8x128xf32> to vector<64x128xf32>
    %36 = arith.truncf %35 : vector<64x128xf32> to vector<64x128xbf16>
    %c4 = arith.constant 4 : index
    %c0_32 = arith.constant 0 : index
    %c0_33 = arith.constant 0 : index
    %37 = vector.load %arg2[%c4, %c0_32, %c0_33] : memref<9x128x128xbf16, #tpu.memory_space<vmem>>, vector<1x128x128xbf16>
    %38 = vector.shape_cast %37 : vector<1x128x128xbf16> to vector<128x128xbf16>
    %cst_34 = arith.constant dense<0.000000e+00> : vector<64x128xf32>
    %39 = tpu.matmul %36, %38, %cst_34 {dimension_numbers = #tpu.dot_dimension_numbers<[1], [0], [0], [1], [0, 0, 1, 1], [], []>} : vector<64x128xbf16>, vector<128x128xbf16>, vector<64x128xf32> -> vector<64x128xf32>
    %40 = arith.addf %32, %39 : vector<64x128xf32>
    %c0_35 = arith.constant 0 : index
    %c1_36 = arith.constant 1 : index
    %c2_37 = arith.constant 2 : index
    %c0_38 = arith.constant 0 : index
    %41 = vector.load %arg1[%c0_35, %c1_36, %c2_37, %c0_38] : memref<1x10x10x128xf32, #tpu.memory_space<vmem>>, vector<1x8x8x128xf32>
    %42 = vector.shape_cast %41 : vector<1x8x8x128xf32> to vector<8x8x128xf32>
    %43 = vector.shape_cast %42 : vector<8x8x128xf32> to vector<64x128xf32>
    %44 = arith.truncf %43 : vector<64x128xf32> to vector<64x128xbf16>
    %c5 = arith.constant 5 : index
    %c0_39 = arith.constant 0 : index
    %c0_40 = arith.constant 0 : index
    %45 = vector.load %arg2[%c5, %c0_39, %c0_40] : memref<9x128x128xbf16, #tpu.memory_space<vmem>>, vector<1x128x128xbf16>
    %46 = vector.shape_cast %45 : vector<1x128x128xbf16> to vector<128x128xbf16>
    %cst_41 = arith.constant dense<0.000000e+00> : vector<64x128xf32>
    %47 = tpu.matmul %44, %46, %cst_41 {dimension_numbers = #tpu.dot_dimension_numbers<[1], [0], [0], [1], [0, 0, 1, 1], [], []>} : vector<64x128xbf16>, vector<128x128xbf16>, vector<64x128xf32> -> vector<64x128xf32>
    %48 = arith.addf %40, %47 : vector<64x128xf32>
    %c0_42 = arith.constant 0 : index
    %c2_43 = arith.constant 2 : index
    %c0_44 = arith.constant 0 : index
    %c0_45 = arith.constant 0 : index
    %49 = vector.load %arg1[%c0_42, %c2_43, %c0_44, %c0_45] : memref<1x10x10x128xf32, #tpu.memory_space<vmem>>, vector<1x8x8x128xf32>
    %50 = vector.shape_cast %49 : vector<1x8x8x128xf32> to vector<8x8x128xf32>
    %51 = vector.shape_cast %50 : vector<8x8x128xf32> to vector<64x128xf32>
    %52 = arith.truncf %51 : vector<64x128xf32> to vector<64x128xbf16>
    %c6 = arith.constant 6 : index
    %c0_46 = arith.constant 0 : index
    %c0_47 = arith.constant 0 : index
    %53 = vector.load %arg2[%c6, %c0_46, %c0_47] : memref<9x128x128xbf16, #tpu.memory_space<vmem>>, vector<1x128x128xbf16>
    %54 = vector.shape_cast %53 : vector<1x128x128xbf16> to vector<128x128xbf16>
    %cst_48 = arith.constant dense<0.000000e+00> : vector<64x128xf32>
    %55 = tpu.matmul %52, %54, %cst_48 {dimension_numbers = #tpu.dot_dimension_numbers<[1], [0], [0], [1], [0, 0, 1, 1], [], []>} : vector<64x128xbf16>, vector<128x128xbf16>, vector<64x128xf32> -> vector<64x128xf32>
    %56 = arith.addf %48, %55 : vector<64x128xf32>
    %c0_49 = arith.constant 0 : index
    %c2_50 = arith.constant 2 : index
    %c1_51 = arith.constant 1 : index
    %c0_52 = arith.constant 0 : index
    %57 = vector.load %arg1[%c0_49, %c2_50, %c1_51, %c0_52] : memref<1x10x10x128xf32, #tpu.memory_space<vmem>>, vector<1x8x8x128xf32>
    %58 = vector.shape_cast %57 : vector<1x8x8x128xf32> to vector<8x8x128xf32>
    %59 = vector.shape_cast %58 : vector<8x8x128xf32> to vector<64x128xf32>
    %60 = arith.truncf %59 : vector<64x128xf32> to vector<64x128xbf16>
    %c7 = arith.constant 7 : index
    %c0_53 = arith.constant 0 : index
    %c0_54 = arith.constant 0 : index
    %61 = vector.load %arg2[%c7, %c0_53, %c0_54] : memref<9x128x128xbf16, #tpu.memory_space<vmem>>, vector<1x128x128xbf16>
    %62 = vector.shape_cast %61 : vector<1x128x128xbf16> to vector<128x128xbf16>
    %cst_55 = arith.constant dense<0.000000e+00> : vector<64x128xf32>
    %63 = tpu.matmul %60, %62, %cst_55 {dimension_numbers = #tpu.dot_dimension_numbers<[1], [0], [0], [1], [0, 0, 1, 1], [], []>} : vector<64x128xbf16>, vector<128x128xbf16>, vector<64x128xf32> -> vector<64x128xf32>
    %64 = arith.addf %56, %63 : vector<64x128xf32>
    %c0_56 = arith.constant 0 : index
    %c2_57 = arith.constant 2 : index
    %c2_58 = arith.constant 2 : index
    %c0_59 = arith.constant 0 : index
    %65 = vector.load %arg1[%c0_56, %c2_57, %c2_58, %c0_59] : memref<1x10x10x128xf32, #tpu.memory_space<vmem>>, vector<1x8x8x128xf32>
    %66 = vector.shape_cast %65 : vector<1x8x8x128xf32> to vector<8x8x128xf32>
    %67 = vector.shape_cast %66 : vector<8x8x128xf32> to vector<64x128xf32>
    %68 = arith.truncf %67 : vector<64x128xf32> to vector<64x128xbf16>
    %c8 = arith.constant 8 : index
    %c0_60 = arith.constant 0 : index
    %c0_61 = arith.constant 0 : index
    %69 = vector.load %arg2[%c8, %c0_60, %c0_61] : memref<9x128x128xbf16, #tpu.memory_space<vmem>>, vector<1x128x128xbf16>
    %70 = vector.shape_cast %69 : vector<1x128x128xbf16> to vector<128x128xbf16>
    %cst_62 = arith.constant dense<0.000000e+00> : vector<64x128xf32>
    %71 = tpu.matmul %68, %70, %cst_62 {dimension_numbers = #tpu.dot_dimension_numbers<[1], [0], [0], [1], [0, 0, 1, 1], [], []>} : vector<64x128xbf16>, vector<128x128xbf16>, vector<64x128xf32> -> vector<64x128xf32>
    %72 = arith.addf %64, %71 : vector<64x128xf32>
    %c0_63 = arith.constant 0 : index
    %c0_64 = arith.constant 0 : index
    %73 = vector.load %arg3[%c0_63, %c0_64] : memref<1x128xf32, #tpu.memory_space<vmem>>, vector<1x128xf32>
    %74 = vector.broadcast %73 : vector<1x128xf32> to vector<64x128xf32>
    %75 = arith.addf %72, %74 : vector<64x128xf32>
    %cst_65 = arith.constant 0.000000e+00 : f32
    %76 = vector.broadcast %cst_65 : f32 to vector<64x128xf32>
    %77 = arith.maximumf %75, %76 : vector<64x128xf32>
    %c0_66 = arith.constant 0 : index
    %c0_67 = arith.constant 0 : index
    %78 = vector.load %arg5[%c0_66, %c0_67] : memref<64x128xf32, #tpu.memory_space<vmem>>, vector<64x128xf32>
    tpu.vector_store %arg5[%c0_66, %c0_67], %77 {strides = array<i32>} : memref<64x128xf32, #tpu.memory_space<vmem>>, vector<64x128xf32>,
    %c0_68 = arith.constant 0 : index
    %c0_69 = arith.constant 0 : index
    %79 = tpu.strided_load %arg5[%c0_68, %c0_69] {strides = array<i32: 2, 1>} : memref<64x128xf32, #tpu.memory_space<vmem>>, vector<32x128xf32>
    %c1_70 = arith.constant 1 : index
    %c0_71 = arith.constant 0 : index
    %80 = tpu.strided_load %arg5[%c1_70, %c0_71] {strides = array<i32: 2, 1>} : memref<64x128xf32, #tpu.memory_space<vmem>>, vector<32x128xf32>
    %81 = arith.maximumf %79, %80 : vector<32x128xf32>
    %c0_72 = arith.constant 0 : index
    %c0_73 = arith.constant 0 : index
    %82 = vector.load %arg5[%c0_72, %c0_73] : memref<64x128xf32, #tpu.memory_space<vmem>>, vector<32x128xf32>
    tpu.vector_store %arg5[%c0_72, %c0_73], %81 {strides = array<i32>} : memref<64x128xf32, #tpu.memory_space<vmem>>, vector<32x128xf32>,
    %c0_74 = arith.constant 0 : index
    %c0_75 = arith.constant 0 : index
    %83 = vector.load %arg5[%c0_74, %c0_75] : memref<64x128xf32, #tpu.memory_space<vmem>>, vector<4x128xf32>
    %c4_76 = arith.constant 4 : index
    %c0_77 = arith.constant 0 : index
    %84 = vector.load %arg5[%c4_76, %c0_77] : memref<64x128xf32, #tpu.memory_space<vmem>>, vector<4x128xf32>
    %85 = arith.maximumf %83, %84 : vector<4x128xf32>
    %c0_78 = arith.constant 0 : index
    %c0_79 = arith.constant 0 : index
    %c0_80 = arith.constant 0 : index
    %c0_81 = arith.constant 0 : index
    %86 = vector.load %arg4[%c0_78, %c0_79, %c0_80, %c0_81] : memref<1x4x4x128xf32, #tpu.memory_space<vmem>>, vector<1x1x4x128xf32>
    %87 = vector.shape_cast %86 : vector<1x1x4x128xf32> to vector<4x128xf32>
    %88 = vector.shape_cast %85 : vector<4x128xf32> to vector<1x1x4x128xf32>
    tpu.vector_store %arg4[%c0_78, %c0_79, %c0_80, %c0_81], %88 {strides = array<i32>} : memref<1x4x4x128xf32, #tpu.memory_space<vmem>>, vector<1x1x4x128xf32>,
    %c8_82 = arith.constant 8 : index
    %c0_83 = arith.constant 0 : index
    %89 = vector.load %arg5[%c8_82, %c0_83] : memref<64x128xf32, #tpu.memory_space<vmem>>, vector<4x128xf32>
    %c12 = arith.constant 12 : index
    %c0_84 = arith.constant 0 : index
    %90 = vector.load %arg5[%c12, %c0_84] : memref<64x128xf32, #tpu.memory_space<vmem>>, vector<4x128xf32>
    %91 = arith.maximumf %89, %90 : vector<4x128xf32>
    %c0_85 = arith.constant 0 : index
    %c1_86 = arith.constant 1 : index
    %c0_87 = arith.constant 0 : index
    %c0_88 = arith.constant 0 : index
    %92 = vector.load %arg4[%c0_85, %c1_86, %c0_87, %c0_88] : memref<1x4x4x128xf32, #tpu.memory_space<vmem>>, vector<1x1x4x128xf32>
    %93 = vector.shape_cast %92 : vector<1x1x4x128xf32> to vector<4x128xf32>
    %94 = vector.shape_cast %91 : vector<4x128xf32> to vector<1x1x4x128xf32>
    tpu.vector_store %arg4[%c0_85, %c1_86, %c0_87, %c0_88], %94 {strides = array<i32>} : memref<1x4x4x128xf32, #tpu.memory_space<vmem>>, vector<1x1x4x128xf32>,
    %c16 = arith.constant 16 : index
    %c0_89 = arith.constant 0 : index
    %95 = vector.load %arg5[%c16, %c0_89] : memref<64x128xf32, #tpu.memory_space<vmem>>, vector<4x128xf32>
    %c20 = arith.constant 20 : index
    %c0_90 = arith.constant 0 : index
    %96 = vector.load %arg5[%c20, %c0_90] : memref<64x128xf32, #tpu.memory_space<vmem>>, vector<4x128xf32>
    %97 = arith.maximumf %95, %96 : vector<4x128xf32>
    %c0_91 = arith.constant 0 : index
    %c2_92 = arith.constant 2 : index
    %c0_93 = arith.constant 0 : index
    %c0_94 = arith.constant 0 : index
    %98 = vector.load %arg4[%c0_91, %c2_92, %c0_93, %c0_94] : memref<1x4x4x128xf32, #tpu.memory_space<vmem>>, vector<1x1x4x128xf32>
    %99 = vector.shape_cast %98 : vector<1x1x4x128xf32> to vector<4x128xf32>
    %100 = vector.shape_cast %97 : vector<4x128xf32> to vector<1x1x4x128xf32>
    tpu.vector_store %arg4[%c0_91, %c2_92, %c0_93, %c0_94], %100 {strides = array<i32>} : memref<1x4x4x128xf32, #tpu.memory_space<vmem>>, vector<1x1x4x128xf32>,
    %c24 = arith.constant 24 : index
    %c0_95 = arith.constant 0 : index
    %101 = vector.load %arg5[%c24, %c0_95] : memref<64x128xf32, #tpu.memory_space<vmem>>, vector<4x128xf32>
    %c28 = arith.constant 28 : index
    %c0_96 = arith.constant 0 : index
    %102 = vector.load %arg5[%c28, %c0_96] : memref<64x128xf32, #tpu.memory_space<vmem>>, vector<4x128xf32>
    %103 = arith.maximumf %101, %102 : vector<4x128xf32>
    %c0_97 = arith.constant 0 : index
    %c3_98 = arith.constant 3 : index
    %c0_99 = arith.constant 0 : index
    %c0_100 = arith.constant 0 : index
    %104 = vector.load %arg4[%c0_97, %c3_98, %c0_99, %c0_100] : memref<1x4x4x128xf32, #tpu.memory_space<vmem>>, vector<1x1x4x128xf32>
    %105 = vector.shape_cast %104 : vector<1x1x4x128xf32> to vector<4x128xf32>
    %106 = vector.shape_cast %103 : vector<4x128xf32> to vector<1x1x4x128xf32>
    tpu.vector_store %arg4[%c0_97, %c3_98, %c0_99, %c0_100], %106 {strides = array<i32>} : memref<1x4x4x128xf32, #tpu.memory_space<vmem>>, vector<1x1x4x128xf32>,
    return
  }
  func.func @transform_0(%arg0: i32) -> (i32, i32, i32, i32) {
    %c0_i32 = arith.constant 0 : i32
    %c0_i32_0 = arith.constant 0 : i32
    %c0_i32_1 = arith.constant 0 : i32
    %c0_i32_2 = arith.constant 0 : i32
    return %arg0, %c0_i32, %c0_i32_0, %c0_i32_1 : i32, i32, i32, i32
  }
  func.func @transform_1(%arg0: i32) -> (i32, i32, i32) {
    %c0_i32 = arith.constant 0 : i32
    %c0_i32_0 = arith.constant 0 : i32
    %c0_i32_1 = arith.constant 0 : i32
    %c0_i32_2 = arith.constant 0 : i32
    return %c0_i32, %c0_i32_0, %c0_i32_1 : i32, i32, i32
  }
  func.func @transform_2(%arg0: i32) -> (i32, i32) {
    %c0_i32 = arith.constant 0 : i32
    %c0_i32_0 = arith.constant 0 : i32
    %c0_i32_1 = arith.constant 0 : i32
    return %c0_i32, %c0_i32_0 : i32, i32
  }
  func.func @transform_3(%arg0: i32) -> (i32, i32, i32, i32) {
    %c0_i32 = arith.constant 0 : i32
    %c0_i32_0 = arith.constant 0 : i32
    %c0_i32_1 = arith.constant 0 : i32
    %c0_i32_2 = arith.constant 0 : i32
    return %arg0, %c0_i32, %c0_i32_0, %c0_i32_1 : i32, i32, i32, i32
  }
}

</mosaic_0001>

<bundles_post_ra>
// kernel: _lambda_.4
= control target key start
LH: loop header
LB: loop body
LE: loop exit
PB: predicated region body
PF: predicated region fallthrough
CT: control target
= control target key end

     0   :  { %s2411_s12 = smov 0   ;;  %s2779_s0 = inlined_call_operand.vmem [shape: f32[2,10,10,128], index: 0, kind: input, shape index: {}]   ;;  %s2780_s1 = inlined_call_operand.vmem [shape: bf16[9,128,128], index: 1, kind: input, shape index: {}]   ;;  %s2781_s2 = inlined_call_operand.vmem [shape: f32[1,128], index: 2, kind: input, shape index: {}]   ;;  %s2782_s3 = inlined_call_operand.vmem [shape: f32[2,4,4,128], index: 3, kind: output, shape index: {}]  }
   0x1 LB: > { %s1635_s13 = sadd.s32 4294967295, %s2389_s12   ;;  %p1639_p0 = scmp.ge.s32.totalorder %s2389_s12, 1  ;;  %s2389_s12 = sphi %s2411_s12, %s13_s12  }
   0x2   : > { %p137_p1 = scmp.lt.s32.totalorder %s2389_s12, 3 }
   0x4   : > { %p138_p2 = pnand %p1639_p0, %p137_p1 }
   0x5   : > { %v2311_v0 = vld [vmem:[%s2780_s1 + $0x40] sm:$0xff] (!%p138_p2)   ;;  %p161_p3 = scmp.lt.s32.totalorder (!%p138_p2), %s1635_s13, 1  ;;  %v2313_v2 = vld [vmem:[%s2780_s1 + $0x48] sm:$0xff] (!%p138_p2)   ;;  %v2315_v4 = vld [vmem:[%s2780_s1 + $0x50] sm:$0xff] (!%p138_p2)  }
   0x6   : > { %141 = sbr.rel (%p138_p2) target bundleno = 410 (0x19a), region = 32  ;;  %v2312_v1 = vld [vmem:[%s2780_s1 + $0x100] sm:$0xff] (!%p138_p2)   ;;  %2006 = vmatprep.subr.bf16.mxu1 (!%p138_p2), %v2311_v0  ;;  %v2314_v3 = vld [vmem:[%s2780_s1 + $0x108] sm:$0xff] (!%p138_p2)   ;;  %v2316_v5 = vld [vmem:[%s2780_s1 + $0x110] sm:$0xff] (!%p138_p2)  }
   0x7   : > { %2102 = vmatprep.subr.bf16.mxu0 (!%p138_p2), %v2312_v1  ;;  %2007 = vmatpush3.bf16.msra.mxu1 (!%p138_p2), %v2311_v0  ;;  %v2317_v6 = vld [vmem:[%s2780_s1 + $0x58] sm:$0xff] (!%p138_p2)   ;;  %v2319_v8 = vld [vmem:[%s2780_s1 + $0x60] sm:$0xff] (!%p138_p2)   ;;  %v2321_v10 = vld [vmem:[%s2780_s1 + $0x68] sm:$0xff] (!%p138_p2)  }
   0x8   : > { %2103 = vmatpush3.bf16.msra.mxu0 (!%p138_p2), %v2312_v1  ;;  %2008 = vmatprep.subr.bf16.mxu1 (!%p138_p2), %v2313_v2  ;;  %v2318_v7 = vld [vmem:[%s2780_s1 + $0x118] sm:$0xff] (!%p138_p2)   ;;  %v2320_v9 = vld [vmem:[%s2780_s1 + $0x120] sm:$0xff] (!%p138_p2)   ;;  %v2322_v13 = vld [vmem:[%s2780_s1 + $0x128] sm:$0xff] (!%p138_p2)  }
   0x9   : > { %2104 = vmatprep.subr.bf16.mxu0 (!%p138_p2), %v2314_v3  ;;  %v2323_v17 = vld [vmem:[%s2780_s1 + $0x70] sm:$0xff] (!%p138_p2)   ;;  %v2325_v19 = vld [vmem:[%s2780_s1 + $0x78] sm:$0xff] (!%p138_p2)   ;;  %v2327_v21 = vld [vmem:[%s2780_s1] sm:$0xff] (!%p138_p2)  }
   0xa   : > { %v2324_v18 = vld [vmem:[%s2780_s1 + $0x130] sm:$0xff] (!%p138_p2)   ;;  %v2326_v20 = vld [vmem:[%s2780_s1 + $0x138] sm:$0xff] (!%p138_p2)   ;;  %v2328_v24 = vld [vmem:[%s2780_s1 + $0x140] sm:$0xff] (!%p138_p2)  }
   0xb   : > { %2009 = vmatpush3.bf16.msra.mxu1 (!%p138_p2), %v2313_v2  ;;  %v2329_v29 = vld [vmem:[%s2780_s1 + $0x8] sm:$0xff] (!%p138_p2)   ;;  %v2331_v34 = vld [vmem:[%s2780_s1 + $0x10] sm:$0xff] (!%p138_p2)   ;;  %v2333_v43 = vld [vmem:[%s2780_s1 + $0x18] sm:$0xff] (!%p138_p2)  }
   0xc   : > { %2105 = vmatpush3.bf16.msra.mxu0 (!%p138_p2), %v2314_v3  ;;  %2010 = vmatprep.subr.bf16.mxu1 (!%p138_p2), %v2315_v4  ;;  %v2330_v30 = vld [vmem:[%s2780_s1 + $0x148] sm:$0xff] (!%p138_p2)   ;;  %v2332_v36 = vld [vmem:[%s2780_s1 + $0x150] sm:$0xff] (!%p138_p2)   ;;  %v2334_v44 = vld [vmem:[%s2780_s1 + $0x158] sm:$0xff] (!%p138_p2)  }
   0xd   : > { %s2784_s13 = smov (!%p161_p3, %s1635_s13), 1  ;;  %2106 = vmatprep.subr.bf16.mxu0 %v2316_v5  ;;  %v2335_v47 = vld [vmem:[%s2780_s1 + $0x20] sm:$0xff]   ;;  %v2337_v49 = vld [vmem:[%s2780_s1 + $0x28] sm:$0xff]   ;;  %v2339_v51 = vld [vmem:[%s2780_s1 + $0x30] sm:$0xff]  }
   0xe   : > { %s2302_s30 = smul.u32 160, %s2784_s13  ;;  %v2336_v48 = vld [vmem:[%s2780_s1 + $0x160] sm:$0xff]   ;;  %v2338_v50 = vld [vmem:[%s2780_s1 + $0x168] sm:$0xff]   ;;  %v2340_v52 = vld [vmem:[%s2780_s1 + $0x170] sm:$0xff]   ;;  %s1897_s18 = sshll.u32 %s2784_s13, 4 }
   0xf   : > { %2011 = vmatpush3.bf16.msra.mxu1 %v2315_v4  ;;  %v2341_v53 = vld [vmem:[%s2780_s1 + $0x38] sm:$0xff]   ;;  %v2343_v57 = vld [vmem:[%s2780_s1 + $0x80] sm:$0xff]   ;;  %v2345_v0 = vld [vmem:[%s2780_s1 + $0x88] sm:$0xff]   ;;  %s170_s21 = scalar_lea.vmem %s2782_s3, %s1897_s18 }
  0x10   : > { %2107 = vmatpush3.bf16.msra.mxu0 %v2316_v5  ;;  %2012 = vmatprep.subr.bf16.mxu1 %v2317_v6  ;;  %s2455_s10 = scalar_lea.vmem %s2779_s0, %s2302_s30  ;;  %v2342_v54 = vld [vmem:[%s2780_s1 + $0x178] sm:$0xff]   ;;  %v2344_v59 = vld [vmem:[%s2780_s1 + $0x180] sm:$0xff]   ;;  %v2346_v4 = vld [vmem:[%s2780_s1 + $0x188] sm:$0xff]  }
  0x11   : > { %2108 = vmatprep.subr.bf16.mxu0 %v2318_v7  ;;  %v200_v11 = vld [vmem:[%s2455_s10 + $0x1] sm:$0xff]  ;;  %v201_v12 = vld [vmem:[%s2455_s10 + $0x11] sm:$0xff] }
  0x12   : > { %v208_v14 = vpack.c.bf16 %v201_v12, %v200_v11  ;;  %v1732_v15 = vld [vmem:[%s2455_s10 + $0x21] sm:$0xff]  ;;  %v203_v22 = vld [vmem:[%s2455_s10 + $0x31] sm:$0xff] }
  0x13   : > { %2013 = vmatpush3.bf16.msra.mxu1 %v2317_v6  ;;  %v764_v16 = vpack.c.bf16 %v1732_v15, %v201_v12  ;;  %v1734_v23 = vld [vmem:[%s2455_s10 + $0x41] sm:$0xff]  ;;  %v2486_v25 = vpack.c.bf16 %v203_v22, %v1732_v15  ;;  %v205_v26 = vld [vmem:[%s2455_s10 + $0x51] sm:$0xff] }
  0x14   : > { %2109 = vmatpush3.bf16.msra.mxu0 %v2318_v7  ;;  %2014 = vmatprep.subr.bf16.mxu1 %v2319_v8  ;;  %v765_v27 = vpack.c.bf16 %v1734_v23, %v203_v22  ;;  %v1736_v28 = vld [vmem:[%s2455_s10 + $0x61] sm:$0xff]  ;;  %v2496_v31 = vpack.c.bf16 %v205_v26, %v1734_v23  ;;  %v207_v33 = vld [vmem:[%s2455_s10 + $0x71] sm:$0xff] }
  0x15   : > { %2110 = vmatprep.subr.bf16.mxu0 %v2320_v9  ;;  %2022 = vmatprep.mubr.bf16.mxu1 %v208_v14  ;;  %v766_v32 = vpack.c.bf16 %v1736_v28, %v205_v26  ;;  %v2504_v35 = vld [vmem:[%s2455_s10 + $0x81] sm:$0xff]  ;;  %v2510_v37 = vpack.c.bf16 %v207_v33, %v1736_v28  ;;  %v2514_v39 = vld [vmem:[%s2455_s10 + $0x10] sm:$0xff]  ;;  %v2357_v26 = vld [vmem:[%s2780_s1 + $0xb8] sm:$0xff]  }
  0x16   : > { %2118 = vmatprep.mubr.bf16.mxu0 %v764_v16  ;;  %v172_v38 = vld [vmem:[%s2455_s10] sm:$0xff]  ;;  %v767_v40 = vpack.c.bf16 %v2504_v35, %v207_v33  ;;  %v2518_v41 = vld [vmem:[%s2455_s10 + $0x12] sm:$0xff]  ;;  %v2354_v22 = vld [vmem:[%s2780_s1 + $0x1a8] sm:$0xff]  }
  0x17   : > { %2015 = vmatpush3.bf16.msra.mxu1 %v2319_v8  ;;  %v2521_v42 = vld [vmem:[%s2455_s10 + $0x22] sm:$0xff]  ;;  %v180_v45 = vpack.c.bf16 %v2514_v39, %v172_v38  ;;  %v2561_v56 = vld [vmem:[%s2455_s10 + $0x30] sm:$0xff]  ;;  %v2349_v16 = vld [vmem:[%s2780_s1 + $0x98] sm:$0xff]  }
  0x18   : > { %2111 = vmatpush3.bf16.msra.mxu0 %v2320_v9  ;;  %2016 = vmatprep.subr.bf16.mxu1 %v2321_v10  ;;  %v914_v46 = vpack.c.bf16 %v2521_v42, %v2518_v41  ;;  %v2558_v55 = vld [vmem:[%s2455_s10 + $0x20] sm:$0xff]  ;;  %v2567_v58 = vld [vmem:[%s2455_s10 + $0x32] sm:$0xff]  ;;  %v2362_v33 = vld [vmem:[%s2780_s1 + $0x1c8] sm:$0xff]  }
  0x19   : > { %2112 = vmatprep.subr.bf16.mxu0 %v2322_v13  ;;  %v2573_v60 = vld [vmem:[%s2455_s10 + $0x42] sm:$0xff]  ;;  %v2579_v62 = vld [vmem:[%s2455_s10 + $0x50] sm:$0xff]  ;;  %v181_v63 = vpack.c.bf16 %v2561_v56, %v2558_v55 }
  0x1a   : > { %v2576_v61 = vld [vmem:[%s2455_s10 + $0x40] sm:$0xff]  ;;  %v2587_v1 = vld [vmem:[%s2455_s10 + $0x52] sm:$0xff]  ;;  %v915_v2 = vpack.c.bf16 %v2573_v60, %v2567_v58 }
  0x1b   : > { %2017 = vmatpush3.bf16.msra.mxu1 %v2321_v10  ;;  %v2592_v3 = vld [vmem:[%s2455_s10 + $0x62] sm:$0xff]  ;;  %v2599_v5 = vpack.c.bf16 %v2579_v62, %v2576_v61  ;;  %v2347_v7 = vld [vmem:[%s2780_s1 + $0x90] sm:$0xff]  }
  0x1c   : > { %2113 = vmatpush3.bf16.msra.mxu0 %v2322_v13  ;;  %2018 = vmatprep.subr.bf16.mxu1 %v2323_v17  ;;  %v2602_v6 = vld [vmem:[%s2455_s10 + $0x60] sm:$0xff]  ;;  %v916_v8 = vpack.c.bf16 %v2592_v3, %v2587_v1  ;;  %v2610_v9 = vld [vmem:[%s2455_s10 + $0x70] sm:$0xff] }
  0x1d   : > { %2114 = vmatprep.subr.bf16.mxu0 %v2324_v18  ;;  %v2613_v10 = vld [vmem:[%s2455_s10 + $0x72] sm:$0xff]  ;;  %v2616_v11 = vld [vmem:[%s2455_s10 + $0x82] sm:$0xff]  ;;  %v183_v13 = vpack.c.bf16 %v2610_v9, %v2602_v6 }
  0x1e   : > { %v2348_v12 = vld [vmem:[%s2780_s1 + $0x190] sm:$0xff]   ;;  %v455_v14 = vld [vmem:[%s2455_s10 + $0x2] sm:$0xff]  ;;  %v917_v15 = vpack.c.bf16 %v2616_v11, %v2613_v10 }
  0x1f   : > { %2019 = vmatpush3.bf16.msra.mxu1 %v2323_v17  ;;  %v2350_v17 = vld [vmem:[%s2780_s1 + $0x198] sm:$0xff]   ;;  %v2355_v23 = vld [vmem:[%s2780_s1 + $0xb0] sm:$0xff]   ;;  %v2359_v28 = vld [vmem:[%s2780_s1 + $0xc0] sm:$0xff]  }
  0x20   : > { %2115 = vmatpush3.bf16.msra.mxu0 %v2324_v18  ;;  %2020 = vmatprep.subr.bf16.mxu1 %v2325_v19  ;;  %v463_v18 = vpack.c.bf16 %v2518_v41, %v455_v14  ;;  %v2684_v38 = vld [vmem:[%s2455_s10 + $0x80] sm:$0xff]  ;;  %v2364_v41 = vld [vmem:[%s2780_s1 + $0x1d0] sm:$0xff]  }
  0x21   : > { %2116 = vmatprep.subr.bf16.mxu0 %v2326_v20 }
  0x23   : > { %2021 = vmatpush3.bf16.msra.mxu1 %v2325_v19  ;;  %v2351_v19 = vld [vmem:[%s2780_s1 + $0xa0] sm:$0xff]  }
  0x24   : > { %2117 = vmatpush3.bf16.msra.mxu0 %v2326_v20  ;;  %2030 = vmatprep.subr.bf16.mxu1 %v2327_v21  ;;  %v2352_v20 = vld [vmem:[%s2780_s1 + $0x1a0] sm:$0xff]  }
  0x25   : > { %2126 = vmatprep.subr.bf16.mxu0 %v2328_v24 }
  0x26   : > { %2023 = vmatmul.mubr.bf16.vlgmr.msra.gmra.mrb[0].mxu1 %v2486_v25 }
  0x27   : > { %2031 = vmatpush3.bf16.msra.mxu1 %v2327_v21  ;;  %2119 = vmatmul.mubr.bf16.vlgmr.msra.gmra.mrb[0].mxu0 %v765_v27  ;;  %v2353_v21 = vld [vmem:[%s2780_s1 + $0xa8] sm:$0xff]   ;;  %v2358_v27 = vld [vmem:[%s2780_s1 + $0x1b8] sm:$0xff]  }
  0x28   : > { %2127 = vmatpush3.bf16.msra.mxu0 %v2328_v24  ;;  %2032 = vmatprep.subr.bf16.mxu1 %v2329_v29  ;;  %v2356_v24 = vld [vmem:[%s2780_s1 + $0x1b0] sm:$0xff]  }
  0x29   : > { %2128 = vmatprep.subr.bf16.mxu0 %v2330_v30  ;;  %2026 = vmatprep.mubr.bf16.mxu1 %v2496_v31 }
  0x2a   : > { %2122 = vmatprep.mubr.bf16.mxu0 %v766_v32  ;;  %v2361_v32 = vld [vmem:[%s2780_s1 + $0xc8] sm:$0xff]  }
  0x2b   : > { %2033 = vmatpush3.bf16.msra.mxu1 %v2329_v29  ;;  %v2360_v29 = vld [vmem:[%s2780_s1 + $0x1c0] sm:$0xff]  }
  0x2c   : > { %2129 = vmatpush3.bf16.msra.mxu0 %v2330_v30  ;;  %2034 = vmatprep.subr.bf16.mxu1 %v2331_v34  ;;  %v2666_v30 = vpack.c.bf16 %v2567_v58, %v2521_v42  ;;  %v2693_v42 = vpack.c.bf16 %v2613_v10, %v2592_v3  ;;  %v1834_v58 = vld [vmem:[%s2455_s10 + $0x91] sm:$0xff] }
  0x2d   : > { %2130 = vmatprep.subr.bf16.mxu0 %v2332_v36 }
  0x2e   : > { %2027 = vmatmul.mubr.bf16.gmra.mrb[4].mxu1 %v2510_v37 }
  0x2f   : > { %2035 = vmatpush3.bf16.msra.mxu1 %v2331_v34  ;;  %2123 = vmatmul.mubr.bf16.gmra.mrb[4].mxu0 %v767_v40  ;;  %v2676_v34 = vpack.c.bf16 %v2587_v1, %v2573_v60  ;;  %v1802_v40 = vld [vmem:[%s2455_s10 + $0x90] sm:$0xff]  ;;  %v1218_v60 = vpack.c.bf16 %v1834_v58, %v2504_v35  ;;  %v2380_v35 = vld [vmem:[%s2780_s1 + $0x228] sm:$0xff]  }
  0x30   : > { %2131 = vmatpush3.bf16.msra.mxu0 %v2332_v36  ;;  %2036 = vmatprep.subr.bf16.mxu1 %v2333_v43  ;;  %v2363_v36 = vld [vmem:[%s2780_s1 + $0xd0] sm:$0xff]  }
  0x31   : > { %2132 = vmatprep.subr.bf16.mxu0 %v2334_v44  ;;  %2046 = vmatprep.mubr.bf16.mxu1 %v180_v45  ;;  %v2366_v45 = vld [vmem:[%s2780_s1 + $0x1d8] sm:$0xff]  }
  0x32   : > { %2142 = vmatprep.mubr.bf16.mxu0 %v914_v46  ;;  %v614_v46 = vpack.c.bf16 %v2558_v55, %v2514_v39  ;;  %v2369_v39 = vld [vmem:[%s2780_s1 + $0xe8] sm:$0xff]  }
  0x33   : > { %2037 = vmatpush3.bf16.msra.mxu1 %v2333_v43  ;;  %v1068_v43 = vpack.c.bf16 %v1802_v40, %v2684_v38  ;;  %v2376_v55 = vld [vmem:[%s2780_s1 + $0x208] sm:$0xff]  }
  0x34   : > { %2133 = vmatpush3.bf16.msra.mxu0 %v2334_v44  ;;  %2038 = vmatprep.subr.bf16.mxu1 %v2335_v47  ;;  %v2365_v44 = vld [vmem:[%s2780_s1 + $0xd8] sm:$0xff]  }
  0x35   : > { %2134 = vmatprep.subr.bf16.mxu0 %v2336_v48 }
  0x37   : > { %2039 = vmatpush3.bf16.msra.mxu1 %v2335_v47  ;;  %v2367_v47 = vld [vmem:[%s2780_s1 + $0xe0] sm:$0xff]  }
  0x38   : > { %2135 = vmatpush3.bf16.msra.mxu0 %v2336_v48  ;;  %2040 = vmatprep.subr.bf16.mxu1 %v2337_v49  ;;  %v2368_v48 = vld [vmem:[%s2780_s1 + $0x1e0] sm:$0xff]  }
  0x39   : > { %2136 = vmatprep.subr.bf16.mxu0 %v2338_v50 }
  0x3b   : > { %2041 = vmatpush3.bf16.msra.mxu1 %v2337_v49  ;;  %v2370_v49 = vld [vmem:[%s2780_s1 + $0x1e8] sm:$0xff]  }
  0x3c   : > { %2137 = vmatpush3.bf16.msra.mxu0 %v2338_v50  ;;  %2042 = vmatprep.subr.bf16.mxu1 %v2339_v51  ;;  %v2371_v50 = vld [vmem:[%s2780_s1 + $0xf0] sm:$0xff]  }
  0x3d   : > { %2138 = vmatprep.subr.bf16.mxu0 %v2340_v52 }
  0x3f   : > { %2043 = vmatpush3.bf16.msra.mxu1 %v2339_v51  ;;  %v2373_v51 = vld [vmem:[%s2780_s1 + $0xf8] sm:$0xff]  }
  0x40   : > { %2139 = vmatpush3.bf16.msra.mxu0 %v2340_v52  ;;  %2044 = vmatprep.subr.bf16.mxu1 %v2341_v53  ;;  %v2374_v52 = vld [vmem:[%s2780_s1 + $0x1f8] sm:$0xff]  }
  0x41   : > { %2140 = vmatprep.subr.bf16.mxu0 %v2342_v54 }
  0x43   : > { %2045 = vmatpush3.bf16.msra.mxu1 %v2341_v53  ;;  %v2375_v53 = vld [vmem:[%s2780_s1 + $0x200] sm:$0xff]  }
  0x44   : > { %2141 = vmatpush3.bf16.msra.mxu0 %v2342_v54  ;;  %2054 = vmatprep.subr.bf16.mxu1 %v2343_v57  ;;  %v615_v54 = vpack.c.bf16 %v2576_v61, %v2561_v56  ;;  %v2377_v56 = vld [vmem:[%s2780_s1 + $0x210] sm:$0xff]  }
  0x45   : > { %2150 = vmatprep.subr.bf16.mxu0 %v2344_v59  ;;  %v2381_v61 = vld [vmem:[%s2780_s1 + $0x230] sm:$0xff]  }
  0x46   : > { %2047 = vmatmul.mubr.bf16.vlgmr.msra.gmra.mrb[0].mxu1 %v181_v63 }
  0x47   : > { %2055 = vmatpush3.bf16.msra.mxu1 %v2343_v57  ;;  %2143 = vmatmul.mubr.bf16.vlgmr.msra.gmra.mrb[0].mxu0 %v915_v2  ;;  %v616_v57 = vpack.c.bf16 %v2602_v6, %v2579_v62  ;;  %v2382_v62 = vld [vmem:[%s2780_s1 + $0x238] sm:$0xff]  }
  0x48   : > { %2151 = vmatpush3.bf16.msra.mxu0 %v2344_v59  ;;  %2056 = vmatprep.subr.bf16.mxu1 %v2345_v0  ;;  %v617_v59 = vpack.c.bf16 %v2684_v38, %v2610_v9 }
  0x49   : > { %2152 = vmatprep.subr.bf16.mxu0 %v2346_v4  ;;  %2050 = vmatprep.mubr.bf16.mxu1 %v2599_v5 }
  0x4a   : > { %2146 = vmatprep.mubr.bf16.mxu0 %v916_v8 }
  0x4b   : > { %2057 = vmatpush3.bf16.msra.mxu1 %v2345_v0 }
  0x4c   : > { %2153 = vmatpush3.bf16.msra.mxu0 %v2346_v4  ;;  %2058 = vmatprep.subr.bf16.mxu1 %v2347_v7 }
  0x4d   : > { %2154 = vmatprep.subr.bf16.mxu0 %v2348_v12 }
  0x4e   : > { %2051 = vmatmul.mubr.bf16.gmra.mrb[4].mxu1 %v183_v13 }
  0x4f   : > { %2059 = vmatpush3.bf16.msra.mxu1 %v2347_v7  ;;  %2147 = vmatmul.mubr.bf16.gmra.mrb[4].mxu0 %v917_v15 }
  0x50   : > { %2155 = vmatpush3.bf16.msra.mxu0 %v2348_v12  ;;  %2060 = vmatprep.subr.bf16.mxu1 %v2349_v16 }
  0x51   : > { %2156 = vmatprep.subr.bf16.mxu0 %v2350_v17  ;;  %2070 = vmatprep.mubr.bf16.mxu1 %v463_v18 }
  0x52   : > { %2166 = vmatprep.mubr.bf16.mxu0 %v181_v63  ;;  %v1866_v63 = vld [vmem:[%s2455_s10 + $0x92] sm:$0xff] }
  0x53   : > { %2061 = vmatpush3.bf16.msra.mxu1 %v2349_v16  ;;  %v1368_v0 = vpack.c.bf16 %v1866_v63, %v2616_v11 }
  0x54   : > { %2157 = vmatpush3.bf16.msra.mxu0 %v2350_v17  ;;  %2062 = vmatprep.subr.bf16.mxu1 %v2351_v19  ;;  %v1891_v17 = vld [vmem:[%s2781_s2] ss:$0 sm:$0xff] }
  0x55   : > { %2158 = vmatprep.subr.bf16.mxu0 %v2352_v20 }
  0x57   : > { %2063 = vmatpush3.bf16.msra.mxu1 %v2351_v19 }
  0x58   : > { %2159 = vmatpush3.bf16.msra.mxu0 %v2352_v20  ;;  %2064 = vmatprep.subr.bf16.mxu1 %v2353_v21 }
  0x59   : > { %2160 = vmatprep.subr.bf16.mxu0 %v2354_v22 }
  0x5b   : > { %2065 = vmatpush3.bf16.msra.mxu1 %v2353_v21 }
  0x5c   : > { %2161 = vmatpush3.bf16.msra.mxu0 %v2354_v22  ;;  %2066 = vmatprep.subr.bf16.mxu1 %v2355_v23 }
  0x5d   : > { %2162 = vmatprep.subr.bf16.mxu0 %v2356_v24 }
  0x5f   : > { %2067 = vmatpush3.bf16.msra.mxu1 %v2355_v23 }
  0x60   : > { %2163 = vmatpush3.bf16.msra.mxu0 %v2356_v24  ;;  %2068 = vmatprep.subr.bf16.mxu1 %v2357_v26 }
  0x61   : > { %2164 = vmatprep.subr.bf16.mxu0 %v2358_v27 }
  0x63   : > { %2069 = vmatpush3.bf16.msra.mxu1 %v2357_v26 }
  0x64   : > { %2165 = vmatpush3.bf16.msra.mxu0 %v2358_v27  ;;  %2078 = vmatprep.subr.bf16.mxu1 %v2359_v28 }
  0x65   : > { %2174 = vmatprep.subr.bf16.mxu0 %v2360_v29 }
  0x66   : > { %2071 = vmatmul.mubr.bf16.vlgmr.msra.gmra.mrb[0].mxu1 %v2666_v30 }
  0x67   : > { %2079 = vmatpush3.bf16.msra.mxu1 %v2359_v28  ;;  %2167 = vmatmul.mubr.bf16.vlgmr.msra.gmra.mrb[0].mxu0 %v2599_v5 }
  0x68   : > { %2175 = vmatpush3.bf16.msra.mxu0 %v2360_v29  ;;  %2080 = vmatprep.subr.bf16.mxu1 %v2361_v32 }
  0x69   : > { %2176 = vmatprep.subr.bf16.mxu0 %v2362_v33  ;;  %2074 = vmatprep.mubr.bf16.mxu1 %v2676_v34 }
  0x6a   : > { %2170 = vmatprep.mubr.bf16.mxu0 %v183_v13 }
  0x6b   : > { %2081 = vmatpush3.bf16.msra.mxu1 %v2361_v32 }
  0x6c   : > { %2177 = vmatpush3.bf16.msra.mxu0 %v2362_v33  ;;  %2082 = vmatprep.subr.bf16.mxu1 %v2363_v36 }
  0x6d   : > { %2178 = vmatprep.subr.bf16.mxu0 %v2364_v41 }
  0x6e   : > { %2075 = vmatmul.mubr.bf16.gmra.mrb[4].mxu1 %v2693_v42 }
  0x6f   : > { %2083 = vmatpush3.bf16.msra.mxu1 %v2363_v36  ;;  %2171 = vmatmul.mubr.bf16.gmra.mrb[4].mxu0 %v1068_v43 }
  0x70   : > { %2179 = vmatpush3.bf16.msra.mxu0 %v2364_v41  ;;  %2084 = vmatprep.subr.bf16.mxu1 %v2365_v44 }
  0x71   : > { %2180 = vmatprep.subr.bf16.mxu0 %v2366_v45  ;;  %2094 = vmatprep.mubr.bf16.mxu1 %v614_v46 }
  0x72   : > { %2190 = vmatprep.mubr.bf16.mxu0 %v2486_v25  ;;  %v2372_v25 = vld [vmem:[%s2780_s1 + $0x1f0] sm:$0xff]  }
  0x73   : > { %2085 = vmatpush3.bf16.msra.mxu1 %v2365_v44 }
  0x74   : > { %2181 = vmatpush3.bf16.msra.mxu0 %v2366_v45  ;;  %2086 = vmatprep.subr.bf16.mxu1 %v2367_v47 }
  0x75   : > { %2182 = vmatprep.subr.bf16.mxu0 %v2368_v48 }
  0x77   : > { %2087 = vmatpush3.bf16.msra.mxu1 %v2367_v47 }
  0x78   : > { %2183 = vmatpush3.bf16.msra.mxu0 %v2368_v48  ;;  %2088 = vmatprep.subr.bf16.mxu1 %v2369_v39 }
  0x79   : > { %2184 = vmatprep.subr.bf16.mxu0 %v2370_v49 }
  0x7b   : > { %2089 = vmatpush3.bf16.msra.mxu1 %v2369_v39 }
  0x7c   : > { %2185 = vmatpush3.bf16.msra.mxu0 %v2370_v49  ;;  %2090 = vmatprep.subr.bf16.mxu1 %v2371_v50 }
  0x7d   : > { %2186 = vmatprep.subr.bf16.mxu0 %v2372_v25 }
  0x7f   : > { %2091 = vmatpush3.bf16.msra.mxu1 %v2371_v50 }
  0x80   : > { %2187 = vmatpush3.bf16.msra.mxu0 %v2372_v25  ;;  %2092 = vmatprep.subr.bf16.mxu1 %v2373_v51 }
  0x81   : > { %2188 = vmatprep.subr.bf16.mxu0 %v2374_v52 }
  0x83   : > { %2093 = vmatpush3.bf16.msra.mxu1 %v2373_v51 }
  0x84   : > { %2189 = vmatpush3.bf16.msra.mxu0 %v2374_v52  ;;  %2222 = vmatprep.subr.bf16.mxu1 %v2375_v53 }
  0x85   : > { %2198 = vmatprep.subr.bf16.mxu0 %v2375_v53 }
  0x86   : > { %2095 = vmatmul.mubr.bf16.vlgmr.msra.gmra.mrb[0].mxu1 %v615_v54 }
  0x87   : > { %2191 = vmatmul.mubr.bf16.vlgmr.msra.gmra.mrb[0].mxu0 %v2496_v31  ;;  %2230 = vmatpush3.bf16.msra.mxu1 %v2375_v53  ;;  %v2378_v31 = vld [vmem:[%s2780_s1 + $0x218] sm:$0xff]  }
  0x88   : > { %2199 = vmatpush3.bf16.msra.mxu0 %v2375_v53  ;;  %2223 = vmatprep.subr.bf16.mxu1 %v2376_v55 }
  0x89   : > { %2200 = vmatprep.subr.bf16.mxu0 %v2376_v55  ;;  %2098 = vmatprep.mubr.bf16.mxu1 %v616_v57 }
  0x8a   : > { %2194 = vmatprep.mubr.bf16.mxu0 %v2510_v37  ;;  %v2379_v37 = vld [vmem:[%s2780_s1 + $0x220] sm:$0xff]  }
  0x8b   : > { %2231 = vmatpush3.bf16.msra.mxu1 %v2376_v55 }
  0x8c   : > { %2201 = vmatpush3.bf16.msra.mxu0 %v2376_v55  ;;  %2224 = vmatprep.subr.bf16.mxu1 %v2377_v56 }
  0x8d   : > { %2202 = vmatprep.subr.bf16.mxu0 %v2377_v56 }
  0x8e   : > { %2099 = vmatmul.mubr.bf16.gmra.mrb[4].mxu1 %v617_v59 }
  0x8f   : > { %2195 = vmatmul.mubr.bf16.gmra.mrb[4].mxu0 %v1218_v60  ;;  %2232 = vmatpush3.bf16.msra.mxu1 %v2377_v56 }
  0x90   : > { %2203 = vmatpush3.bf16.msra.mxu0 %v2377_v56  ;;  %2225 = vmatprep.subr.bf16.mxu1 %v2378_v31 }
  0x91   : > { %2204 = vmatprep.subr.bf16.mxu0 %v2378_v31  ;;  %2214 = vmatprep.mubr.bf16.mxu0 %v2666_v30 }
  0x92   : > { %2218 = vmatprep.mubr.bf16.mxu1 %v2693_v42 }
  0x93   : > { %2233 = vmatpush3.bf16.msra.mxu1 %v2378_v31 }
  0x94   : > { %2205 = vmatpush3.bf16.msra.mxu0 %v2378_v31  ;;  %2226 = vmatprep.subr.bf16.mxu1 %v2379_v37 }
  0x95   : > { %2206 = vmatprep.subr.bf16.mxu0 %v2379_v37 }
  0x97   : > { %2234 = vmatpush3.bf16.msra.mxu1 %v2379_v37 }
  0x98   : > { %2207 = vmatpush3.bf16.msra.mxu0 %v2379_v37  ;;  %2227 = vmatprep.subr.bf16.mxu1 %v2380_v35 }
  0x99   : > { %2208 = vmatprep.subr.bf16.mxu0 %v2380_v35 }
  0x9b   : > { %2235 = vmatpush3.bf16.msra.mxu1 %v2380_v35 }
  0x9c   : > { %2209 = vmatpush3.bf16.msra.mxu0 %v2380_v35  ;;  %2228 = vmatprep.subr.bf16.mxu1 %v2381_v61 }
  0x9d   : > { %2210 = vmatprep.subr.bf16.mxu0 %v2381_v61 }
  0x9f   : > { %2236 = vmatpush3.bf16.msra.mxu1 %v2381_v61 }
  0xa0   : > { %2211 = vmatpush3.bf16.msra.mxu0 %v2381_v61  ;;  %2229 = vmatprep.subr.bf16.mxu1 %v2382_v62 }
  0xa1   : > { %2212 = vmatprep.subr.bf16.mxu0 %v2382_v62 }
  0xa3   : > { %2237 = vmatpush3.bf16.msra.mxu1 %v2382_v62 }
  0xa4   : > { %2213 = vmatpush3.bf16.msra.mxu0 %v2382_v62 }
  0xa6   : > { %2219 = vmatmul.mubr.bf16.vlgmr.msra.gmra.mrb[8].mxu1 %v1368_v0 }
  0xa7   : > { %2215 = vmatmul.mubr.bf16.vlgmr.msra.gmra.mrb[0].mxu0 %v2676_v34 }
 0x159   : > { %v2096_v1 = vpop.f32.mrb[0].mxu1 }
 0x15a   : > { %v717_v2 = vpop.f32.mrb[1].mxu1 }
 0x15b   : > { %v2097_v3 = vpop.f32.mrb[2].mxu1 }
 0x15c   : > { %v720_v4 = vpop.f32.mrb[3].mxu1 }
 0x161   : > { %v2100_v5 = vpop.f32.mrb[4].mxu1 }
 0x162   : > { %v2196_v6 = vpop.f32.mrb[4].mxu0  ;;  %v733_v7 = vpop.f32.mrb[5].mxu1 }
 0x163   : > { %v2242_v8 = vadd.f32 %v2196_v6, %v2100_v5  ;;  %v1334_v9 = vpop.f32.mrb[5].mxu0  ;;  %v2101_v10 = vpop.f32.mrb[6].mxu1 }
 0x164   : > { %v2244_v12 = vadd.f32 %v1334_v9, %v733_v7  ;;  %v2197_v13 = vpop.f32.mrb[6].mxu0  ;;  %v736_v14 = vpop.f32.mrb[7].mxu1 }
 0x165   : > { %v2246_v15 = vadd.f32 %v2197_v13, %v2101_v10  ;;  %v1337_v11 = vpop.f32.mrb[7].mxu0 }
 0x166   : > { %v2248_v16 = vadd.f32 %v1337_v11, %v736_v14 }
 0x179   : > { %v2220_v18 = vpop.f32.mrb[8].mxu1 }
 0x17a   : > { %v2216_v19 = vpop.f32.mrb[0].mxu0  ;;  %v2243_v20 = vadd.f32 %v2242_v8, %v2220_v18  ;;  %v1484_v21 = vpop.f32.mrb[9].mxu1 }
 0x17b   : > { %v2238_v22 = vadd.f32 %v2216_v19, %v2096_v1  ;;  %v1468_v23 = vpop.f32.mrb[1].mxu0  ;;  %v2245_v24 = vadd.f32 %v2244_v12, %v1484_v21  ;;  %v2221_v26 = vpop.f32.mrb[10].mxu1 }
 0x17c   : > { %v1520_v27 = vadd.f32 %v2243_v20, %v1891_v17  ;;  %v2239_v28 = vadd.f32 %v1468_v23, %v717_v2  ;;  %v2217_v29 = vpop.f32.mrb[2].mxu0  ;;  %v2247_v30 = vadd.f32 %v2246_v15, %v2221_v26  ;;  %v1487_v32 = vpop.f32.mrb[11].mxu1 }
 0x17d   : > { %v1516_v33 = vadd.f32 %v2238_v22, %v1891_v17  ;;  %v1518_v34 = vadd.f32 %v2245_v24, %v1891_v17  ;;  %v2240_v36 = vadd.f32 %v2217_v29, %v2097_v3  ;;  %v1471_v38 = vpop.f32.mrb[3].mxu0  ;;  %v2249_v40 = vadd.f32 %v2248_v16, %v1487_v32 }
 0x17e   : > { %v1528_v41 = vmax.f32 %v1520_v27, 0.0  ;;  %v1514_v42 = vadd.f32 %v2239_v28, %v1891_v17  ;;  %v1521_v43 = vadd.f32 %v2247_v30, %v1891_v17  ;;  %v2241_v44 = vadd.f32 %v1471_v38, %v720_v4 }
 0x17f   : > { %v1524_v45 = vmax.f32 %v1516_v33, 0.0  ;;  %v1526_v46 = vmax.f32 %v1518_v34, 0.0  ;;  %v1517_v47 = vadd.f32 %v2240_v36, %v1891_v17  ;;  %v1519_v48 = vadd.f32 %v2249_v40, %v1891_v17 }
 0x180   : > { %1536 = vst [vmem:[#allocation2 + $0x30] sm:$0xff] %v1528_v41  ;;  %v1522_v39 = vmax.f32 %v1514_v42, 0.0  ;;  %v1529_v49 = vmax.f32 %v1521_v43, 0.0  ;;  %v1515_v50 = vadd.f32 %v2241_v44, %v1891_v17 }
 0x181   : > { %1532 = vst [vmem:[#allocation2 + $0x10] sm:$0xff] %v1524_v45  ;;  %1534 = vst [vmem:[#allocation2 + $0x20] sm:$0xff] %v1526_v46  ;;  %v1525_v25 = vmax.f32 %v1517_v47, 0.0  ;;  %v1527_v51 = vmax.f32 %v1519_v48, 0.0 }
 0x182   : > { %1530 = vst [vmem:[#allocation2] sm:$0xff] %v1522_v39  ;;  %1537 = vst [vmem:[#allocation2 + $0x38] sm:$0xff] %v1529_v49  ;;  %v1523_v52 = vmax.f32 %v1515_v50, 0.0 }
 0x183   : > { %1533 = vst [vmem:[#allocation2 + $0x18] sm:$0xff] %v1525_v25  ;;  %1535 = vst [vmem:[#allocation2 + $0x28] sm:$0xff] %v1527_v51 }
 0x184   : > { %1531 = vst [vmem:[#allocation2 + $0x8] sm:$0xff] %v1523_v52 }
 0x189   : > { %v1544_v53 = vld [vmem:[#allocation2 + $0x30] ss:$2 sm:$0xff]  ;;  %v1552_v54 = vld [vmem:[#allocation2 + $0x31] ss:$2 sm:$0xff] }
 0x18a   : > { %v1540_v55 = vld [vmem:[#allocation2 + $0x10] ss:$2 sm:$0xff]  ;;  %v1548_v57 = vld [vmem:[#allocation2 + $0x11] ss:$2 sm:$0xff]  ;;  %v1556_v58 = vmax.f32 %v1544_v53, %v1552_v54  ;;  %v1542_v56 = vld [vmem:[#allocation2 + $0x20] ss:$2 sm:$0xff] }
 0x18b   : > { %v1538_v59 = vld [vmem:[#allocation2] ss:$2 sm:$0xff]  ;;  %v1546_v60 = vld [vmem:[#allocation2 + $0x1] ss:$2 sm:$0xff]  ;;  %v1554_v31 = vmax.f32 %v1540_v55, %v1548_v57 }
 0x18c   : > { %v1550_v37 = vld [vmem:[#allocation2 + $0x21] ss:$2 sm:$0xff]  ;;  %v1553_v35 = vmax.f32 %v1538_v59, %v1546_v60  ;;  %1560 = vst [vmem:[#allocation2 + $0x18] sm:$0xff] %v1556_v58 }
 0x18d   : > { %v1555_v61 = vmax.f32 %v1542_v56, %v1550_v37  ;;  %1558 = vst [vmem:[#allocation2 + $0x8] sm:$0xff] %v1554_v31 }
 0x18e   : > { %1557 = vst [vmem:[#allocation2] sm:$0xff] %v1553_v35 }
 0x18f   : > { %1559 = vst [vmem:[#allocation2 + $0x10] sm:$0xff] %v1555_v61 }
 0x193   : > { %v1575_v62 = vld [vmem:[#allocation2 + $0x18] sm:$0xf]  ;;  %v1576_v63 = vld [vmem:[#allocation2 + $0x1c] sm:$0xf] }
 0x194   : > { %v1565_v0 = vld [vmem:[#allocation2 + $0x8] sm:$0xf]  ;;  %v1566_v1 = vld [vmem:[#allocation2 + $0xc] sm:$0xf]  ;;  %v1577_v2 = vmax.f32 %v1575_v62, %v1576_v63 }
 0x195   : > { %v1561_v3 = vld [vmem:[#allocation2] sm:$0xf]  ;;  %v1562_v4 = vld [vmem:[#allocation2 + $0x4] sm:$0xf]  ;;  %v1567_v5 = vmax.f32 %v1565_v0, %v1566_v1 }
 0x196   : > { %v1570_v6 = vld [vmem:[#allocation2 + $0x10] sm:$0xf]  ;;  %v1563_v7 = vmax.f32 %v1561_v3, %v1562_v4  ;;  %1894 = vst [vmem:[%s170_s21 + $0xc] sm:$0xf] %v1577_v2  ;;  %v1571_v8 = vld [vmem:[#allocation2 + $0x14] sm:$0xf] }
 0x197   : > { %1892 = vst [vmem:[%s170_s21 + $0x4] sm:$0xf] %v1567_v5  ;;  %v1572_v9 = vmax.f32 %v1570_v6, %v1571_v8 }
 0x198   : > { %1564 = vst [vmem:[%s170_s21] sm:$0xf] %v1563_v7 }
 0x199   : > { %1893 = vst [vmem:[%s170_s21 + $0x8] sm:$0xf] %v1572_v9 }
 0x19a PF: > { %s13_s12 = sadd.s32 1, %s2389_s12  }
 0x19b   : > { %p10_p4 = scmp.ge.s32.totalorder %s13_s12, 4  }
 0x19d   :  { %12 = sbr.rel (!%p10_p4) target bundleno = 1 (0x1), region = 82 }

// kernel: _lambda_.5
= control target key start
LH: loop header
LB: loop body
LE: loop exit
PB: predicated region body
PF: predicated region fallthrough
CT: control target
= control target key end

     0   :  { %v291_v28 = vlaneseq  ;;  %v2120_v36 = vmov 1983009808   ;;  %s2602_s0 = inlined_call_operand.vmem [shape: f32[2,2048], index: 0, kind: input, shape index: {}]   ;;  %s2603_s1 = inlined_call_operand.vmem [shape: bf16[2048,128], index: 1, kind: input, shape index: {}]   ;;  %s2604_s2 = inlined_call_operand.vmem [shape: f32[1,128], index: 2, kind: input, shape index: {}]   ;;  %s2605_s3 = inlined_call_operand.vmem [shape: bf16[128,128], index: 3, kind: input, shape index: {}]   ;;  %s2606_s4 = inlined_call_operand.vmem [shape: f32[1,128], index: 4, kind: input, shape index: {}]   ;;  %s2607_s5 = inlined_call_operand.hbm [shape: f32[2,128], index: 5, kind: output, shape index: {}]  }
   0x1   :  { %v1956_v0 = vld [vmem:[%s2603_s1 + $0x40] sm:$0xff]   ;;  %v1960_v4 = vld [vmem:[%s2603_s1 + $0x48] sm:$0xff]   ;;  %v1964_v8 = vld [vmem:[%s2603_s1 + $0x50] sm:$0xff]   ;;  %v289_v37 = vunpack.c.l.s4 %v2120_v36 }
   0x2   :  { %v1957_v1 = vld [vmem:[%s2603_s1 + $0xc0] sm:$0xff]   ;;  %1747 = vmatprep.subr.bf16.mxu0 %v1956_v0  ;;  %v1961_v5 = vld [vmem:[%s2603_s1 + $0xc8] sm:$0xff]   ;;  %v1965_v9 = vld [vmem:[%s2603_s1 + $0xd0] sm:$0xff]   ;;  %v292_v33 = vshrl.u32 %v291_v28, 7 }
   0x3   :  { %v1958_v2 = vld [vmem:[%s2603_s1] sm:$0xff]   ;;  %1769 = vmatprep.subr.bf16.mxu1 %v1957_v1  ;;  %v1962_v6 = vld [vmem:[%s2603_s1 + $0x8] sm:$0xff]   ;;  %v1966_v10 = vld [vmem:[%s2603_s1 + $0x10] sm:$0xff]   ;;  %v290_v39 = vunpack.c.0.s8 %v289_v37 }
   0x4   :  { %v1959_v3 = vld [vmem:[%s2603_s1 + $0x80] sm:$0xff]   ;;  %1748 = vmatpush3.bf16.msra.mxu0 %v1958_v2  ;;  %v1963_v7 = vld [vmem:[%s2603_s1 + $0x88] sm:$0xff]   ;;  %v1967_v11 = vld [vmem:[%s2603_s1 + $0x90] sm:$0xff]  }
   0x5   :  { %1770 = vmatpush3.bf16.msra.mxu1 %v1959_v3  ;;  %1749 = vmatprep.subr.bf16.mxu0 %v1960_v4  ;;  %v1968_v12 = vld [vmem:[%s2603_s1 + $0x58] sm:$0xff]   ;;  %v1972_v16 = vld [vmem:[%s2603_s1 + $0x60] sm:$0xff]   ;;  %v1976_v20 = vld [vmem:[%s2603_s1 + $0x68] sm:$0xff]   ;;  %v2259_v41 = vsub.s32 %v290_v39, %v292_v33 }
   0x6   :  { %1771 = vmatprep.subr.bf16.mxu1 %v1961_v5  ;;  %v1969_v13 = vld [vmem:[%s2603_s1 + $0xd8] sm:$0xff]   ;;  %v1973_v17 = vld [vmem:[%s2603_s1 + $0xe0] sm:$0xff]   ;;  %v1977_v21 = vld [vmem:[%s2603_s1 + $0xe8] sm:$0xff]  }
   0x7   :  { %v1970_v14 = vld [vmem:[%s2603_s1 + $0x18] sm:$0xff]   ;;  %v1974_v18 = vld [vmem:[%s2603_s1 + $0x20] sm:$0xff]   ;;  %v1978_v22 = vld [vmem:[%s2603_s1 + $0x28] sm:$0xff]  }
   0x8   :  { %1750 = vmatpush3.bf16.msra.mxu0 %v1962_v6  ;;  %v1971_v15 = vld [vmem:[%s2603_s1 + $0x98] sm:$0xff]   ;;  %v1975_v19 = vld [vmem:[%s2603_s1 + $0xa0] sm:$0xff]   ;;  %v1979_v23 = vld [vmem:[%s2603_s1 + $0xa8] sm:$0xff]  }
   0x9   :  { %1772 = vmatpush3.bf16.msra.mxu1 %v1963_v7  ;;  %1751 = vmatprep.subr.bf16.mxu0 %v1964_v8  ;;  %v1980_v24 = vld [vmem:[%s2603_s1 + $0x70] sm:$0xff]   ;;  %v1984_v29 = vld [vmem:[%s2603_s1 + $0x78] sm:$0xff]   ;;  %v22_v34 = vld [vmem:[%s2602_s0] sm:$0xff] }
   0xa   :  { %1773 = vmatprep.subr.bf16.mxu1 %v1965_v9  ;;  %v1981_v25 = vld [vmem:[%s2603_s1 + $0xf0] sm:$0xff]   ;;  %v1985_v30 = vld [vmem:[%s2603_s1 + $0xf8] sm:$0xff]   ;;  %v1989_v35 = vld [vmem:[%s2603_s1 + $0x140] sm:$0xff]   ;;  %v287_v40 = vcombine.high %v22_v34, %v22_v34  ;;  %v294_v42 = vrot.slane %v22_v34, %v2259_v41 }
   0xb   :  { %v1982_v26 = vld [vmem:[%s2603_s1 + $0x30] sm:$0xff]   ;;  %v1986_v31 = vld [vmem:[%s2603_s1 + $0x38] sm:$0xff]   ;;  %v1990_v38 = vld [vmem:[%s2603_s1 + $0x1c0] sm:$0xff]  }
   0xc   :  { %1752 = vmatpush3.bf16.msra.mxu0 %v1966_v10  ;;  %v1983_v27 = vld [vmem:[%s2603_s1 + $0xb0] sm:$0xff]   ;;  %v1987_v32 = vld [vmem:[%s2603_s1 + $0xb8] sm:$0xff]   ;;  %v301_v43 = vrot.slane %v287_v40, %v2259_v41  ;;  %v302_v44 = vcombine.high %v294_v42, %v294_v42  ;;  %v1991_v46 = vld [vmem:[%s2603_s1 + $0x100] sm:$0xff]   ;;  %v371_v47 = vpack.c.bf16 %v294_v42, %v294_v42 }
   0xd   :  { %1774 = vmatpush3.bf16.msra.mxu1 %v1967_v11  ;;  %1753 = vmatprep.subr.bf16.mxu0 %v1968_v12  ;;  %v1992_v49 = vld [vmem:[%s2603_s1 + $0x180] sm:$0xff]   ;;  %v1993_v52 = vld [vmem:[%s2603_s1 + $0x148] sm:$0xff]   ;;  %v1997_v56 = vld [vmem:[%s2603_s1 + $0x150] sm:$0xff]  }
   0xe   :  { %1775 = vmatprep.subr.bf16.mxu1 %v1969_v13  ;;  %v303_v45 = vcombine.high %v301_v43, %v301_v43  ;;  %v373_v48 = vpack.c.bf16 %v301_v43, %v301_v43  ;;  %v372_v50 = vpack.c.bf16 %v302_v44, %v302_v44  ;;  %v1994_v53 = vld [vmem:[%s2603_s1 + $0x1c8] sm:$0xff]   ;;  %v1998_v57 = vld [vmem:[%s2603_s1 + $0x1d0] sm:$0xff]   ;;  %v2001_v60 = vld [vmem:[%s2603_s1 + $0x158] sm:$0xff]  }
   0xf   :  { %v1995_v54 = vld [vmem:[%s2603_s1 + $0x108] sm:$0xff]   ;;  %v1999_v58 = vld [vmem:[%s2603_s1 + $0x110] sm:$0xff]   ;;  %v2002_v61 = vld [vmem:[%s2603_s1 + $0x1d8] sm:$0xff]  }
  0x10   :  { %1754 = vmatpush3.bf16.msra.mxu0 %v1970_v14  ;;  %v374_v51 = vpack.c.bf16 %v303_v45, %v303_v45  ;;  %1193 = vmatprep.mubr.bf16.mxu0 %v372_v50  ;;  %v1996_v55 = vld [vmem:[%s2603_s1 + $0x188] sm:$0xff]   ;;  %v2000_v59 = vld [vmem:[%s2603_s1 + $0x190] sm:$0xff]   ;;  %v2003_v62 = vld [vmem:[%s2603_s1 + $0x118] sm:$0xff]  }
  0x11   :  { %1776 = vmatpush3.bf16.msra.mxu1 %v1971_v15  ;;  %1755 = vmatprep.subr.bf16.mxu0 %v1972_v16  ;;  %v2004_v63 = vld [vmem:[%s2603_s1 + $0x198] sm:$0xff]   ;;  %v2005_v0 = vld [vmem:[%s2603_s1 + $0x160] sm:$0xff]   ;;  %v2009_v4 = vld [vmem:[%s2603_s1 + $0x168] sm:$0xff]  }
  0x12   :  { %1777 = vmatprep.subr.bf16.mxu1 %v1973_v17  ;;  %1233 = vmatprep.mubr.bf16.mxu1 %v374_v51  ;;  %v2006_v1 = vld [vmem:[%s2603_s1 + $0x1e0] sm:$0xff]   ;;  %v2010_v5 = vld [vmem:[%s2603_s1 + $0x1e8] sm:$0xff]   ;;  %v2013_v8 = vld [vmem:[%s2603_s1 + $0x170] sm:$0xff]  }
  0x13   :  { %v2007_v2 = vld [vmem:[%s2603_s1 + $0x120] sm:$0xff]   ;;  %v2011_v6 = vld [vmem:[%s2603_s1 + $0x128] sm:$0xff]   ;;  %v2014_v9 = vld [vmem:[%s2603_s1 + $0x1f0] sm:$0xff]  }
  0x14   :  { %1756 = vmatpush3.bf16.msra.mxu0 %v1974_v18  ;;  %v2008_v3 = vld [vmem:[%s2603_s1 + $0x1a0] sm:$0xff]   ;;  %v2012_v7 = vld [vmem:[%s2603_s1 + $0x1a8] sm:$0xff]   ;;  %v2015_v11 = vld [vmem:[%s2603_s1 + $0x130] sm:$0xff]  }
  0x15   :  { %1778 = vmatpush3.bf16.msra.mxu1 %v1975_v19  ;;  %1757 = vmatprep.subr.bf16.mxu0 %v1976_v20  ;;  %v23_v10 = vld [vmem:[%s2602_s0 + $0x8] sm:$0xff]  ;;  %v2016_v14 = vld [vmem:[%s2603_s1 + $0x1b0] sm:$0xff]   ;;  %v2017_v15 = vld [vmem:[%s2603_s1 + $0x178] sm:$0xff]  }
  0x16   :  { %1779 = vmatprep.subr.bf16.mxu1 %v1977_v21  ;;  %v311_v12 = vrot.slane %v23_v10, %v2259_v41  ;;  %v304_v13 = vcombine.high %v23_v10, %v23_v10  ;;  %v2018_v18 = vld [vmem:[%s2603_s1 + $0x1f8] sm:$0xff]   ;;  %v2029_v33 = vld [vmem:[%s2603_s1 + $0x288] sm:$0xff]   ;;  %v2030_v34 = vld [vmem:[%s2603_s1 + $0x250] sm:$0xff]  }
  0x17   :  { %v2019_v19 = vld [vmem:[%s2603_s1 + $0x138] sm:$0xff]   ;;  %v2032_v36 = vld [vmem:[%s2603_s1 + $0x210] sm:$0xff]   ;;  %v2038_v43 = vld [vmem:[%s2603_s1 + $0x260] sm:$0xff]  }
  0x18   :  { %1758 = vmatpush3.bf16.msra.mxu0 %v1978_v22  ;;  %v319_v16 = vcombine.high %v311_v12, %v311_v12  ;;  %v318_v17 = vrot.slane %v304_v13, %v2259_v41  ;;  %v2020_v22 = vld [vmem:[%s2603_s1 + $0x1b8] sm:$0xff]   ;;  %v2033_v37 = vld [vmem:[%s2603_s1 + $0x290] sm:$0xff]   ;;  %v2039_v44 = vld [vmem:[%s2603_s1 + $0x2e0] sm:$0xff]  }
  0x19   :  { %1780 = vmatpush3.bf16.msra.mxu1 %v1979_v23  ;;  %1759 = vmatprep.subr.bf16.mxu0 %v1980_v24  ;;  %v2022_v24 = vld [vmem:[%s2603_s1 + $0x240] sm:$0xff]   ;;  %v2035_v39 = vld [vmem:[%s2603_s1 + $0x2d8] sm:$0xff]   ;;  %v2045_v50 = vld [vmem:[%s2603_s1 + $0x2a8] sm:$0xff]  }
  0x1a   :  { %1781 = vmatprep.subr.bf16.mxu1 %v1981_v25  ;;  %v376_v20 = vpack.c.bf16 %v319_v16, %v319_v16  ;;  %v320_v21 = vcombine.high %v318_v17, %v318_v17  ;;  %v2023_v25 = vld [vmem:[%s2603_s1 + $0x2c0] sm:$0xff]   ;;  %v377_v28 = vpack.c.bf16 %v318_v17, %v318_v17  ;;  %v2036_v40 = vld [vmem:[%s2603_s1 + $0x218] sm:$0xff]   ;;  %v2046_v51 = vld [vmem:[%s2603_s1 + $0x270] sm:$0xff]  }
  0x1b   :  { %v2037_v42 = vld [vmem:[%s2603_s1 + $0x298] sm:$0xff]   ;;  %v2040_v45 = vld [vmem:[%s2603_s1 + $0x220] sm:$0xff]   ;;  %v2060_v10 = vld [vmem:[%s2603_s1 + $0x3c8] sm:$0xff]  }
  0x1c   :  { %1760 = vmatpush3.bf16.msra.mxu0 %v1982_v26  ;;  %v378_v23 = vpack.c.bf16 %v320_v21, %v320_v21  ;;  %v2024_v26 = vld [vmem:[%s2603_s1 + $0x200] sm:$0xff]   ;;  %v2063_v13 = vld [vmem:[%s2603_s1 + $0x350] sm:$0xff]   ;;  %v2067_v17 = vld [vmem:[%s2603_s1 + $0x358] sm:$0xff]  }
  0x1d   :  { %1782 = vmatpush3.bf16.msra.mxu1 %v1983_v27  ;;  %1761 = vmatprep.subr.bf16.mxu0 %v1984_v29  ;;  %v375_v27 = vpack.c.bf16 %v311_v12, %v311_v12  ;;  %v2025_v29 = vld [vmem:[%s2603_s1 + $0x280] sm:$0xff]   ;;  %v2062_v12 = vld [vmem:[%s2603_s1 + $0x388] sm:$0xff]   ;;  %v2066_v16 = vld [vmem:[%s2603_s1 + $0x390] sm:$0xff]  }
  0x1e   :  { %1783 = vmatprep.subr.bf16.mxu1 %v1985_v30  ;;  %v2026_v30 = vld [vmem:[%s2603_s1 + $0x248] sm:$0xff]   ;;  %v2071_v21 = vld [vmem:[%s2603_s1 + $0x360] sm:$0xff]  }
  0x20   :  { %1762 = vmatpush3.bf16.msra.mxu0 %v1986_v31  ;;  %v2027_v31 = vld [vmem:[%s2603_s1 + $0x2c8] sm:$0xff]  }
  0x21   :  { %1784 = vmatpush3.bf16.msra.mxu1 %v1987_v32  ;;  %1791 = vmatprep.subr.bf16.mxu0 %v1989_v35  ;;  %v2028_v32 = vld [vmem:[%s2603_s1 + $0x208] sm:$0xff]   ;;  %v2031_v35 = vld [vmem:[%s2603_s1 + $0x2d0] sm:$0xff]  }
  0x22   :  { %1813 = vmatprep.subr.bf16.mxu1 %v1990_v38  ;;  %v2034_v38 = vld [vmem:[%s2603_s1 + $0x258] sm:$0xff]  }
  0x23   :  { %1194 = vmatmul.mubr.bf16.vlgmr.msra.gmra.mrb[0].mxu0 %v371_v47  ;;  %v2042_v47 = vld [vmem:[%s2603_s1 + $0x268] sm:$0xff]  }
  0x24   :  { %1234 = vmatmul.mubr.bf16.vlgmr.msra.gmra.mrb[0].mxu1 %v373_v48  ;;  %1792 = vmatpush3.bf16.msra.mxu0 %v1991_v46  ;;  %v2041_v46 = vld [vmem:[%s2603_s1 + $0x2a0] sm:$0xff]   ;;  %v2043_v48 = vld [vmem:[%s2603_s1 + $0x2e8] sm:$0xff]  }
  0x25   :  { %1814 = vmatpush3.bf16.msra.mxu1 %v1992_v49  ;;  %1793 = vmatprep.subr.bf16.mxu0 %v1993_v52  ;;  %v2044_v49 = vld [vmem:[%s2603_s1 + $0x228] sm:$0xff]   ;;  %v2047_v52 = vld [vmem:[%s2603_s1 + $0x2f0] sm:$0xff]  }
  0x26   :  { %1815 = vmatprep.subr.bf16.mxu1 %v1994_v53  ;;  %1273 = vmatprep.mubr.bf16.mxu0 %v376_v20  ;;  %v24_v53 = vld [vmem:[%s2602_s0 + $0x10] sm:$0xff]  ;;  %v2070_v20 = vld [vmem:[%s2603_s1 + $0x398] sm:$0xff]  }
  0x27   :  { %1313 = vmatprep.mubr.bf16.mxu1 %v378_v23  ;;  %v2073_v23 = vld [vmem:[%s2603_s1 + $0x320] sm:$0xff]  }
  0x28   :  { %1794 = vmatpush3.bf16.msra.mxu0 %v1995_v54  ;;  %v2048_v54 = vld [vmem:[%s2603_s1 + $0x230] sm:$0xff]  }
  0x29   :  { %1816 = vmatpush3.bf16.msra.mxu1 %v1996_v55  ;;  %1795 = vmatprep.subr.bf16.mxu0 %v1997_v56  ;;  %v328_v55 = vrot.slane %v24_v53, %v2259_v41  ;;  %v321_v56 = vcombine.high %v24_v53, %v24_v53 }
  0x2a   :  { %1817 = vmatprep.subr.bf16.mxu1 %v1998_v57  ;;  %v2049_v57 = vld [vmem:[%s2603_s1 + $0x2b0] sm:$0xff]  }
  0x2c   :  { %1796 = vmatpush3.bf16.msra.mxu0 %v1999_v58  ;;  %v2050_v58 = vld [vmem:[%s2603_s1 + $0x278] sm:$0xff]  }
  0x2d   :  { %1818 = vmatpush3.bf16.msra.mxu1 %v2000_v59  ;;  %1797 = vmatprep.subr.bf16.mxu0 %v2001_v60  ;;  %v336_v59 = vcombine.high %v328_v55, %v328_v55  ;;  %v335_v60 = vrot.slane %v321_v56, %v2259_v41 }
  0x2e   :  { %1819 = vmatprep.subr.bf16.mxu1 %v2002_v61  ;;  %v2051_v61 = vld [vmem:[%s2603_s1 + $0x2f8] sm:$0xff]  }
  0x30   :  { %1798 = vmatpush3.bf16.msra.mxu0 %v2003_v62  ;;  %v2052_v62 = vld [vmem:[%s2603_s1 + $0x238] sm:$0xff]  }
  0x31   :  { %1820 = vmatpush3.bf16.msra.mxu1 %v2004_v63  ;;  %1799 = vmatprep.subr.bf16.mxu0 %v2005_v0  ;;  %v380_v63 = vpack.c.bf16 %v336_v59, %v336_v59  ;;  %v337_v0 = vcombine.high %v335_v60, %v335_v60 }
  0x32   :  { %1821 = vmatprep.subr.bf16.mxu1 %v2006_v1  ;;  %v2053_v1 = vld [vmem:[%s2603_s1 + $0x2b8] sm:$0xff]  }
  0x34   :  { %1800 = vmatpush3.bf16.msra.mxu0 %v2007_v2  ;;  %v382_v2 = vpack.c.bf16 %v337_v0, %v337_v0 }
  0x35   :  { %1822 = vmatpush3.bf16.msra.mxu1 %v2008_v3  ;;  %1801 = vmatprep.subr.bf16.mxu0 %v2009_v4  ;;  %v2055_v3 = vld [vmem:[%s2603_s1 + $0x340] sm:$0xff]  }
  0x36   :  { %1823 = vmatprep.subr.bf16.mxu1 %v2010_v5  ;;  %v2056_v4 = vld [vmem:[%s2603_s1 + $0x3c0] sm:$0xff]  }
  0x37   :  { %v2057_v5 = vld [vmem:[%s2603_s1 + $0x300] sm:$0xff]  }
  0x38   :  { %1802 = vmatpush3.bf16.msra.mxu0 %v2011_v6  ;;  %v379_v6 = vpack.c.bf16 %v328_v55, %v328_v55 }
  0x39   :  { %1824 = vmatpush3.bf16.msra.mxu1 %v2012_v7  ;;  %1803 = vmatprep.subr.bf16.mxu0 %v2013_v8  ;;  %v381_v7 = vpack.c.bf16 %v335_v60, %v335_v60  ;;  %v2058_v8 = vld [vmem:[%s2603_s1 + $0x380] sm:$0xff]  }
  0x3a   :  { %1825 = vmatprep.subr.bf16.mxu1 %v2014_v9  ;;  %v2059_v9 = vld [vmem:[%s2603_s1 + $0x348] sm:$0xff]  }
  0x3c   :  { %1804 = vmatpush3.bf16.msra.mxu0 %v2015_v11  ;;  %v2061_v11 = vld [vmem:[%s2603_s1 + $0x308] sm:$0xff]  }
  0x3d   :  { %1826 = vmatpush3.bf16.msra.mxu1 %v2016_v14  ;;  %1805 = vmatprep.subr.bf16.mxu0 %v2017_v15  ;;  %v2064_v14 = vld [vmem:[%s2603_s1 + $0x3d0] sm:$0xff]  }
  0x3e   :  { %1827 = vmatprep.subr.bf16.mxu1 %v2018_v18  ;;  %v2065_v15 = vld [vmem:[%s2603_s1 + $0x310] sm:$0xff]   ;;  %v2068_v18 = vld [vmem:[%s2603_s1 + $0x3d8] sm:$0xff]  }
  0x40   :  { %1806 = vmatpush3.bf16.msra.mxu0 %v2019_v19  ;;  %v2069_v19 = vld [vmem:[%s2603_s1 + $0x318] sm:$0xff]  }
  0x41   :  { %1828 = vmatpush3.bf16.msra.mxu1 %v2020_v22  ;;  %1835 = vmatprep.subr.bf16.mxu0 %v2022_v24  ;;  %v2072_v22 = vld [vmem:[%s2603_s1 + $0x3e0] sm:$0xff]  }
  0x42   :  { %1857 = vmatprep.subr.bf16.mxu1 %v2023_v25  ;;  %v2074_v24 = vld [vmem:[%s2603_s1 + $0x3a0] sm:$0xff]   ;;  %v2075_v25 = vld [vmem:[%s2603_s1 + $0x368] sm:$0xff]  }
  0x43   :  { %1274 = vmatmul.mubr.bf16.vlgmr.msra.gmra.mrb[4].mxu0 %v375_v27  ;;  %v2077_v27 = vld [vmem:[%s2603_s1 + $0x328] sm:$0xff]  }
  0x44   :  { %1314 = vmatmul.mubr.bf16.vlgmr.msra.gmra.mrb[4].mxu1 %v377_v28  ;;  %1836 = vmatpush3.bf16.msra.mxu0 %v2024_v26  ;;  %v2076_v26 = vld [vmem:[%s2603_s1 + $0x3e8] sm:$0xff]  }
  0x45   :  { %1858 = vmatpush3.bf16.msra.mxu1 %v2025_v29  ;;  %1837 = vmatprep.subr.bf16.mxu0 %v2026_v30  ;;  %v2078_v28 = vld [vmem:[%s2603_s1 + $0x3a8] sm:$0xff]   ;;  %v2079_v29 = vld [vmem:[%s2603_s1 + $0x370] sm:$0xff]  }
  0x46   :  { %1859 = vmatprep.subr.bf16.mxu1 %v2027_v31  ;;  %1353 = vmatprep.mubr.bf16.mxu0 %v380_v63  ;;  %v2080_v30 = vld [vmem:[%s2603_s1 + $0x3f0] sm:$0xff]  }
  0x47   :  { %1393 = vmatprep.mubr.bf16.mxu1 %v382_v2  ;;  %v2081_v31 = vld [vmem:[%s2603_s1 + $0x330] sm:$0xff]  }
  0x48   :  { %1838 = vmatpush3.bf16.msra.mxu0 %v2028_v32  ;;  %v2082_v32 = vld [vmem:[%s2603_s1 + $0x3b0] sm:$0xff]  }
  0x49   :  { %1860 = vmatpush3.bf16.msra.mxu1 %v2029_v33  ;;  %1839 = vmatprep.subr.bf16.mxu0 %v2030_v34  ;;  %v25_v33 = vld [vmem:[%s2602_s0 + $0x18] sm:$0xff] }
  0x4a   :  { %1861 = vmatprep.subr.bf16.mxu1 %v2031_v35  ;;  %v2083_v34 = vld [vmem:[%s2603_s1 + $0x378] sm:$0xff]  }
  0x4b   :  { %v2084_v35 = vld [vmem:[%s2603_s1 + $0x3f8] sm:$0xff]  }
  0x4c   :  { %1840 = vmatpush3.bf16.msra.mxu0 %v2032_v36  ;;  %v345_v36 = vrot.slane %v25_v33, %v2259_v41 }
  0x4d   :  { %1862 = vmatpush3.bf16.msra.mxu1 %v2033_v37  ;;  %1841 = vmatprep.subr.bf16.mxu0 %v2034_v38  ;;  %v338_v37 = vcombine.high %v25_v33, %v25_v33 }
  0x4e   :  { %1863 = vmatprep.subr.bf16.mxu1 %v2035_v39  ;;  %v353_v38 = vcombine.high %v345_v36, %v345_v36 }
  0x4f   :  { %v352_v39 = vrot.slane %v338_v37, %v2259_v41 }
  0x50   :  { %1842 = vmatpush3.bf16.msra.mxu0 %v2036_v40  ;;  %v384_v40 = vpack.c.bf16 %v353_v38, %v353_v38 }
  0x51   :  { %1864 = vmatpush3.bf16.msra.mxu1 %v2037_v42  ;;  %1843 = vmatprep.subr.bf16.mxu0 %v2038_v43  ;;  %v354_v42 = vcombine.high %v352_v39, %v352_v39  ;;  %v2085_v43 = vld [vmem:[%s2603_s1 + $0x338] sm:$0xff]  }
  0x52   :  { %1865 = vmatprep.subr.bf16.mxu1 %v2039_v44  ;;  %v2086_v44 = vld [vmem:[%s2603_s1 + $0x3b8] sm:$0xff]  }
  0x54   :  { %1844 = vmatpush3.bf16.msra.mxu0 %v2040_v45 }
  0x55   :  { %1866 = vmatpush3.bf16.msra.mxu1 %v2041_v46  ;;  %1845 = vmatprep.subr.bf16.mxu0 %v2042_v47 }
  0x56   :  { %1867 = vmatprep.subr.bf16.mxu1 %v2043_v48 }
  0x58   :  { %1846 = vmatpush3.bf16.msra.mxu0 %v2044_v49 }
  0x59   :  { %1868 = vmatpush3.bf16.msra.mxu1 %v2045_v50  ;;  %1847 = vmatprep.subr.bf16.mxu0 %v2046_v51 }
  0x5a   :  { %1869 = vmatprep.subr.bf16.mxu1 %v2047_v52 }
  0x5c   :  { %1848 = vmatpush3.bf16.msra.mxu0 %v2048_v54 }
  0x5d   :  { %1870 = vmatpush3.bf16.msra.mxu1 %v2049_v57  ;;  %1849 = vmatprep.subr.bf16.mxu0 %v2050_v58 }
  0x5e   :  { %1871 = vmatprep.subr.bf16.mxu1 %v2051_v61 }
  0x60   :  { %1850 = vmatpush3.bf16.msra.mxu0 %v2052_v62 }
  0x61   :  { %1872 = vmatpush3.bf16.msra.mxu1 %v2053_v1  ;;  %1879 = vmatprep.subr.bf16.mxu0 %v2055_v3 }
  0x62   :  { %1901 = vmatprep.subr.bf16.mxu1 %v2056_v4 }
  0x63   :  { %1354 = vmatmul.mubr.bf16.vlgmr.msra.gmra.mrb[8].mxu0 %v379_v6 }
  0x64   :  { %1394 = vmatmul.mubr.bf16.vlgmr.msra.gmra.mrb[8].mxu1 %v381_v7  ;;  %1880 = vmatpush3.bf16.msra.mxu0 %v2057_v5 }
  0x65   :  { %1902 = vmatpush3.bf16.msra.mxu1 %v2058_v8  ;;  %1881 = vmatprep.subr.bf16.mxu0 %v2059_v9 }
  0x66   :  { %1903 = vmatprep.subr.bf16.mxu1 %v2060_v10 }
  0x68   :  { %1882 = vmatpush3.bf16.msra.mxu0 %v2061_v11 }
  0x69   :  { %1904 = vmatpush3.bf16.msra.mxu1 %v2062_v12  ;;  %1883 = vmatprep.subr.bf16.mxu0 %v2063_v13 }
  0x6a   :  { %1905 = vmatprep.subr.bf16.mxu1 %v2064_v14 }
  0x6c   :  { %1884 = vmatpush3.bf16.msra.mxu0 %v2065_v15 }
  0x6d   :  { %1906 = vmatpush3.bf16.msra.mxu1 %v2066_v16  ;;  %1885 = vmatprep.subr.bf16.mxu0 %v2067_v17 }
  0x6e   :  { %1907 = vmatprep.subr.bf16.mxu1 %v2068_v18 }
  0x70   :  { %1886 = vmatpush3.bf16.msra.mxu0 %v2069_v19 }
  0x71   :  { %1908 = vmatpush3.bf16.msra.mxu1 %v2070_v20  ;;  %1887 = vmatprep.subr.bf16.mxu0 %v2071_v21 }
  0x72   :  { %1909 = vmatprep.subr.bf16.mxu1 %v2072_v22 }
  0x74   :  { %1888 = vmatpush3.bf16.msra.mxu0 %v2073_v23 }
  0x75   :  { %1910 = vmatpush3.bf16.msra.mxu1 %v2074_v24  ;;  %1889 = vmatprep.subr.bf16.mxu0 %v2075_v25 }
  0x76   :  { %1911 = vmatprep.subr.bf16.mxu1 %v2076_v26 }
  0x78   :  { %1890 = vmatpush3.bf16.msra.mxu0 %v2077_v27 }
  0x79   :  { %1912 = vmatpush3.bf16.msra.mxu1 %v2078_v28  ;;  %1891 = vmatprep.subr.bf16.mxu0 %v2079_v29 }
  0x7a   :  { %1913 = vmatprep.subr.bf16.mxu1 %v2080_v30 }
  0x7c   :  { %1892 = vmatpush3.bf16.msra.mxu0 %v2081_v31 }
  0x7d   :  { %1914 = vmatpush3.bf16.msra.mxu1 %v2082_v32 }
  0x7e   :  { %10 = vsyncpa [#allocation3], 0  ;;  %1893 = vmatprep.subr.bf16.mxu0 %v2083_v34  ;;  %1915 = vmatprep.subr.bf16.mxu1 %v2084_v35  ;;  %v386_v45 = vpack.c.bf16 %v354_v42, %v354_v42  ;;  %v383_v46 = vpack.c.bf16 %v345_v36, %v345_v36  ;;  %v385_v41 = vpack.c.bf16 %v352_v39, %v352_v39  ;;  %v2088_v47 = vld [vmem:[%s2605_s3] sm:$0xff]   ;;  %v2121_v48 = vmov 0.0   ;;  %v2089_v49 = vld [vmem:[%s2605_s3 + $0x8] sm:$0xff]   ;;  %s2123_s23 = smov [#allocation2]  }
  0x7f   :  { %1433 = vmatprep.mubr.bf16.mxu0 %v384_v40  ;;  %v2090_v50 = vld [vmem:[%s2605_s3 + $0x10] sm:$0xff]   ;;  %v2091_v51 = vld [vmem:[%s2605_s3 + $0x18] sm:$0xff]   ;;  %v2092_v52 = vld [vmem:[%s2605_s3 + $0x20] sm:$0xff]   ;;  %vm2122_vm0 = vmmov 0   ;;  %s1601_s24 = sshll.u32 %s2123_s23, 4  ;;  %s1602_s24 = int_to_ptr.vmem [resolvable:$true] %s1601_s24 }
  0x80   :  { %1473 = vmatprep.mubr.bf16.mxu1 %v386_v45  ;;  %1894 = vmatpush3.bf16.msra.mxu0 %v2085_v43  ;;  %v2093_v53 = vld [vmem:[%s2605_s3 + $0x28] sm:$0xff]   ;;  %v2094_v54 = vld [vmem:[%s2605_s3 + $0x30] sm:$0xff]   ;;  %v2095_v55 = vld [vmem:[%s2605_s3 + $0x38] sm:$0xff]   ;;  %s2096_s25 = scalar_lea.vmem %s1602_s24, 32  ;;  %p2101_p1 = scmp.lt.s32.totalorder %s1602_s24, %s1602_s24 }
  0x81   :  { %1916 = vmatpush3.bf16.msra.mxu1 %v2086_v44  ;;  %1932 = vmatprep.subr.bf16.mxu0 %v2121_v48  ;;  %v1609_v58 = vld [vmem:[%s2604_s2] ss:$0 sm:$0xff]  ;;  %p2097_p0 = scmp.ne.s32.totalorder %s1602_s24, %s2096_s25  ;;  %p2102_p2 = scmp.lt.s32.totalorder %s2096_s25, %s2096_s25 }
  0x82   :  { %v1738_v44 = vld [vmem:[%s2606_s4] ss:$0 sm:$0xff] }
  0x83   :  { %1434 = vmatmul.mubr.bf16.vlgmr.msra.gmra.mrb[12].mxu0 %v383_v46  ;;  %p2103_p3 = por %p2102_p2, %p2101_p1 }
  0x84   :  { %1474 = vmatmul.mubr.bf16.vlgmr.msra.gmra.mrb[12].mxu1 %v385_v41  ;;  %1933 = vmatpush3.bf16.msra.mxu0 %v2088_v47 }
  0x85   :  { %1934 = vmatprep.subr.bf16.mxu0 %v2121_v48  ;;  %1948 = vmatprep.mubr.msk.bf16.mxu0 %vm2122_vm0, %v2121_v48  ;;  %p2104_p4 = pnand %p2103_p3, %p2097_p0 }
  0x88   :  { %1935 = vmatpush3.bf16.msra.mxu0 %v2089_v49 }
  0x89   :  { %1936 = vmatprep.subr.bf16.mxu0 %v2121_v48 }
  0x8c   :  { %1937 = vmatpush3.bf16.msra.mxu0 %v2090_v50 }
  0x8d   :  { %1938 = vmatprep.subr.bf16.mxu0 %v2121_v48 }
  0x90   :  { %1939 = vmatpush3.bf16.msra.mxu0 %v2091_v51 }
  0x91   :  { %1940 = vmatprep.subr.bf16.mxu0 %v2121_v48 }
  0x94   :  { %1941 = vmatpush3.bf16.msra.mxu0 %v2092_v52 }
  0x95   :  { %1942 = vmatprep.subr.bf16.mxu0 %v2121_v48 }
  0x98   :  { %1943 = vmatpush3.bf16.msra.mxu0 %v2093_v53 }
  0x99   :  { %1944 = vmatprep.subr.bf16.mxu0 %v2121_v48 }
  0x9c   :  { %1945 = vmatpush3.bf16.msra.mxu0 %v2094_v54 }
  0x9d   :  { %1946 = vmatprep.subr.bf16.mxu0 %v2121_v48 }
  0xa0   :  { %1947 = vmatpush3.bf16.msra.mxu0 %v2095_v55 }
  0xf6   :  { %v1763_v56 = vpop.f32.mrb[0].mxu0 }
  0xf7   :  { %v1785_v57 = vpop.f32.mrb[0].mxu1  ;;  %v1764_v59 = vpop.f32.mrb[1].mxu0 }
  0xf8   :  { %v1786_v60 = vpop.f32.mrb[1].mxu1  ;;  %v1765_v61 = vadd.f32 %v1764_v59, %v1763_v56  ;;  %v1766_v63 = vpop.f32.mrb[2].mxu0 }
  0xf9   :  { %v1787_v62 = vadd.f32 %v1786_v60, %v1785_v57  ;;  %v1788_v0 = vpop.f32.mrb[2].mxu1  ;;  %v1767_v1 = vpop.f32.mrb[3].mxu0 }
  0xfa   :  { %v1789_v2 = vpop.f32.mrb[3].mxu1  ;;  %v1196_v3 = vadd.f32 %v1765_v61, %v1609_v58 }
  0xfc   :  { %v1236_v4 = vadd.f32 %v1787_v62, %v1196_v3 }
 0x116   :  { %v1807_v5 = vpop.f32.mrb[4].mxu0 }
 0x117   :  { %v1829_v6 = vpop.f32.mrb[4].mxu1  ;;  %v1808_v7 = vpop.f32.mrb[5].mxu0 }
 0x118   :  { %v1830_v8 = vpop.f32.mrb[5].mxu1  ;;  %v1809_v9 = vadd.f32 %v1808_v7, %v1807_v5  ;;  %v1810_v11 = vpop.f32.mrb[6].mxu0 }
 0x119   :  { %v1831_v10 = vadd.f32 %v1830_v8, %v1829_v6  ;;  %v1832_v12 = vpop.f32.mrb[6].mxu1  ;;  %v1811_v13 = vpop.f32.mrb[7].mxu0 }
 0x11a   :  { %v1833_v14 = vpop.f32.mrb[7].mxu1  ;;  %v1276_v15 = vadd.f32 %v1809_v9, %v1236_v4 }
 0x11c   :  { %v1316_v16 = vadd.f32 %v1831_v10, %v1276_v15 }
 0x136   :  { %v1851_v17 = vpop.f32.mrb[8].mxu0 }
 0x137   :  { %v1873_v18 = vpop.f32.mrb[8].mxu1  ;;  %v1852_v19 = vpop.f32.mrb[9].mxu0 }
 0x138   :  { %v1874_v20 = vpop.f32.mrb[9].mxu1  ;;  %v1853_v21 = vadd.f32 %v1852_v19, %v1851_v17  ;;  %v1854_v23 = vpop.f32.mrb[10].mxu0 }
 0x139   :  { %v1875_v22 = vadd.f32 %v1874_v20, %v1873_v18  ;;  %v1876_v24 = vpop.f32.mrb[10].mxu1  ;;  %v1855_v25 = vpop.f32.mrb[11].mxu0 }
 0x13a   :  { %v1877_v26 = vpop.f32.mrb[11].mxu1  ;;  %v1356_v27 = vadd.f32 %v1853_v21, %v1316_v16 }
 0x13c   :  { %v1396_v28 = vadd.f32 %v1875_v22, %v1356_v27 }
 0x156   :  { %v1895_v29 = vpop.f32.mrb[12].mxu0 }
 0x157   :  { %v1917_v30 = vpop.f32.mrb[12].mxu1  ;;  %v1896_v31 = vpop.f32.mrb[13].mxu0 }
 0x158   :  { %v1918_v32 = vpop.f32.mrb[13].mxu1  ;;  %v1897_v33 = vadd.f32 %v1896_v31, %v1895_v29  ;;  %v1898_v35 = vpop.f32.mrb[14].mxu0 }
 0x159   :  { %v1919_v34 = vadd.f32 %v1918_v32, %v1917_v30  ;;  %v1920_v36 = vpop.f32.mrb[14].mxu1  ;;  %v1899_v37 = vpop.f32.mrb[15].mxu0 }
 0x15a   :  { %v1921_v38 = vpop.f32.mrb[15].mxu1  ;;  %v1436_v39 = vadd.f32 %v1897_v33, %v1396_v28 }
 0x15c   :  { %v1476_v40 = vadd.f32 %v1919_v34, %v1436_v39 }
 0x15e   :  { %v1481_v42 = vmax.f32 %v1476_v40, 0.0 }
 0x160   :  { %v1499_v43 = vpack.c.bf16 %v1481_v42, %v1481_v42 }
 0x162   :  { %1949 = vmatmul.mubr.bf16.vlgmr.msra.gmra.mrb[16].mxu0 %v1499_v43 }
 0x235   :  { %v1588_v45 = vpop.f32.mrb[16].mxu0 }
 0x236   :  { %v1589_v46 = vadd.f32 %v1738_v44, %v1588_v45  ;;  %v1950_v41 = vpop.f32.mrb[17].mxu0 }
 0x237   :  { %v1591_v47 = vpop.f32.mrb[18].mxu0 }
 0x238   :  { %1594 = vst [vmem:[#allocation2] sm:$0x3] %v1589_v46  ;;  %v1951_v48 = vpop.f32.mrb[19].mxu0 }
 0x239   :  { %2107 = shalt.err (!%p2104_p4)
}
 0x23a   :  { %s2108_s4 = scalar_lea.hbm %s2607_s5, 32 }
 0x23b   :  { %p2109_p5 = scmp.ne.s32.totalorder %s2607_s5, %s2108_s4  ;;  %p2112_p6 = scmp.lt.u32.totalorder %s2108_s4, %s2607_s5 }
 0x23d   :  { %p2114_p7 = pnand %p2112_p6, %p2109_p5 }
 0x23f   :  { %2117 = shalt.err (!%p2114_p7)
}
 0x240   :  { %1604 = dma.vmem_to_hbm [thread:$0]  %s1602_s24, 32, %s2607_s5, [#allocation3]  }
 0x241   :  { %2118 = dma.done.wait [#allocation3], 32  }
 0x242   :  { %2119 = vsyncadd [#allocation3], 4294967264 }
 0x243   :  { %1608 = vsyncpa [#allocation3], 1 }

// kernel: _lambda_.3
= control target key start
LH: loop header
LB: loop body
LE: loop exit
PB: predicated region body
PF: predicated region fallthrough
CT: control target
= control target key end

     0   :  { %s4603_s12 = smov 0   ;;  %s5279_s0 = inlined_call_operand.vmem [shape: f32[2,18,18,128], index: 0, kind: input, shape index: {}]   ;;  %s5280_s1 = inlined_call_operand.vmem [shape: bf16[9,128,128], index: 1, kind: input, shape index: {}]   ;;  %s5281_s2 = inlined_call_operand.vmem [shape: f32[1,128], index: 2, kind: input, shape index: {}]   ;;  %s5282_s3 = inlined_call_operand.vmem [shape: f32[2,8,8,128], index: 3, kind: output, shape index: {}]  }
   0x1 LB: > { %s3155_s13 = sadd.s32 4294967295, %s4581_s12   ;;  %p3159_p0 = scmp.ge.s32.totalorder %s4581_s12, 1  ;;  %s4581_s12 = sphi %s4603_s12, %s13_s12  }
   0x2   : > { %p137_p1 = scmp.lt.s32.totalorder %s4581_s12, 3 }
   0x4   : > { %p138_p2 = pnand %p3159_p0, %p137_p1 }
   0x5   : > { %v4495_v0 = vld [vmem:[%s5280_s1 + $0x40] sm:$0xff] (!%p138_p2)   ;;  %p161_p3 = scmp.lt.s32.totalorder (!%p138_p2), %s3155_s13, 1  ;;  %v4497_v2 = vld [vmem:[%s5280_s1 + $0x48] sm:$0xff] (!%p138_p2)   ;;  %v4499_v4 = vld [vmem:[%s5280_s1 + $0x50] sm:$0xff] (!%p138_p2)  }
   0x6   : > { %141 = sbr.rel (%p138_p2) target bundleno = 554 (0x22a), region = 32  ;;  %v4496_v1 = vld [vmem:[%s5280_s1 + $0x100] sm:$0xff] (!%p138_p2)   ;;  %3782 = vmatprep.subr.bf16.mxu1 (!%p138_p2), %v4495_v0  ;;  %v4498_v3 = vld [vmem:[%s5280_s1 + $0x108] sm:$0xff] (!%p138_p2)   ;;  %v4500_v5 = vld [vmem:[%s5280_s1 + $0x110] sm:$0xff] (!%p138_p2)  }
   0x7   : > { %3974 = vmatprep.subr.bf16.mxu0 (!%p138_p2), %v4496_v1  ;;  %3783 = vmatpush3.bf16.msra.mxu1 (!%p138_p2), %v4495_v0  ;;  %v4501_v6 = vld [vmem:[%s5280_s1 + $0x58] sm:$0xff] (!%p138_p2)   ;;  %v4503_v8 = vld [vmem:[%s5280_s1 + $0x60] sm:$0xff] (!%p138_p2)   ;;  %v4505_v10 = vld [vmem:[%s5280_s1 + $0x68] sm:$0xff] (!%p138_p2)  }
   0x8   : > { %3975 = vmatpush3.bf16.msra.mxu0 (!%p138_p2), %v4496_v1  ;;  %3784 = vmatprep.subr.bf16.mxu1 (!%p138_p2), %v4497_v2  ;;  %v4502_v7 = vld [vmem:[%s5280_s1 + $0x118] sm:$0xff] (!%p138_p2)   ;;  %v4504_v9 = vld [vmem:[%s5280_s1 + $0x120] sm:$0xff] (!%p138_p2)   ;;  %v4506_v11 = vld [vmem:[%s5280_s1 + $0x128] sm:$0xff] (!%p138_p2)  }
   0x9   : > { %3976 = vmatprep.subr.bf16.mxu0 (!%p138_p2), %v4498_v3  ;;  %v4507_v18 = vld [vmem:[%s5280_s1 + $0x70] sm:$0xff] (!%p138_p2)   ;;  %v4509_v20 = vld [vmem:[%s5280_s1 + $0x78] sm:$0xff] (!%p138_p2)   ;;  %v4511_v22 = vld [vmem:[%s5280_s1] sm:$0xff] (!%p138_p2)  }
   0xa   : > { %v4508_v19 = vld [vmem:[%s5280_s1 + $0x130] sm:$0xff] (!%p138_p2)   ;;  %v4510_v21 = vld [vmem:[%s5280_s1 + $0x138] sm:$0xff] (!%p138_p2)   ;;  %v4512_v25 = vld [vmem:[%s5280_s1 + $0x140] sm:$0xff] (!%p138_p2)  }
   0xb   : > { %3785 = vmatpush3.bf16.msra.mxu1 (!%p138_p2), %v4497_v2  ;;  %v4513_v29 = vld [vmem:[%s5280_s1 + $0x148] sm:$0xff] (!%p138_p2)   ;;  %v4515_v34 = vld [vmem:[%s5280_s1 + $0x150] sm:$0xff] (!%p138_p2)   ;;  %v4516_v40 = vld [vmem:[%s5280_s1 + $0x158] sm:$0xff] (!%p138_p2)  }
   0xc   : > { %3977 = vmatpush3.bf16.msra.mxu0 (!%p138_p2), %v4498_v3  ;;  %3786 = vmatprep.subr.bf16.mxu1 (!%p138_p2), %v4499_v4  ;;  %v4514_v31 = vld [vmem:[%s5280_s1 + $0x8] sm:$0xff] (!%p138_p2)   ;;  %v4517_v36 = vld [vmem:[%s5280_s1 + $0x10] sm:$0xff] (!%p138_p2)   ;;  %v4520_v41 = vld [vmem:[%s5280_s1 + $0x18] sm:$0xff] (!%p138_p2)  }
   0xd   : > { %s5284_s13 = smov (!%p161_p3, %s3155_s13), 1  ;;  %3978 = vmatprep.subr.bf16.mxu0 %v4500_v5  ;;  %v4518_v44 = vld [vmem:[%s5280_s1 + $0x160] sm:$0xff]   ;;  %v4519_v50 = vld [vmem:[%s5280_s1 + $0x168] sm:$0xff]   ;;  %v4521_v54 = vld [vmem:[%s5280_s1 + $0x170] sm:$0xff]  }
   0xe   : > { %s4486_s30 = smul.u32 432, %s5284_s13  ;;  %v4523_v47 = vld [vmem:[%s5280_s1 + $0x20] sm:$0xff]   ;;  %v4525_v51 = vld [vmem:[%s5280_s1 + $0x28] sm:$0xff]   ;;  %v4527_v57 = vld [vmem:[%s5280_s1 + $0x30] sm:$0xff]   ;;  %s3565_s7 = sshll.u32 %s5284_s13, 6 }
   0xf   : > { %3787 = vmatpush3.bf16.msra.mxu1 %v4499_v4  ;;  %v4522_v60 = vld [vmem:[%s5280_s1 + $0x178] sm:$0xff]   ;;  %v4524_v4 = vld [vmem:[%s5280_s1 + $0x180] sm:$0xff]   ;;  %s5237_s13 = scalar_lea.vmem %s5282_s3, %s3565_s7 }
  0x10   : > { %3979 = vmatpush3.bf16.msra.mxu0 %v4500_v5  ;;  %3788 = vmatprep.subr.bf16.mxu1 %v4501_v6  ;;  %s4647_s10 = scalar_lea.vmem %s5279_s0, %s4486_s30  ;;  %v4529_v0 = vld [vmem:[%s5280_s1 + $0x38] sm:$0xff]  }
  0x11   : > { %3980 = vmatprep.subr.bf16.mxu0 %v4502_v7  ;;  %v236_v12 = vld [vmem:[%s4647_s10 + $0x1] sm:$0xff]  ;;  %v237_v13 = vld [vmem:[%s4647_s10 + $0x9] sm:$0xff]  ;;  %v3275_v14 = vld [vmem:[%s4647_s10 + $0x19] sm:$0xff] }
  0x12   : > { %v268_v15 = vpack.c.bf16 %v237_v13, %v236_v12  ;;  %v3276_v16 = vld [vmem:[%s4647_s10 + $0x21] sm:$0xff]  ;;  %v3277_v23 = vld [vmem:[%s4647_s10 + $0x31] sm:$0xff]  ;;  %v3278_v24 = vld [vmem:[%s4647_s10 + $0x39] sm:$0xff] }
  0x13   : > { %3789 = vmatpush3.bf16.msra.mxu1 %v4501_v6  ;;  %v1364_v17 = vpack.c.bf16 %v3276_v16, %v3275_v14  ;;  %v3279_v26 = vld [vmem:[%s4647_s10 + $0x49] sm:$0xff]  ;;  %v3280_v27 = vld [vmem:[%s4647_s10 + $0x51] sm:$0xff]  ;;  %v1365_v28 = vpack.c.bf16 %v3278_v24, %v3277_v23  ;;  %v3281_v32 = vld [vmem:[%s4647_s10 + $0x61] sm:$0xff] }
  0x14   : > { %3981 = vmatpush3.bf16.msra.mxu0 %v4502_v7  ;;  %3790 = vmatprep.subr.bf16.mxu1 %v4503_v8  ;;  %v1366_v30 = vpack.c.bf16 %v3280_v27, %v3279_v26  ;;  %v3282_v33 = vld [vmem:[%s4647_s10 + $0x69] sm:$0xff]  ;;  %v3283_v35 = vld [vmem:[%s4647_s10 + $0x79] sm:$0xff]  ;;  %v3284_v37 = vld [vmem:[%s4647_s10 + $0x81] sm:$0xff] }
  0x15   : > { %3982 = vmatprep.subr.bf16.mxu0 %v4504_v9  ;;  %3798 = vmatprep.mubr.bf16.mxu1 %v268_v15  ;;  %v1367_v38 = vpack.c.bf16 %v3282_v33, %v3281_v32  ;;  %v1368_v39 = vpack.c.bf16 %v3284_v37, %v3283_v35  ;;  %v3285_v42 = vld [vmem:[%s4647_s10 + $0x91] sm:$0xff]  ;;  %v3286_v43 = vld [vmem:[%s4647_s10 + $0x99] sm:$0xff]  ;;  %v3287_v45 = vld [vmem:[%s4647_s10 + $0xa9] sm:$0xff] }
  0x16   : > { %3990 = vmatprep.mubr.bf16.mxu0 %v1364_v17  ;;  %v3288_v46 = vld [vmem:[%s4647_s10 + $0xb1] sm:$0xff]  ;;  %v1369_v48 = vpack.c.bf16 %v3286_v43, %v3285_v42  ;;  %v3289_v52 = vld [vmem:[%s4647_s10 + $0xc1] sm:$0xff]  ;;  %v3290_v53 = vld [vmem:[%s4647_s10 + $0xc9] sm:$0xff] }
  0x17   : > { %3791 = vmatpush3.bf16.msra.mxu1 %v4503_v8  ;;  %v4713_v49 = vpack.c.bf16 %v3288_v46, %v3287_v45  ;;  %v3331_v55 = vld [vmem:[%s4647_s10 + $0x1a] sm:$0xff]  ;;  %v3332_v56 = vld [vmem:[%s4647_s10 + $0x22] sm:$0xff]  ;;  %v1371_v58 = vpack.c.bf16 %v3290_v53, %v3289_v52  ;;  %v3333_v63 = vld [vmem:[%s4647_s10 + $0x32] sm:$0xff] }
  0x18   : > { %3983 = vmatpush3.bf16.msra.mxu0 %v4504_v9  ;;  %3792 = vmatprep.subr.bf16.mxu1 %v4505_v10  ;;  %v4732_v59 = vpack.c.bf16 %v3332_v56, %v3331_v55  ;;  %v254_v61 = vld [vmem:[%s4647_s10 + $0xd9] sm:$0xff]  ;;  %v255_v62 = vld [vmem:[%s4647_s10 + $0xe1] sm:$0xff]  ;;  %v256_v2 = vld [vmem:[%s4647_s10 + $0xf1] sm:$0xff] }
  0x19   : > { %3984 = vmatprep.subr.bf16.mxu0 %v4506_v11  ;;  %v3334_v1 = vld [vmem:[%s4647_s10 + $0x3a] sm:$0xff]  ;;  %v3335_v5 = vld [vmem:[%s4647_s10 + $0x4a] sm:$0xff]  ;;  %v3336_v6 = vld [vmem:[%s4647_s10 + $0x52] sm:$0xff]  ;;  %v4753_v7 = vpack.c.bf16 %v255_v62, %v254_v61 }
  0x1a   : > { %v257_v3 = vld [vmem:[%s4647_s10 + $0xf9] sm:$0xff]  ;;  %v4760_v9 = vpack.c.bf16 %v3334_v1, %v3333_v63  ;;  %v4526_v12 = vld [vmem:[%s5280_s1 + $0x188] sm:$0xff]   ;;  %v259_v14 = vld [vmem:[%s4647_s10 + $0x111] sm:$0xff] }
  0x1b   : > { %3793 = vmatpush3.bf16.msra.mxu1 %v4505_v10  ;;  %v4758_v8 = vld [vmem:[%s5280_s1 + $0x80] sm:$0xff]   ;;  %v4762_v10 = vpack.c.bf16 %v257_v3, %v256_v2  ;;  %v258_v13 = vld [vmem:[%s4647_s10 + $0x109] sm:$0xff]  ;;  %v4530_v27 = vld [vmem:[%s5280_s1 + $0x198] sm:$0xff]  }
  0x1c   : > { %3985 = vmatpush3.bf16.msra.mxu0 %v4506_v11  ;;  %3794 = vmatprep.subr.bf16.mxu1 %v4507_v18  ;;  %v4764_v11 = vpack.c.bf16 %v3336_v6, %v3335_v5  ;;  %v3337_v15 = vld [vmem:[%s4647_s10 + $0x62] sm:$0xff]  ;;  %v3338_v16 = vld [vmem:[%s4647_s10 + $0x6a] sm:$0xff]  ;;  %v262_v26 = vld [vmem:[%s4647_s10 + $0x139] sm:$0xff] }
  0x1d   : > { %3986 = vmatprep.subr.bf16.mxu0 %v4508_v19  ;;  %v4787_v23 = vpack.c.bf16 %v3338_v16, %v3337_v15  ;;  %v265_v32 = vld [vmem:[%s4647_s10 + $0x159] sm:$0xff]  ;;  %v3343_v33 = vld [vmem:[%s4647_s10 + $0xaa] sm:$0xff]  ;;  %v3345_v43 = vld [vmem:[%s4647_s10 + $0xc2] sm:$0xff] }
  0x1e   : > { %v4532_v35 = vld [vmem:[%s5280_s1 + $0x1a0] sm:$0xff]   ;;  %v4534_v42 = vld [vmem:[%s5280_s1 + $0x1a8] sm:$0xff]   ;;  %v174_v55 = vld [vmem:[%s4647_s10 + $0x18] sm:$0xff] }
  0x1f   : > { %3795 = vmatpush3.bf16.msra.mxu1 %v4507_v18  ;;  %v261_v18 = vld [vmem:[%s4647_s10 + $0x129] sm:$0xff]  ;;  %v172_v45 = vld [vmem:[%s4647_s10] sm:$0xff]  ;;  %v177_v62 = vld [vmem:[%s4647_s10 + $0x38] sm:$0xff] }
  0x20   : > { %3987 = vmatpush3.bf16.msra.mxu0 %v4508_v19  ;;  %3796 = vmatprep.subr.bf16.mxu1 %v4509_v20  ;;  %v3339_v19 = vld [vmem:[%s4647_s10 + $0x7a] sm:$0xff]  ;;  %v173_v46 = vld [vmem:[%s4647_s10 + $0x8] sm:$0xff]  ;;  %v176_v61 = vld [vmem:[%s4647_s10 + $0x30] sm:$0xff] }
  0x21   : > { %3988 = vmatprep.subr.bf16.mxu0 %v4510_v21  ;;  %v204_v53 = vpack.c.bf16 %v173_v46, %v172_v45  ;;  %v175_v56 = vld [vmem:[%s4647_s10 + $0x20] sm:$0xff]  ;;  %v3351_v63 = vld [vmem:[%s4647_s10 + $0x10a] sm:$0xff] }
  0x22   : > { %v4860_v1 = vld [vmem:[%s5280_s1 + $0x1c0] sm:$0xff]   ;;  %v4862_v2 = vpack.c.bf16 %v175_v56, %v174_v55  ;;  %v178_v6 = vld [vmem:[%s4647_s10 + $0x48] sm:$0xff] }
  0x23   : > { %3797 = vmatpush3.bf16.msra.mxu1 %v4509_v20  ;;  %v3340_v20 = vld [vmem:[%s4647_s10 + $0x82] sm:$0xff]  ;;  %v3354_v15 = vld [vmem:[%s4647_s10 + $0x12a] sm:$0xff] }
  0x24   : > { %3989 = vmatpush3.bf16.msra.mxu0 %v4510_v21  ;;  %3830 = vmatprep.subr.bf16.mxu1 %v4511_v22  ;;  %v4528_v21 = vld [vmem:[%s5280_s1 + $0x190] sm:$0xff]   ;;  %v180_v16 = vld [vmem:[%s4647_s10 + $0x60] sm:$0xff]  ;;  %v4541_v46 = vld [vmem:[%s5280_s1 + $0xa8] sm:$0xff]  }
  0x25   : > { %4022 = vmatprep.subr.bf16.mxu0 %v4512_v25  ;;  %v188_v55 = vld [vmem:[%s4647_s10 + $0xc0] sm:$0xff]  ;;  %v189_v56 = vld [vmem:[%s4647_s10 + $0xc8] sm:$0xff] }
  0x26   : > { %3799 = vmatmul.mubr.bf16.vlgmr.msra.gmra.mrb[0].mxu1 %v1364_v17  ;;  %v260_v17 = vld [vmem:[%s4647_s10 + $0x121] sm:$0xff] }
  0x27   : > { %3991 = vmatmul.mubr.bf16.vlgmr.msra.gmra.mrb[0].mxu0 %v1365_v28  ;;  %3831 = vmatpush3.bf16.msra.mxu1 %v4511_v22  ;;  %v4785_v22 = vpack.c.bf16 %v259_v14, %v258_v13  ;;  %v4789_v24 = vpack.c.bf16 %v261_v18, %v260_v17  ;;  %v4533_v13 = vld [vmem:[%s5280_s1 + $0x88] sm:$0xff]   ;;  %v3355_v18 = vld [vmem:[%s4647_s10 + $0x13a] sm:$0xff] }
  0x28   : > { %4023 = vmatpush3.bf16.msra.mxu0 %v4512_v25  ;;  %3802 = vmatprep.mubr.bf16.mxu1 %v1365_v28  ;;  %v4791_v25 = vpack.c.bf16 %v3340_v20, %v3339_v19  ;;  %v263_v28 = vld [vmem:[%s4647_s10 + $0x141] sm:$0xff]  ;;  %v4535_v19 = vld [vmem:[%s5280_s1 + $0x90] sm:$0xff]  }
  0x29   : > { %4024 = vmatprep.subr.bf16.mxu0 %v4513_v29  ;;  %3994 = vmatprep.mubr.bf16.mxu0 %v1366_v30  ;;  %v3353_v14 = vld [vmem:[%s4647_s10 + $0x122] sm:$0xff] }
  0x2a   : > { %3832 = vmatprep.subr.bf16.mxu1 %v4514_v31  ;;  %v181_v17 = vld [vmem:[%s4647_s10 + $0x68] sm:$0xff] }
  0x2b   : > { %3833 = vmatpush3.bf16.msra.mxu1 %v4514_v31  ;;  %v264_v31 = vld [vmem:[%s4647_s10 + $0x151] sm:$0xff]  ;;  %v3356_v20 = vld [vmem:[%s4647_s10 + $0x142] sm:$0xff] }
  0x2c   : > { %4025 = vmatpush3.bf16.msra.mxu0 %v4513_v29  ;;  %3834 = vmatprep.subr.bf16.mxu1 %v4517_v36  ;;  %v3341_v29 = vld [vmem:[%s4647_s10 + $0x92] sm:$0xff] }
  0x2d   : > { %4026 = vmatprep.subr.bf16.mxu0 %v4515_v34 }
  0x2e   : > { %3803 = vmatmul.mubr.bf16.gmra.mrb[4].mxu1 %v1366_v30  ;;  %v3342_v30 = vld [vmem:[%s4647_s10 + $0x9a] sm:$0xff] }
  0x2f   : > { %3995 = vmatmul.mubr.bf16.gmra.mrb[4].mxu0 %v1367_v38  ;;  %3806 = vmatprep.mubr.bf16.mxu1 %v1367_v38  ;;  %v4813_v37 = vpack.c.bf16 %v3342_v30, %v3341_v29  ;;  %v4815_v38 = vpack.c.bf16 %v265_v32, %v264_v31  ;;  %v183_v29 = vld [vmem:[%s4647_s10 + $0x80] sm:$0xff]  ;;  %v4537_v30 = vld [vmem:[%s5280_s1 + $0x98] sm:$0xff]  }
  0x30   : > { %4027 = vmatpush3.bf16.msra.mxu0 %v4515_v34  ;;  %3998 = vmatprep.mubr.bf16.mxu0 %v1368_v39  ;;  %v3344_v34 = vld [vmem:[%s4647_s10 + $0xb2] sm:$0xff]  ;;  %v3358_v32 = vld [vmem:[%s4647_s10 + $0x15a] sm:$0xff] }
  0x31   : > { %4028 = vmatprep.subr.bf16.mxu0 %v4516_v40  ;;  %3835 = vmatpush3.bf16.msra.mxu1 %v4517_v36  ;;  %v4811_v36 = vpack.c.bf16 %v263_v28, %v262_v26  ;;  %v4894_v26 = vpack.c.bf16 %v181_v17, %v180_v16  ;;  %v182_v28 = vld [vmem:[%s4647_s10 + $0x78] sm:$0xff]  ;;  %v4542_v16 = vld [vmem:[%s5280_s1 + $0x1c8] sm:$0xff]  }
  0x32   : > { %3836 = vmatprep.subr.bf16.mxu1 %v4520_v41  ;;  %v3357_v31 = vld [vmem:[%s4647_s10 + $0x152] sm:$0xff]  ;;  %v194_v17 = vld [vmem:[%s4647_s10 + $0x108] sm:$0xff] }
  0x34   : > { %4029 = vmatpush3.bf16.msra.mxu0 %v4516_v40  ;;  %v266_v40 = vld [vmem:[%s4647_s10 + $0x169] sm:$0xff] }
  0x35   : > { %4030 = vmatprep.subr.bf16.mxu0 %v4518_v44  ;;  %3837 = vmatpush3.bf16.msra.mxu1 %v4520_v41  ;;  %v267_v41 = vld [vmem:[%s4647_s10 + $0x171] sm:$0xff] }
  0x36   : > { %3807 = vmatmul.mubr.bf16.gmra.mrb[8].mxu1 %v1368_v39  ;;  %3838 = vmatprep.subr.bf16.mxu1 %v4523_v47  ;;  %v4817_v39 = vpack.c.bf16 %v3344_v34, %v3343_v33  ;;  %v184_v33 = vld [vmem:[%s4647_s10 + $0x90] sm:$0xff]  ;;  %v185_v34 = vld [vmem:[%s4647_s10 + $0x98] sm:$0xff] }
  0x37   : > { %3999 = vmatmul.mubr.bf16.gmra.mrb[8].mxu0 %v1369_v48  ;;  %3810 = vmatprep.mubr.bf16.mxu1 %v1369_v48  ;;  %v3348_v48 = vld [vmem:[%s4647_s10 + $0xe2] sm:$0xff] }
  0x38   : > { %4031 = vmatpush3.bf16.msra.mxu0 %v4518_v44  ;;  %4002 = vmatprep.mubr.bf16.mxu0 %v4713_v49  ;;  %v3346_v44 = vld [vmem:[%s4647_s10 + $0xca] sm:$0xff] }
  0x39   : > { %4032 = vmatprep.subr.bf16.mxu0 %v4519_v50  ;;  %3839 = vmatpush3.bf16.msra.mxu1 %v4523_v47  ;;  %v3347_v47 = vld [vmem:[%s4647_s10 + $0xda] sm:$0xff]  ;;  %v4839_v52 = vpack.c.bf16 %v3346_v44, %v3345_v43  ;;  %v4918_v43 = vpack.c.bf16 %v3358_v32, %v3357_v31  ;;  %v4920_v44 = vpack.c.bf16 %v185_v34, %v184_v33  ;;  %v200_v33 = vld [vmem:[%s4647_s10 + $0x150] sm:$0xff] }
  0x3a   : > { %3840 = vmatprep.subr.bf16.mxu1 %v4525_v51  ;;  %v198_v31 = vld [vmem:[%s4647_s10 + $0x138] sm:$0xff]  ;;  %v199_v32 = vld [vmem:[%s4647_s10 + $0x140] sm:$0xff] }
  0x3b   : > { %v201_v34 = vld [vmem:[%s4647_s10 + $0x158] sm:$0xff] }
  0x3c   : > { %4033 = vmatpush3.bf16.msra.mxu0 %v4519_v50  ;;  %v4536_v50 = vld [vmem:[%s5280_s1 + $0x1b0] sm:$0xff]  }
  0x3d   : > { %4034 = vmatprep.subr.bf16.mxu0 %v4521_v54  ;;  %3841 = vmatpush3.bf16.msra.mxu1 %v4525_v51  ;;  %v4837_v51 = vpack.c.bf16 %v267_v41, %v266_v40  ;;  %v3360_v40 = vld [vmem:[%s4647_s10 + $0x172] sm:$0xff]  ;;  %v4539_v41 = vld [vmem:[%s5280_s1 + $0xa0] sm:$0xff]  }
  0x3e   : > { %3811 = vmatmul.mubr.bf16.gmra.mrb[12].mxu1 %v4713_v49  ;;  %3842 = vmatprep.subr.bf16.mxu1 %v4527_v57 }
  0x3f   : > { %4003 = vmatmul.mubr.bf16.gmra.mrb[12].mxu0 %v1371_v58  ;;  %3814 = vmatprep.mubr.bf16.mxu1 %v1371_v58  ;;  %v3349_v58 = vld [vmem:[%s4647_s10 + $0xf2] sm:$0xff] }
  0x40   : > { %4035 = vmatpush3.bf16.msra.mxu0 %v4521_v54  ;;  %4038 = vmatprep.mubr.bf16.mxu0 %v4732_v59  ;;  %v4841_v54 = vpack.c.bf16 %v3348_v48, %v3347_v47  ;;  %v186_v47 = vld [vmem:[%s4647_s10 + $0xa8] sm:$0xff]  ;;  %v187_v48 = vld [vmem:[%s4647_s10 + $0xb0] sm:$0xff] }
  0x41   : > { %4036 = vmatprep.subr.bf16.mxu0 %v4522_v60  ;;  %3843 = vmatpush3.bf16.msra.mxu1 %v4527_v57  ;;  %v4538_v57 = vld [vmem:[%s5280_s1 + $0x1b8] sm:$0xff]  }
  0x42   : > { %3844 = vmatprep.subr.bf16.mxu1 %v4529_v0 }
  0x44   : > { %4037 = vmatpush3.bf16.msra.mxu0 %v4522_v60  ;;  %v3350_v60 = vld [vmem:[%s4647_s10 + $0xfa] sm:$0xff] }
  0x45   : > { %4070 = vmatprep.subr.bf16.mxu0 %v4524_v4  ;;  %3845 = vmatpush3.bf16.msra.mxu1 %v4529_v0  ;;  %v3352_v0 = vld [vmem:[%s4647_s10 + $0x112] sm:$0xff]  ;;  %v4864_v3 = vpack.c.bf16 %v3350_v60, %v3349_v58  ;;  %v4940_v58 = vpack.c.bf16 %v187_v48, %v186_v47  ;;  %v202_v47 = vld [vmem:[%s4647_s10 + $0x168] sm:$0xff] }
  0x46   : > { %3815 = vmatmul.mubr.bf16.gmra.mrb[16].mxu1 %v4753_v7  ;;  %3878 = vmatprep.subr.bf16.mxu1 %v4758_v8  ;;  %v4868_v5 = vpack.c.bf16 %v3352_v0, %v3351_v63  ;;  %v190_v63 = vld [vmem:[%s4647_s10 + $0xd8] sm:$0xff]  ;;  %v191_v0 = vld [vmem:[%s4647_s10 + $0xe0] sm:$0xff]  ;;  %v203_v48 = vld [vmem:[%s4647_s10 + $0x170] sm:$0xff] }
  0x47   : > { %4039 = vmatmul.mubr.bf16.vlgmr.msra.gmra.mrb[0].mxu0 %v4760_v9  ;;  %3818 = vmatprep.mubr.bf16.mxu1 %v4762_v10 }
  0x48   : > { %4071 = vmatpush3.bf16.msra.mxu0 %v4524_v4  ;;  %4042 = vmatprep.mubr.bf16.mxu0 %v4764_v11  ;;  %v4866_v4 = vpack.c.bf16 %v177_v62, %v176_v61  ;;  %v4942_v61 = vpack.c.bf16 %v189_v56, %v188_v55  ;;  %v4545_v62 = vld [vmem:[%s5280_s1 + $0xb8] sm:$0xff]   ;;  %v4552_v55 = vld [vmem:[%s5280_s1 + $0x1f0] sm:$0xff]   ;;  %v5015_v56 = vpack.c.bf16 %v203_v48, %v202_v47 }
  0x49   : > { %4072 = vmatprep.subr.bf16.mxu0 %v4526_v12  ;;  %v3451_v47 = vld [vmem:[%s4647_s10 + $0x91] sm:$0xff]  ;;  %v3452_v48 = vld [vmem:[%s4647_s10 + $0x99] sm:$0xff] }
  0x4c   : > { %4073 = vmatpush3.bf16.msra.mxu0 %v4526_v12  ;;  %v179_v12 = vld [vmem:[%s4647_s10 + $0x50] sm:$0xff] }
  0x4d   : > { %4074 = vmatprep.subr.bf16.mxu0 %v4528_v21 }
  0x4e   : > { %3819 = vmatmul.mubr.bf16.gmra.mrb[20].mxu1 %v4785_v22 }
  0x4f   : > { %4043 = vmatmul.mubr.bf16.gmra.mrb[4].mxu0 %v4787_v23  ;;  %3822 = vmatprep.mubr.bf16.mxu1 %v4789_v24 }
  0x50   : > { %4046 = vmatprep.mubr.bf16.mxu0 %v4791_v25  ;;  %4075 = vmatpush3.bf16.msra.mxu0 %v4528_v21  ;;  %v4890_v21 = vpack.c.bf16 %v179_v12, %v178_v6  ;;  %v192_v6 = vld [vmem:[%s4647_s10 + $0xf0] sm:$0xff]  ;;  %v193_v12 = vld [vmem:[%s4647_s10 + $0xf8] sm:$0xff] }
  0x51   : > { %4076 = vmatprep.subr.bf16.mxu0 %v4530_v27 }
  0x54   : > { %4077 = vmatpush3.bf16.msra.mxu0 %v4530_v27  ;;  %v4896_v27 = vpack.c.bf16 %v3356_v20, %v3355_v18  ;;  %v195_v18 = vld [vmem:[%s4647_s10 + $0x110] sm:$0xff]  ;;  %v197_v20 = vld [vmem:[%s4647_s10 + $0x128] sm:$0xff] }
  0x55   : > { %4078 = vmatprep.subr.bf16.mxu0 %v4532_v35 }
  0x56   : > { %3823 = vmatmul.mubr.bf16.gmra.mrb[24].mxu1 %v4811_v36 }
  0x57   : > { %4047 = vmatmul.mubr.bf16.gmra.mrb[8].mxu0 %v4813_v37  ;;  %3826 = vmatprep.mubr.bf16.mxu1 %v4815_v38 }
  0x58   : > { %4050 = vmatprep.mubr.bf16.mxu0 %v4817_v39  ;;  %4079 = vmatpush3.bf16.msra.mxu0 %v4532_v35  ;;  %v3359_v35 = vld [vmem:[%s4647_s10 + $0x16a] sm:$0xff] }
  0x59   : > { %4080 = vmatprep.subr.bf16.mxu0 %v4534_v42  ;;  %v4922_v45 = vpack.c.bf16 %v3360_v40, %v3359_v35  ;;  %v4548_v35 = vld [vmem:[%s5280_s1 + $0x1e0] sm:$0xff]   ;;  %v4997_v40 = vpack.c.bf16 %v199_v32, %v198_v31  ;;  %v3448_v32 = vld [vmem:[%s4647_s10 + $0x69] sm:$0xff] }
  0x5a   : > { %v3447_v31 = vld [vmem:[%s4647_s10 + $0x61] sm:$0xff] }
  0x5c   : > { %4081 = vmatpush3.bf16.msra.mxu0 %v4534_v42  ;;  %v4916_v42 = vpack.c.bf16 %v183_v29, %v182_v28  ;;  %v4544_v28 = vld [vmem:[%s5280_s1 + $0x1d0] sm:$0xff]   ;;  %v4979_v29 = vpack.c.bf16 %v195_v18, %v194_v17  ;;  %v3444_v18 = vld [vmem:[%s4647_s10 + $0x39] sm:$0xff] }
  0x5d   : > { %4082 = vmatprep.subr.bf16.mxu0 %v4536_v50  ;;  %v3443_v17 = vld [vmem:[%s4647_s10 + $0x31] sm:$0xff] }
  0x5e   : > { %3827 = vmatmul.mubr.bf16.gmra.mrb[28].mxu1 %v4837_v51 }
  0x5f   : > { %4051 = vmatmul.mubr.bf16.gmra.mrb[12].mxu0 %v4839_v52  ;;  %3846 = vmatprep.mubr.bf16.mxu1 %v204_v53  ;;  %v3362_v53 = vld [vmem:[%s4647_s10 + $0x18a] sm:$0xff] }
  0x60   : > { %4054 = vmatprep.mubr.bf16.mxu0 %v4841_v54  ;;  %4083 = vmatpush3.bf16.msra.mxu0 %v4536_v50  ;;  %v3361_v50 = vld [vmem:[%s4647_s10 + $0x182] sm:$0xff] }
  0x61   : > { %4084 = vmatprep.subr.bf16.mxu0 %v4538_v57  ;;  %v1685_v60 = vpack.c.bf16 %v3362_v53, %v3361_v50  ;;  %v719_v50 = vld [vmem:[%s4647_s10 + $0x2] sm:$0xff]  ;;  %v720_v53 = vld [vmem:[%s4647_s10 + $0xa] sm:$0xff] }
  0x64   : > { %4085 = vmatpush3.bf16.msra.mxu0 %v4538_v57  ;;  %v4543_v57 = vld [vmem:[%s5280_s1 + $0xb0] sm:$0xff]  }
  0x65   : > { %4118 = vmatprep.subr.bf16.mxu0 %v4860_v1 }
  0x66   : > { %3847 = vmatmul.mubr.bf16.vlgmr.msra.gmra.mrb[0].mxu1 %v4862_v2 }
  0x67   : > { %4055 = vmatmul.mubr.bf16.gmra.mrb[16].mxu0 %v4864_v3  ;;  %3879 = vmatpush3.bf16.msra.mxu1 %v4758_v8  ;;  %v4892_v8 = vpack.c.bf16 %v3354_v15, %v3353_v14  ;;  %v4959_v14 = vpack.c.bf16 %v191_v0, %v190_v63  ;;  %v4961_v15 = vpack.c.bf16 %v193_v12, %v192_v6  ;;  %v4549_v63 = vld [vmem:[%s5280_s1 + $0xc8] sm:$0xff]   ;;  %v4551_v0 = vld [vmem:[%s5280_s1 + $0xd0] sm:$0xff]   ;;  %v4555_v12 = vld [vmem:[%s5280_s1 + $0xe0] sm:$0xff]  }
  0x68   : > { %3850 = vmatprep.mubr.bf16.mxu1 %v4866_v4  ;;  %4058 = vmatprep.mubr.bf16.mxu0 %v4868_v5  ;;  %v3416_v6 = vld [vmem:[%s4647_s10 + $0x188] sm:$0xff] }
  0x69   : > { %3880 = vmatprep.subr.bf16.mxu1 %v4533_v13 }
  0x6b   : > { %3881 = vmatpush3.bf16.msra.mxu1 %v4533_v13  ;;  %v4957_v13 = vld [vmem:[%s5280_s1 + $0xc0] sm:$0xff]  }
  0x6c   : > { %3882 = vmatprep.subr.bf16.mxu1 %v4535_v19 }
  0x6e   : > { %3851 = vmatmul.mubr.bf16.gmra.mrb[4].mxu1 %v4890_v21 }
  0x6f   : > { %4059 = vmatmul.mubr.bf16.gmra.mrb[20].mxu0 %v4892_v8  ;;  %3854 = vmatprep.mubr.bf16.mxu1 %v4894_v26 }
  0x70   : > { %4062 = vmatprep.mubr.bf16.mxu0 %v4896_v27  ;;  %3883 = vmatpush3.bf16.msra.mxu1 %v4535_v19  ;;  %v196_v19 = vld [vmem:[%s4647_s10 + $0x120] sm:$0xff] }
  0x71   : > { %3884 = vmatprep.subr.bf16.mxu1 %v4537_v30 }
  0x74   : > { %3885 = vmatpush3.bf16.msra.mxu1 %v4537_v30  ;;  %v4981_v30 = vpack.c.bf16 %v197_v20, %v196_v19  ;;  %v2283_v20 = vpack.c.bf16 %v3444_v18, %v3443_v17  ;;  %v3511_v17 = vld [vmem:[%s4647_s10 + $0xc2] sm:$0xff]  ;;  %v3512_v18 = vld [vmem:[%s4647_s10 + $0xca] sm:$0xff] }
  0x75   : > { %3886 = vmatprep.subr.bf16.mxu1 %v4539_v41 }
  0x76   : > { %3855 = vmatmul.mubr.bf16.gmra.mrb[8].mxu1 %v4916_v42 }
  0x77   : > { %4063 = vmatmul.mubr.bf16.gmra.mrb[24].mxu0 %v4918_v43  ;;  %3858 = vmatprep.mubr.bf16.mxu1 %v4920_v44 }
  0x78   : > { %4066 = vmatprep.mubr.bf16.mxu0 %v4922_v45  ;;  %3887 = vmatpush3.bf16.msra.mxu1 %v4539_v41  ;;  %v4999_v41 = vpack.c.bf16 %v201_v34, %v200_v33  ;;  %v2285_v34 = vpack.c.bf16 %v3448_v32, %v3447_v31 }
  0x79   : > { %3888 = vmatprep.subr.bf16.mxu1 %v4541_v46 }
  0x7c   : > { %3889 = vmatpush3.bf16.msra.mxu1 %v4541_v46  ;;  %v4550_v46 = vld [vmem:[%s5280_s1 + $0x1e8] sm:$0xff]  }
  0x7d   : > { %3890 = vmatprep.subr.bf16.mxu1 %v4543_v57 }
  0x7e   : > { %3859 = vmatmul.mubr.bf16.gmra.mrb[12].mxu1 %v4940_v58 }
  0x7f   : > { %4067 = vmatmul.mubr.bf16.gmra.mrb[28].mxu0 %v1685_v60  ;;  %3862 = vmatprep.mubr.bf16.mxu1 %v4942_v61  ;;  %v4554_v60 = vld [vmem:[%s5280_s1 + $0x1f8] sm:$0xff]  }
  0x80   : > { %4086 = vmatprep.mubr.bf16.mxu0 %v4866_v4  ;;  %3891 = vmatpush3.bf16.msra.mxu1 %v4543_v57  ;;  %v751_v57 = vpack.c.bf16 %v720_v53, %v719_v50  ;;  %v4560_v50 = vld [vmem:[%s5280_s1 + $0x210] sm:$0xff]  }
  0x81   : > { %3892 = vmatprep.subr.bf16.mxu1 %v4545_v62 }
  0x84   : > { %3893 = vmatpush3.bf16.msra.mxu1 %v4545_v62  ;;  %v4556_v62 = vld [vmem:[%s5280_s1 + $0x200] sm:$0xff]  }
  0x85   : > { %3926 = vmatprep.subr.bf16.mxu1 %v4957_v13 }
  0x86   : > { %3863 = vmatmul.mubr.bf16.gmra.mrb[16].mxu1 %v4959_v14 }
  0x87   : > { %4087 = vmatmul.mubr.bf16.vlgmr.msra.gmra.mrb[0].mxu0 %v4890_v21  ;;  %3866 = vmatprep.mubr.bf16.mxu1 %v4961_v15 }
  0x88   : > { %4119 = vmatpush3.bf16.msra.mxu0 %v4860_v1  ;;  %4090 = vmatprep.mubr.bf16.mxu0 %v4894_v26  ;;  %v4546_v1 = vld [vmem:[%s5280_s1 + $0x1d8] sm:$0xff]  }
  0x89   : > { %4120 = vmatprep.subr.bf16.mxu0 %v4542_v16 }
  0x8c   : > { %4121 = vmatpush3.bf16.msra.mxu0 %v4542_v16  ;;  %v3418_v16 = vld [vmem:[%s4647_s10 + $0x1a0] sm:$0xff] }
  0x8d   : > { %4122 = vmatprep.subr.bf16.mxu0 %v4544_v28 }
  0x8e   : > { %3867 = vmatmul.mubr.bf16.gmra.mrb[20].mxu1 %v4979_v29 }
  0x8f   : > { %4091 = vmatmul.mubr.bf16.gmra.mrb[4].mxu0 %v4916_v42  ;;  %3870 = vmatprep.mubr.bf16.mxu1 %v4981_v30 }
  0x90   : > { %4094 = vmatprep.mubr.bf16.mxu0 %v4920_v44  ;;  %4123 = vmatpush3.bf16.msra.mxu0 %v4544_v28  ;;  %v3445_v28 = vld [vmem:[%s4647_s10 + $0x49] sm:$0xff] }
  0x91   : > { %4124 = vmatprep.subr.bf16.mxu0 %v4546_v1 }
  0x94   : > { %4125 = vmatpush3.bf16.msra.mxu0 %v4546_v1  ;;  %v3446_v1 = vld [vmem:[%s4647_s10 + $0x51] sm:$0xff] }
  0x95   : > { %4126 = vmatprep.subr.bf16.mxu0 %v4548_v35  ;;  %v2284_v33 = vpack.c.bf16 %v3446_v1, %v3445_v28  ;;  %v3515_v28 = vld [vmem:[%s4647_s10 + $0xf2] sm:$0xff]  ;;  %v3516_v1 = vld [vmem:[%s4647_s10 + $0xfa] sm:$0xff] }
  0x96   : > { %3871 = vmatmul.mubr.bf16.gmra.mrb[24].mxu1 %v4997_v40  ;;  %v2597_v32 = vpack.c.bf16 %v3516_v1, %v3515_v28 }
  0x97   : > { %4095 = vmatmul.mubr.bf16.gmra.mrb[8].mxu0 %v4940_v58  ;;  %3874 = vmatprep.mubr.bf16.mxu1 %v4999_v41 }
  0x98   : > { %4098 = vmatprep.mubr.bf16.mxu0 %v4942_v61  ;;  %4127 = vmatpush3.bf16.msra.mxu0 %v4548_v35  ;;  %v3449_v35 = vld [vmem:[%s4647_s10 + $0x79] sm:$0xff] }
  0x99   : > { %4128 = vmatprep.subr.bf16.mxu0 %v4550_v46 }
  0x9c   : > { %4129 = vmatpush3.bf16.msra.mxu0 %v4550_v46  ;;  %v3450_v46 = vld [vmem:[%s4647_s10 + $0x81] sm:$0xff] }
  0x9d   : > { %4130 = vmatprep.subr.bf16.mxu0 %v4552_v55  ;;  %v2286_v53 = vpack.c.bf16 %v3450_v46, %v3449_v35  ;;  %v3296_v35 = vld [vmem:[%s4647_s10 + $0x111] sm:$0xff]  ;;  %v3519_v46 = vld [vmem:[%s4647_s10 + $0x122] sm:$0xff] }
  0x9e   : > { %3875 = vmatmul.mubr.bf16.gmra.mrb[28].mxu1 %v5015_v56 }
  0x9f   : > { %4099 = vmatmul.mubr.bf16.gmra.mrb[12].mxu0 %v4959_v14  ;;  %3894 = vmatprep.mubr.bf16.mxu1 %v751_v57  ;;  %v3456_v57 = vld [vmem:[%s4647_s10 + $0xc9] sm:$0xff] }
  0xa0   : > { %4102 = vmatprep.mubr.bf16.mxu0 %v4961_v15  ;;  %4131 = vmatpush3.bf16.msra.mxu0 %v4552_v55  ;;  %v2287_v55 = vpack.c.bf16 %v3452_v48, %v3451_v47  ;;  %v3520_v47 = vld [vmem:[%s4647_s10 + $0x12a] sm:$0xff] }
  0xa1   : > { %4132 = vmatprep.subr.bf16.mxu0 %v4554_v60 }
  0xa4   : > { %4133 = vmatpush3.bf16.msra.mxu0 %v4554_v60  ;;  %v4563_v60 = vld [vmem:[%s5280_s1 + $0x220] sm:$0xff]  }
  0xa5   : > { %4166 = vmatprep.subr.bf16.mxu0 %v4556_v62 }
  0xa6   : > { %3895 = vmatmul.mubr.bf16.vlgmr.msra.gmra.mrb[0].mxu1 %v4732_v59  ;;  %v4553_v59 = vld [vmem:[%s5280_s1 + $0xd8] sm:$0xff]  }
  0xa7   : > { %4103 = vmatmul.mubr.bf16.gmra.mrb[16].mxu0 %v4979_v29  ;;  %3927 = vmatpush3.bf16.msra.mxu1 %v4957_v13 }
  0xa8   : > { %3898 = vmatprep.mubr.bf16.mxu1 %v4760_v9  ;;  %4106 = vmatprep.mubr.bf16.mxu0 %v4981_v30  ;;  %v3415_v9 = vld [vmem:[%s4647_s10 + $0x180] sm:$0xff] }
  0xa9   : > { %3928 = vmatprep.subr.bf16.mxu1 %v4549_v63  ;;  %v5049_v13 = vpack.c.bf16 %v3416_v6, %v3415_v9  ;;  %v3506_v6 = vld [vmem:[%s4647_s10 + $0x82] sm:$0xff] }
  0xab   : > { %3929 = vmatpush3.bf16.msra.mxu1 %v4549_v63  ;;  %v4564_v63 = vld [vmem:[%s5280_s1 + $0x228] sm:$0xff]  }
  0xac   : > { %3930 = vmatprep.subr.bf16.mxu1 %v4551_v0 }
  0xae   : > { %3899 = vmatmul.mubr.bf16.gmra.mrb[4].mxu1 %v4764_v11  ;;  %v4557_v11 = vld [vmem:[%s5280_s1 + $0xe8] sm:$0xff]  }
  0xaf   : > { %4107 = vmatmul.mubr.bf16.gmra.mrb[20].mxu0 %v4997_v40  ;;  %3902 = vmatprep.mubr.bf16.mxu1 %v4787_v23  ;;  %v3417_v23 = vld [vmem:[%s4647_s10 + $0x198] sm:$0xff] }
  0xb0   : > { %4110 = vmatprep.mubr.bf16.mxu0 %v4999_v41  ;;  %3931 = vmatpush3.bf16.msra.mxu1 %v4551_v0  ;;  %v1992_v19 = vpack.c.bf16 %v3418_v16, %v3417_v23  ;;  %v3504_v0 = vld [vmem:[%s4647_s10 + $0x6a] sm:$0xff] }
  0xb1   : > { %3932 = vmatprep.subr.bf16.mxu1 %v4553_v59 }
  0xb4   : > { %3933 = vmatpush3.bf16.msra.mxu1 %v4553_v59  ;;  %v4574_v59 = vld [vmem:[%s5280_s1 + $0x138] sm:$0xff]  }
  0xb5   : > { %3934 = vmatprep.subr.bf16.mxu1 %v4555_v12 }
  0xb6   : > { %3903 = vmatmul.mubr.bf16.gmra.mrb[8].mxu1 %v4791_v25  ;;  %v4559_v25 = vld [vmem:[%s5280_s1 + $0xf0] sm:$0xff]  }
  0xb7   : > { %4111 = vmatmul.mubr.bf16.gmra.mrb[24].mxu0 %v5015_v56  ;;  %3906 = vmatprep.mubr.bf16.mxu1 %v4813_v37  ;;  %v4561_v37 = vld [vmem:[%s5280_s1 + $0xf8] sm:$0xff]  }
  0xb8   : > { %4114 = vmatprep.mubr.bf16.mxu0 %v5049_v13  ;;  %3935 = vmatpush3.bf16.msra.mxu1 %v4555_v12  ;;  %v3507_v12 = vld [vmem:[%s4647_s10 + $0x92] sm:$0xff] }
  0xb9   : > { %3936 = vmatprep.subr.bf16.mxu1 %v4557_v11 }
  0xbc   : > { %3937 = vmatpush3.bf16.msra.mxu1 %v4557_v11  ;;  %v3508_v11 = vld [vmem:[%s4647_s10 + $0x9a] sm:$0xff] }
  0xbd   : > { %3938 = vmatprep.subr.bf16.mxu1 %v4559_v25  ;;  %v2593_v16 = vpack.c.bf16 %v3508_v11, %v3507_v12 }
  0xbe   : > { %3907 = vmatmul.mubr.bf16.gmra.mrb[12].mxu1 %v4817_v39  ;;  %v4558_v39 = vld [vmem:[%s5280_s1 + $0x208] sm:$0xff]  }
  0xbf   : > { %4115 = vmatmul.mubr.bf16.gmra.mrb[28].mxu0 %v1992_v19  ;;  %3910 = vmatprep.mubr.bf16.mxu1 %v4839_v52  ;;  %v4567_v52 = vld [vmem:[%s5280_s1 + $0x100] sm:$0xff]   ;;  %v2595_v19 = vpack.c.bf16 %v3512_v18, %v3511_v17 }
  0xc0   : > { %4134 = vmatprep.mubr.bf16.mxu0 %v2283_v20  ;;  %3939 = vmatpush3.bf16.msra.mxu1 %v4559_v25  ;;  %v3291_v20 = vld [vmem:[%s4647_s10 + $0xd9] sm:$0xff] }
  0xc1   : > { %3940 = vmatprep.subr.bf16.mxu1 %v4561_v37 }
  0xc4   : > { %3941 = vmatpush3.bf16.msra.mxu1 %v4561_v37  ;;  %v3292_v37 = vld [vmem:[%s4647_s10 + $0xe1] sm:$0xff] }
  0xc5   : > { %4214 = vmatprep.subr.bf16.mxu1 %v4567_v52 }
  0xc6   : > { %3911 = vmatmul.mubr.bf16.gmra.mrb[16].mxu1 %v4841_v54  ;;  %v4562_v54 = vld [vmem:[%s5280_s1 + $0x218] sm:$0xff]  }
  0xc7   : > { %4135 = vmatmul.mubr.bf16.vlgmr.msra.gmra.mrb[0].mxu0 %v2284_v33  ;;  %3914 = vmatprep.mubr.bf16.mxu1 %v4864_v3  ;;  %v3455_v3 = vld [vmem:[%s4647_s10 + $0xc1] sm:$0xff]  ;;  %v3294_v33 = vld [vmem:[%s4647_s10 + $0xf9] sm:$0xff] }
  0xc8   : > { %4167 = vmatpush3.bf16.msra.mxu0 %v4556_v62  ;;  %4138 = vmatprep.mubr.bf16.mxu0 %v2285_v34  ;;  %v2289_v62 = vpack.c.bf16 %v3456_v57, %v3455_v3  ;;  %v3517_v34 = vld [vmem:[%s4647_s10 + $0x10a] sm:$0xff]  ;;  %v3521_v3 = vld [vmem:[%s4647_s10 + $0x13a] sm:$0xff]  ;;  %v3522_v57 = vld [vmem:[%s4647_s10 + $0x142] sm:$0xff] }
  0xc9   : > { %4168 = vmatprep.subr.bf16.mxu0 %v4558_v39 }
  0xcc   : > { %4169 = vmatpush3.bf16.msra.mxu0 %v4558_v39  ;;  %v3518_v39 = vld [vmem:[%s4647_s10 + $0x112] sm:$0xff] }
  0xcd   : > { %4170 = vmatprep.subr.bf16.mxu0 %v4560_v50  ;;  %v2598_v48 = vpack.c.bf16 %v3518_v39, %v3517_v34 }
  0xce   : > { %3915 = vmatmul.mubr.bf16.gmra.mrb[20].mxu1 %v4868_v5  ;;  %v4565_v5 = vld [vmem:[%s5280_s1 + $0x230] sm:$0xff]  }
  0xcf   : > { %4139 = vmatmul.mubr.bf16.gmra.mrb[4].mxu0 %v2286_v53  ;;  %3918 = vmatprep.mubr.bf16.mxu1 %v4892_v8  ;;  %v4566_v8 = vld [vmem:[%s5280_s1 + $0x238] sm:$0xff]   ;;  %v2599_v53 = vpack.c.bf16 %v3520_v47, %v3519_v46 }
  0xd0   : > { %4142 = vmatprep.mubr.bf16.mxu0 %v2287_v55  ;;  %4171 = vmatpush3.bf16.msra.mxu0 %v4560_v50  ;;  %v3297_v55 = vld [vmem:[%s4647_s10 + $0x121] sm:$0xff] }
  0xd1   : > { %4172 = vmatprep.subr.bf16.mxu0 %v4562_v54 }
  0xd4   : > { %4173 = vmatpush3.bf16.msra.mxu0 %v4562_v54  ;;  %v3298_v54 = vld [vmem:[%s4647_s10 + $0x129] sm:$0xff] }
  0xd5   : > { %4174 = vmatprep.subr.bf16.mxu0 %v4563_v60 }
  0xd6   : > { %3919 = vmatmul.mubr.bf16.gmra.mrb[24].mxu1 %v4896_v27  ;;  %v4572_v27 = vld [vmem:[%s5280_s1 + $0x128] sm:$0xff]  }
  0xd7   : > { %4143 = vmatmul.mubr.bf16.gmra.mrb[8].mxu0 %v4713_v49  ;;  %3922 = vmatprep.mubr.bf16.mxu1 %v4918_v43  ;;  %v4568_v49 = vld [vmem:[%s5280_s1 + $0x108] sm:$0xff]   ;;  %v4573_v43 = vld [vmem:[%s5280_s1 + $0x130] sm:$0xff]  }
  0xd8   : > { %4146 = vmatprep.mubr.bf16.mxu0 %v2289_v62  ;;  %4175 = vmatpush3.bf16.msra.mxu0 %v4563_v60  ;;  %v3299_v60 = vld [vmem:[%s4647_s10 + $0x139] sm:$0xff]  ;;  %v3300_v62 = vld [vmem:[%s4647_s10 + $0x141] sm:$0xff] }
  0xd9   : > { %4176 = vmatprep.subr.bf16.mxu0 %v4564_v63 }
  0xdc   : > { %4177 = vmatpush3.bf16.msra.mxu0 %v4564_v63  ;;  %v3523_v63 = vld [vmem:[%s4647_s10 + $0x152] sm:$0xff] }
  0xdd   : > { %4178 = vmatprep.subr.bf16.mxu0 %v4565_v5 }
  0xde   : > { %3923 = vmatmul.mubr.bf16.gmra.mrb[28].mxu1 %v4922_v45  ;;  %v3502_v45 = vld [vmem:[%s4647_s10 + $0x52] sm:$0xff] }
  0xdf   : > { %4147 = vmatmul.mubr.bf16.gmra.mrb[12].mxu0 %v4753_v7  ;;  %3942 = vmatprep.mubr.bf16.mxu1 %v4862_v2  ;;  %v4569_v7 = vld [vmem:[%s5280_s1 + $0x110] sm:$0xff]  }
  0xe0   : > { %4150 = vmatprep.mubr.bf16.mxu0 %v4762_v10  ;;  %4179 = vmatpush3.bf16.msra.mxu0 %v4565_v5  ;;  %v3471_v10 = vld [vmem:[%s4647_s10 + $0x181] sm:$0xff] }
  0xe1   : > { %4180 = vmatprep.subr.bf16.mxu0 %v4566_v8  ;;  %v3524_v5 = vld [vmem:[%s4647_s10 + $0x15a] sm:$0xff] }
  0xe4   : > { %4181 = vmatpush3.bf16.msra.mxu0 %v4566_v8  ;;  %v1375_v8 = vpack.c.bf16 %v3298_v54, %v3297_v55 }
  0xe6   : > { %3943 = vmatmul.mubr.bf16.vlgmr.msra.gmra.mrb[0].mxu1 %v4866_v4  ;;  %v3474_v4 = vld [vmem:[%s4647_s10 + $0x1a1] sm:$0xff] }
  0xe7   : > { %4151 = vmatmul.mubr.bf16.gmra.mrb[16].mxu0 %v4785_v22  ;;  %4222 = vmatpush3.bf16.msra.mxu1 %v4567_v52  ;;  %v3472_v22 = vld [vmem:[%s4647_s10 + $0x189] sm:$0xff] }
  0xe8   : > { %3946 = vmatprep.mubr.bf16.mxu1 %v4890_v21  ;;  %4154 = vmatprep.mubr.bf16.mxu0 %v4789_v24  ;;  %v4570_v24 = vld [vmem:[%s5280_s1 + $0x118] sm:$0xff]   ;;  %v5134_v2 = vpack.c.bf16 %v3472_v22, %v3471_v10  ;;  %v3295_v52 = vld [vmem:[%s4647_s10 + $0x109] sm:$0xff]  ;;  %v2601_v10 = vpack.c.bf16 %v3524_v5, %v3523_v63 }
  0xe9   : > { %4215 = vmatprep.subr.bf16.mxu1 %v4568_v49  ;;  %v3499_v21 = vld [vmem:[%s4647_s10 + $0x32] sm:$0xff]  ;;  %v1374_v50 = vpack.c.bf16 %v3296_v35, %v3295_v52 }
  0xea   : > { %v3301_v22 = vld [vmem:[%s4647_s10 + $0x151] sm:$0xff] }
  0xeb   : > { %4223 = vmatpush3.bf16.msra.mxu1 %v4568_v49  ;;  %v2600_v49 = vpack.c.bf16 %v3522_v57, %v3521_v3 }
  0xec   : > { %4216 = vmatprep.subr.bf16.mxu1 %v4569_v7 }
  0xee   : > { %3947 = vmatmul.mubr.bf16.gmra.mrb[4].mxu1 %v4894_v26  ;;  %v3500_v26 = vld [vmem:[%s4647_s10 + $0x3a] sm:$0xff] }
  0xef   : > { %4155 = vmatmul.mubr.bf16.gmra.mrb[20].mxu0 %v4811_v36  ;;  %3950 = vmatprep.mubr.bf16.mxu1 %v4916_v42  ;;  %v4571_v36 = vld [vmem:[%s5280_s1 + $0x120] sm:$0xff]  }
  0xf0   : > { %4158 = vmatprep.mubr.bf16.mxu0 %v4815_v38  ;;  %4224 = vmatpush3.bf16.msra.mxu1 %v4569_v7  ;;  %v3473_v38 = vld [vmem:[%s4647_s10 + $0x199] sm:$0xff]  ;;  %v1376_v7 = vpack.c.bf16 %v3300_v62, %v3299_v60 }
  0xf1   : > { %4217 = vmatprep.subr.bf16.mxu1 %v4570_v24  ;;  %v2298_v42 = vpack.c.bf16 %v3474_v4, %v3473_v38  ;;  %v3526_v38 = vld [vmem:[%s4647_s10 + $0x172] sm:$0xff]  ;;  %v3303_v4 = vld [vmem:[%s4647_s10 + $0x169] sm:$0xff] }
  0xf4   : > { %4225 = vmatpush3.bf16.msra.mxu1 %v4570_v24  ;;  %v3302_v24 = vld [vmem:[%s4647_s10 + $0x159] sm:$0xff] }
  0xf5   : > { %4218 = vmatprep.subr.bf16.mxu1 %v4571_v36 }
  0xf6   : > { %3951 = vmatmul.mubr.bf16.gmra.mrb[8].mxu1 %v4920_v44  ;;  %v3501_v44 = vld [vmem:[%s4647_s10 + $0x4a] sm:$0xff] }
  0xf7   : > { %4159 = vmatmul.mubr.bf16.gmra.mrb[24].mxu0 %v4837_v51  ;;  %3954 = vmatprep.mubr.bf16.mxu1 %v4940_v58  ;;  %v2589_v51 = vpack.c.bf16 %v3500_v26, %v3499_v21  ;;  %v3503_v58 = vld [vmem:[%s4647_s10 + $0x62] sm:$0xff]  ;;  %v2590_v9 = vpack.c.bf16 %v3502_v45, %v3501_v44  ;;  %v3304_v21 = vld [vmem:[%s4647_s10 + $0x171] sm:$0xff]  ;;  %v3529_v45 = vld [vmem:[%s4647_s10 + $0x19a] sm:$0xff] }
  0xf8   : > { %4162 = vmatprep.mubr.bf16.mxu0 %v5134_v2  ;;  %4226 = vmatpush3.bf16.msra.mxu1 %v4571_v36  ;;  %v3525_v36 = vld [vmem:[%s4647_s10 + $0x16a] sm:$0xff]  ;;  %v3527_v26 = vld [vmem:[%s4647_s10 + $0x182] sm:$0xff] }
  0xf9   : > { %4219 = vmatprep.subr.bf16.mxu1 %v4572_v27 }
  0xfc   : > { %4227 = vmatpush3.bf16.msra.mxu1 %v4572_v27  ;;  %v3528_v27 = vld [vmem:[%s4647_s10 + $0x18a] sm:$0xff] }
  0xfd   : > { %4220 = vmatprep.subr.bf16.mxu1 %v4573_v43  ;;  %v2603_v44 = vpack.c.bf16 %v3528_v27, %v3527_v26 }
  0xfe   : > { %3955 = vmatmul.mubr.bf16.gmra.mrb[12].mxu1 %v4942_v61  ;;  %v2591_v61 = vpack.c.bf16 %v3504_v0, %v3503_v58  ;;  %v3530_v58 = vld [vmem:[%s4647_s10 + $0x1a2] sm:$0xff] }
  0xff   : > { %4163 = vmatmul.mubr.bf16.gmra.mrb[28].mxu0 %v2298_v42  ;;  %3958 = vmatprep.mubr.bf16.mxu1 %v4959_v14  ;;  %v3505_v14 = vld [vmem:[%s4647_s10 + $0x7a] sm:$0xff]  ;;  %v1377_v42 = vpack.c.bf16 %v3302_v24, %v3301_v22  ;;  %v2604_v0 = vpack.c.bf16 %v3530_v58, %v3529_v45 }
 0x100   : > { %4182 = vmatprep.mubr.bf16.mxu0 %v2589_v51  ;;  %4228 = vmatpush3.bf16.msra.mxu1 %v4573_v43  ;;  %v2592_v23 = vpack.c.bf16 %v3506_v6, %v3505_v14  ;;  %v2602_v51 = vpack.c.bf16 %v3526_v38, %v3525_v36  ;;  %v1378_v43 = vpack.c.bf16 %v3304_v21, %v3303_v4 }
 0x101   : > { %4221 = vmatprep.subr.bf16.mxu1 %v4574_v59 }
 0x104   : > { %4229 = vmatpush3.bf16.msra.mxu1 %v4574_v59 }
 0x106   : > { %3959 = vmatmul.mubr.bf16.gmra.mrb[16].mxu1 %v4961_v15  ;;  %v3509_v15 = vld [vmem:[%s4647_s10 + $0xaa] sm:$0xff] }
 0x107   : > { %4183 = vmatmul.mubr.bf16.vlgmr.msra.gmra.mrb[0].mxu0 %v2590_v9  ;;  %3962 = vmatprep.mubr.bf16.mxu1 %v4979_v29  ;;  %v3510_v29 = vld [vmem:[%s4647_s10 + $0xb2] sm:$0xff] }
 0x108   : > { %4186 = vmatprep.mubr.bf16.mxu0 %v2591_v61  ;;  %v2594_v25 = vpack.c.bf16 %v3510_v29, %v3509_v15 }
 0x10e   : > { %3963 = vmatmul.mubr.bf16.gmra.mrb[20].mxu1 %v4981_v30  ;;  %v3513_v30 = vld [vmem:[%s4647_s10 + $0xda] sm:$0xff] }
 0x10f   : > { %4187 = vmatmul.mubr.bf16.gmra.mrb[4].mxu0 %v2592_v23  ;;  %3966 = vmatprep.mubr.bf16.mxu1 %v4997_v40  ;;  %v3514_v40 = vld [vmem:[%s4647_s10 + $0xe2] sm:$0xff] }
 0x110   : > { %4190 = vmatprep.mubr.bf16.mxu0 %v2593_v16  ;;  %v2596_v31 = vpack.c.bf16 %v3514_v40, %v3513_v30  ;;  %v5223_v40 = vld [vmem:[%s5281_s2] ss:$0 sm:$0xff] }
 0x116   : > { %3967 = vmatmul.mubr.bf16.gmra.mrb[24].mxu1 %v4999_v41  ;;  %v1372_v41 = vpack.c.bf16 %v3292_v37, %v3291_v20 }
 0x117   : > { %4191 = vmatmul.mubr.bf16.gmra.mrb[8].mxu0 %v2594_v25  ;;  %3970 = vmatprep.mubr.bf16.mxu1 %v5015_v56  ;;  %v3293_v56 = vld [vmem:[%s4647_s10 + $0xf1] sm:$0xff] }
 0x118   : > { %4194 = vmatprep.mubr.bf16.mxu0 %v2595_v19 }
 0x11e   : > { %3971 = vmatmul.mubr.bf16.gmra.mrb[28].mxu1 %v5049_v13  ;;  %v1373_v13 = vpack.c.bf16 %v3294_v33, %v3293_v56 }
 0x11f   : > { %4195 = vmatmul.mubr.bf16.gmra.mrb[12].mxu0 %v2596_v31  ;;  %4006 = vmatprep.mubr.bf16.mxu1 %v1372_v41 }
 0x120   : > { %4198 = vmatprep.mubr.bf16.mxu0 %v2597_v32 }
 0x126   : > { %4007 = vmatmul.mubr.bf16.vlgmr.msra.gmra.mrb[16].mxu1 %v1373_v13 }
 0x127   : > { %4199 = vmatmul.mubr.bf16.gmra.mrb[16].mxu0 %v2598_v48  ;;  %4010 = vmatprep.mubr.bf16.mxu1 %v1374_v50 }
 0x128   : > { %4202 = vmatprep.mubr.bf16.mxu0 %v2599_v53 }
 0x12e   : > { %4011 = vmatmul.mubr.bf16.gmra.mrb[20].mxu1 %v1375_v8 }
 0x12f   : > { %4203 = vmatmul.mubr.bf16.gmra.mrb[20].mxu0 %v2600_v49  ;;  %4014 = vmatprep.mubr.bf16.mxu1 %v1376_v7 }
 0x130   : > { %4206 = vmatprep.mubr.bf16.mxu0 %v2601_v10 }
 0x136   : > { %4015 = vmatmul.mubr.bf16.gmra.mrb[24].mxu1 %v1377_v42 }
 0x137   : > { %4207 = vmatmul.mubr.bf16.gmra.mrb[24].mxu0 %v2602_v51  ;;  %4018 = vmatprep.mubr.bf16.mxu1 %v1378_v43 }
 0x138   : > { %4210 = vmatprep.mubr.bf16.mxu0 %v2603_v44 }
 0x13e   : > { %4019 = vmatmul.mubr.bf16.gmra.mrb[28].mxu1 %v5134_v2 }
 0x13f   : > { %4211 = vmatmul.mubr.bf16.gmra.mrb[28].mxu0 %v2604_v0 }
 0x1b9   : > { %v3944_v59 = vpop.f32.mrb[0].mxu1 }
 0x1ba   : > { %v1173_v9 = vpop.f32.mrb[1].mxu1 }
 0x1bb   : > { %v3945_v61 = vpop.f32.mrb[2].mxu1 }
 0x1bc   : > { %v1176_v14 = vpop.f32.mrb[3].mxu1 }
 0x1c1   : > { %v3948_v6 = vpop.f32.mrb[4].mxu1 }
 0x1c2   : > { %v1189_v12 = vpop.f32.mrb[5].mxu1 }
 0x1c3   : > { %v3949_v11 = vpop.f32.mrb[6].mxu1 }
 0x1c4   : > { %v1192_v23 = vpop.f32.mrb[7].mxu1 }
 0x1c9   : > { %v3952_v16 = vpop.f32.mrb[8].mxu1 }
 0x1ca   : > { %v1205_v15 = vpop.f32.mrb[9].mxu1 }
 0x1cb   : > { %v3953_v29 = vpop.f32.mrb[10].mxu1 }
 0x1cc   : > { %v5210_v17 = vpop.f32.mrb[11].mxu1 }
 0x1d1   : > { %v5212_v18 = vpop.f32.mrb[12].mxu1 }
 0x1d2   : > { %v5214_v25 = vpop.f32.mrb[13].mxu1 }
 0x1d3   : > { %v5216_v19 = vpop.f32.mrb[14].mxu1 }
 0x1d4   : > { %v5218_v2 = vpop.f32.mrb[15].mxu1 }
 0x1da   : > { %v4184_v30 = vpop.f32.mrb[0].mxu0 }
 0x1db   : > { %v4230_v20 = vadd.f32 %v4184_v30, %v3944_v59  ;;  %v2704_v37 = vpop.f32.mrb[1].mxu0 }
 0x1dc   : > { %v4231_v28 = vadd.f32 %v2704_v37, %v1173_v9  ;;  %v4185_v1 = vpop.f32.mrb[2].mxu0 }
 0x1dd   : > { %v2872_v31 = vadd.f32 %v4230_v20, %v5223_v40  ;;  %v4232_v41 = vadd.f32 %v4185_v1, %v3945_v61  ;;  %v2707_v32 = vpop.f32.mrb[3].mxu0 }
 0x1de   : > { %v2870_v56 = vadd.f32 %v4231_v28, %v5223_v40  ;;  %v4233_v33 = vadd.f32 %v2707_v32, %v1176_v14 }
 0x1df   : > { %v2904_v34 = vmax.f32 %v2872_v31, 0.0  ;;  %v2873_v39 = vadd.f32 %v4232_v41, %v5223_v40 }
 0x1e0   : > { %v2902_v52 = vmax.f32 %v2870_v56, 0.0  ;;  %v2871_v35 = vadd.f32 %v4233_v33, %v5223_v40 }
 0x1e1   : > { %2936 = vst [vmem:[#allocation2 + $0x10] sm:$0xff] %v2904_v34  ;;  %v2905_v46 = vmax.f32 %v2873_v39, 0.0 }
 0x1e2   : > { %2934 = vst [vmem:[#allocation2] sm:$0xff] %v2902_v52  ;;  %v2903_v47 = vmax.f32 %v2871_v35, 0.0  ;;  %v4188_v13 = vpop.f32.mrb[4].mxu0 }
 0x1e3   : > { %2937 = vst [vmem:[#allocation2 + $0x18] sm:$0xff] %v2905_v46  ;;  %v4234_v48 = vadd.f32 %v4188_v13, %v3948_v6  ;;  %v2720_v50 = vpop.f32.mrb[5].mxu0 }
 0x1e4   : > { %2935 = vst [vmem:[#allocation2 + $0x8] sm:$0xff] %v2903_v47  ;;  %v4235_v53 = vadd.f32 %v2720_v50, %v1189_v12  ;;  %v4189_v55 = vpop.f32.mrb[6].mxu0 }
 0x1e5   : > { %v2876_v54 = vadd.f32 %v4234_v48, %v5223_v40  ;;  %v4236_v3 = vadd.f32 %v4189_v55, %v3949_v11  ;;  %v2723_v57 = vpop.f32.mrb[7].mxu0 }
 0x1e6   : > { %v2874_v60 = vadd.f32 %v4235_v53, %v5223_v40  ;;  %v4237_v62 = vadd.f32 %v2723_v57, %v1192_v23 }
 0x1e7   : > { %v2908_v63 = vmax.f32 %v2876_v54, 0.0  ;;  %v2877_v5 = vadd.f32 %v4236_v3, %v5223_v40 }
 0x1e8   : > { %v2906_v8 = vmax.f32 %v2874_v60, 0.0  ;;  %v2875_v49 = vadd.f32 %v4237_v62, %v5223_v40 }
 0x1e9   : > { %2940 = vst [vmem:[#allocation2 + $0x30] sm:$0xff] %v2908_v63  ;;  %v2909_v7 = vmax.f32 %v2877_v5, 0.0 }
 0x1ea   : > { %v2968_v10 = vld [vmem:[#allocation2 + $0x10] ss:$2 sm:$0xff]  ;;  %v3000_v22 = vld [vmem:[#allocation2 + $0x11] ss:$2 sm:$0xff]  ;;  %2938 = vst [vmem:[#allocation2 + $0x20] sm:$0xff] %v2906_v8  ;;  %v2907_v24 = vmax.f32 %v2875_v49, 0.0 }
 0x1eb   : > { %v4192_v36 = vpop.f32.mrb[8].mxu0  ;;  %v2966_v38 = vld [vmem:[#allocation2] ss:$2 sm:$0xff]  ;;  %v2998_v4 = vld [vmem:[#allocation2 + $0x1] ss:$2 sm:$0xff]  ;;  %v3030_v21 = vmax.f32 %v2968_v10, %v3000_v22  ;;  %2941 = vst [vmem:[#allocation2 + $0x38] sm:$0xff] %v2909_v7 }
 0x1ec   : > { %v4238_v26 = vadd.f32 %v4192_v36, %v3952_v16  ;;  %v2736_v27 = vpop.f32.mrb[9].mxu0  ;;  %v3029_v42 = vmax.f32 %v2966_v38, %v2998_v4  ;;  %2939 = vst [vmem:[#allocation2 + $0x28] sm:$0xff] %v2907_v24 }
 0x1ed   : > { %v4239_v51 = vadd.f32 %v2736_v27, %v1205_v15  ;;  %v4193_v43 = vpop.f32.mrb[10].mxu0  ;;  %3046 = vst [vmem:[#allocation2 + $0x8] sm:$0xff] %v3030_v21 }
 0x1ee   : > { %v2880_v44 = vadd.f32 %v4238_v26, %v5223_v40  ;;  %v4240_v45 = vadd.f32 %v4193_v43, %v3953_v29  ;;  %v2739_v58 = vpop.f32.mrb[11].mxu0  ;;  %3045 = vst [vmem:[#allocation2] sm:$0xff] %v3029_v42  ;;  %v3063_v0 = vmax.f32 %v3029_v42, %v3030_v21 }
 0x1ef   : > { %v2878_v59 = vadd.f32 %v4239_v51, %v5223_v40  ;;  %v4241_v9 = vadd.f32 %v2739_v58, %v5210_v17 }
 0x1f0   : > { %v2912_v61 = vmax.f32 %v2880_v44, 0.0  ;;  %v2881_v14 = vadd.f32 %v4240_v45, %v5223_v40  ;;  %3064 = vst [vmem:[%s5237_s13] sm:$0xff] %v3063_v0 }
 0x1f1   : > { %v2910_v6 = vmax.f32 %v2878_v59, 0.0  ;;  %v2879_v12 = vadd.f32 %v4241_v9, %v5223_v40 }
 0x1f2   : > { %2944 = vst [vmem:[#allocation2 + $0x50] sm:$0xff] %v2912_v61  ;;  %v2913_v11 = vmax.f32 %v2881_v14, 0.0  ;;  %v2972_v23 = vld [vmem:[#allocation2 + $0x30] ss:$2 sm:$0xff]  ;;  %v3004_v16 = vld [vmem:[#allocation2 + $0x31] ss:$2 sm:$0xff] }
 0x1f3   : > { %2942 = vst [vmem:[#allocation2 + $0x40] sm:$0xff] %v2910_v6  ;;  %v2911_v15 = vmax.f32 %v2879_v12, 0.0  ;;  %v4196_v29 = vpop.f32.mrb[12].mxu0  ;;  %v3032_v30 = vmax.f32 %v2972_v23, %v3004_v16  ;;  %v2970_v20 = vld [vmem:[#allocation2 + $0x20] ss:$2 sm:$0xff] }
 0x1f4   : > { %v3002_v37 = vld [vmem:[#allocation2 + $0x21] ss:$2 sm:$0xff]  ;;  %2945 = vst [vmem:[#allocation2 + $0x58] sm:$0xff] %v2913_v11  ;;  %v4242_v17 = vadd.f32 %v4196_v29, %v5212_v18  ;;  %v2752_v28 = vpop.f32.mrb[13].mxu0 }
 0x1f5   : > { %v3031_v1 = vmax.f32 %v2970_v20, %v3002_v37  ;;  %2943 = vst [vmem:[#allocation2 + $0x48] sm:$0xff] %v2911_v15  ;;  %v4243_v31 = vadd.f32 %v2752_v28, %v5214_v25  ;;  %v4197_v41 = vpop.f32.mrb[14].mxu0  ;;  %3048 = vst [vmem:[#allocation2 + $0x18] sm:$0xff] %v3032_v30 }
 0x1f6   : > { %v2884_v32 = vadd.f32 %v4242_v17, %v5223_v40  ;;  %v4244_v56 = vadd.f32 %v4197_v41, %v5216_v19  ;;  %v2755_v33 = vpop.f32.mrb[15].mxu0 }
 0x1f7   : > { %3047 = vst [vmem:[#allocation2 + $0x10] sm:$0xff] %v3031_v1  ;;  %v3067_v34 = vmax.f32 %v3031_v1, %v3032_v30  ;;  %v2882_v39 = vadd.f32 %v4243_v31, %v5223_v40  ;;  %v4245_v52 = vadd.f32 %v2755_v33, %v5218_v2 }
 0x1f8   : > { %v2916_v18 = vmax.f32 %v2884_v32, 0.0  ;;  %v2885_v35 = vadd.f32 %v4244_v56, %v5223_v40 }
 0x1f9   : > { %3556 = vst [vmem:[%s5237_s13 + $0x8] sm:$0xff] %v3067_v34  ;;  %v2914_v46 = vmax.f32 %v2882_v39, 0.0  ;;  %v2883_v25 = vadd.f32 %v4245_v52, %v5223_v40  ;;  %v4008_v13 = vpop.f32.mrb[16].mxu1 }
 0x1fa   : > { %2948 = vst [vmem:[#allocation2 + $0x70] sm:$0xff] %v2916_v18  ;;  %v2917_v47 = vmax.f32 %v2885_v35, 0.0  ;;  %v4200_v53 = vpop.f32.mrb[16].mxu0  ;;  %v1543_v57 = vpop.f32.mrb[17].mxu1 }
 0x1fb   : > { %v2976_v48 = vld [vmem:[#allocation2 + $0x50] ss:$2 sm:$0xff]  ;;  %v3008_v50 = vld [vmem:[#allocation2 + $0x51] ss:$2 sm:$0xff]  ;;  %2946 = vst [vmem:[#allocation2 + $0x60] sm:$0xff] %v2914_v46  ;;  %v2915_v19 = vmax.f32 %v2883_v25, 0.0  ;;  %v4246_v2 = vadd.f32 %v4200_v53, %v4008_v13 }
 0x1fc   : > { %v3034_v55 = vmax.f32 %v2976_v48, %v3008_v50  ;;  %v2974_v54 = vld [vmem:[#allocation2 + $0x40] ss:$2 sm:$0xff]  ;;  %v3006_v3 = vld [vmem:[#allocation2 + $0x41] ss:$2 sm:$0xff]  ;;  %2949 = vst [vmem:[#allocation2 + $0x78] sm:$0xff] %v2917_v47  ;;  %v2768_v60 = vpop.f32.mrb[17].mxu0 }
 0x1fd   : > { %v3033_v62 = vmax.f32 %v2974_v54, %v3006_v3  ;;  %2947 = vst [vmem:[#allocation2 + $0x68] sm:$0xff] %v2915_v19  ;;  %v4247_v63 = vadd.f32 %v2768_v60, %v1543_v57  ;;  %v4009_v5 = vpop.f32.mrb[18].mxu1  ;;  %v4201_v8 = vpop.f32.mrb[18].mxu0  ;;  %v2888_v49 = vadd.f32 %v4246_v2, %v5223_v40 }
 0x1fe   : > { %3050 = vst [vmem:[#allocation2 + $0x28] sm:$0xff] %v3034_v55  ;;  %v4248_v7 = vadd.f32 %v4201_v8, %v4009_v5  ;;  %v1546_v10 = vpop.f32.mrb[19].mxu1  ;;  %v2771_v22 = vpop.f32.mrb[19].mxu0 }
 0x1ff   : > { %3049 = vst [vmem:[#allocation2 + $0x20] sm:$0xff] %v3033_v62  ;;  %v3072_v24 = vmax.f32 %v3033_v62, %v3034_v55  ;;  %v2886_v36 = vadd.f32 %v4247_v63, %v5223_v40  ;;  %v4249_v38 = vadd.f32 %v2771_v22, %v1546_v10  ;;  %v2920_v4 = vmax.f32 %v2888_v49, 0.0 }
 0x200   : > { %v2889_v21 = vadd.f32 %v4248_v7, %v5223_v40 }
 0x201   : > { %3557 = vst [vmem:[%s5237_s13 + $0x10] sm:$0xff] %v3072_v24  ;;  %v2918_v26 = vmax.f32 %v2886_v36, 0.0  ;;  %v2887_v27 = vadd.f32 %v4249_v38, %v5223_v40  ;;  %2952 = vst [vmem:[#allocation2 + $0x90] sm:$0xff] %v2920_v4  ;;  %v4012_v51 = vpop.f32.mrb[20].mxu1 }
 0x202   : > { %v2921_v42 = vmax.f32 %v2889_v21, 0.0  ;;  %v4204_v58 = vpop.f32.mrb[20].mxu0  ;;  %v1559_v14 = vpop.f32.mrb[21].mxu1 }
 0x203   : > { %v2980_v43 = vld [vmem:[#allocation2 + $0x70] ss:$2 sm:$0xff]  ;;  %v3012_v44 = vld [vmem:[#allocation2 + $0x71] ss:$2 sm:$0xff]  ;;  %2950 = vst [vmem:[#allocation2 + $0x80] sm:$0xff] %v2918_v26  ;;  %v2919_v45 = vmax.f32 %v2887_v27, 0.0  ;;  %v4250_v61 = vadd.f32 %v4204_v58, %v4012_v51 }
 0x204   : > { %v3036_v0 = vmax.f32 %v2980_v43, %v3012_v44  ;;  %v2978_v59 = vld [vmem:[#allocation2 + $0x60] ss:$2 sm:$0xff]  ;;  %v3010_v9 = vld [vmem:[#allocation2 + $0x61] ss:$2 sm:$0xff]  ;;  %2953 = vst [vmem:[#allocation2 + $0x98] sm:$0xff] %v2921_v42  ;;  %v2784_v6 = vpop.f32.mrb[21].mxu0 }
 0x205   : > { %v3035_v12 = vmax.f32 %v2978_v59, %v3010_v9  ;;  %2951 = vst [vmem:[#allocation2 + $0x88] sm:$0xff] %v2919_v45  ;;  %v4251_v11 = vadd.f32 %v2784_v6, %v1559_v14  ;;  %v4013_v23 = vpop.f32.mrb[22].mxu1  ;;  %v4205_v16 = vpop.f32.mrb[22].mxu0  ;;  %v2892_v15 = vadd.f32 %v4250_v61, %v5223_v40 }
 0x206   : > { %3052 = vst [vmem:[#allocation2 + $0x38] sm:$0xff] %v3036_v0  ;;  %v4252_v29 = vadd.f32 %v4205_v16, %v4013_v23  ;;  %v1562_v30 = vpop.f32.mrb[23].mxu1  ;;  %v2787_v20 = vpop.f32.mrb[23].mxu0 }
 0x207   : > { %3051 = vst [vmem:[#allocation2 + $0x30] sm:$0xff] %v3035_v12  ;;  %v3077_v37 = vmax.f32 %v3035_v12, %v3036_v0  ;;  %v2890_v17 = vadd.f32 %v4251_v11, %v5223_v40  ;;  %v4253_v28 = vadd.f32 %v2787_v20, %v1562_v30  ;;  %v2924_v1 = vmax.f32 %v2892_v15, 0.0 }
 0x208   : > { %v2893_v31 = vadd.f32 %v4252_v29, %v5223_v40 }
 0x209   : > { %3558 = vst [vmem:[%s5237_s13 + $0x18] sm:$0xff] %v3077_v37  ;;  %v2922_v41 = vmax.f32 %v2890_v17, 0.0  ;;  %v2891_v32 = vadd.f32 %v4253_v28, %v5223_v40  ;;  %2956 = vst [vmem:[#allocation2 + $0xb0] sm:$0xff] %v2924_v1  ;;  %v4016_v33 = vpop.f32.mrb[24].mxu1 }
 0x20a   : > { %v2925_v56 = vmax.f32 %v2893_v31, 0.0  ;;  %v4208_v18 = vpop.f32.mrb[24].mxu0  ;;  %v1575_v13 = vpop.f32.mrb[25].mxu1 }
 0x20b   : > { %v2984_v34 = vld [vmem:[#allocation2 + $0x90] ss:$2 sm:$0xff]  ;;  %v3016_v39 = vld [vmem:[#allocation2 + $0x91] ss:$2 sm:$0xff]  ;;  %2954 = vst [vmem:[#allocation2 + $0xa0] sm:$0xff] %v2922_v41  ;;  %v2923_v52 = vmax.f32 %v2891_v32, 0.0  ;;  %v4254_v47 = vadd.f32 %v4208_v18, %v4016_v33 }
 0x20c   : > { %v3038_v35 = vmax.f32 %v2984_v34, %v3016_v39  ;;  %v2982_v46 = vld [vmem:[#allocation2 + $0x80] ss:$2 sm:$0xff]  ;;  %v3014_v25 = vld [vmem:[#allocation2 + $0x81] ss:$2 sm:$0xff]  ;;  %2957 = vst [vmem:[#allocation2 + $0xb8] sm:$0xff] %v2925_v56  ;;  %v2800_v48 = vpop.f32.mrb[25].mxu0 }
 0x20d   : > { %v3037_v50 = vmax.f32 %v2982_v46, %v3014_v25  ;;  %2955 = vst [vmem:[#allocation2 + $0xa8] sm:$0xff] %v2923_v52  ;;  %v4255_v19 = vadd.f32 %v2800_v48, %v1575_v13  ;;  %v4017_v53 = vpop.f32.mrb[26].mxu1  ;;  %v4209_v55 = vpop.f32.mrb[26].mxu0  ;;  %v2896_v54 = vadd.f32 %v4254_v47, %v5223_v40 }
 0x20e   : > { %3054 = vst [vmem:[#allocation2 + $0x48] sm:$0xff] %v3038_v35  ;;  %v4256_v3 = vadd.f32 %v4209_v55, %v4017_v53  ;;  %v1578_v2 = vpop.f32.mrb[27].mxu1  ;;  %v2803_v57 = vpop.f32.mrb[27].mxu0 }
 0x20f   : > { %3053 = vst [vmem:[#allocation2 + $0x40] sm:$0xff] %v3037_v50  ;;  %v3082_v60 = vmax.f32 %v3037_v50, %v3038_v35  ;;  %v2894_v62 = vadd.f32 %v4255_v19, %v5223_v40  ;;  %v4257_v63 = vadd.f32 %v2803_v57, %v1578_v2  ;;  %v2928_v5 = vmax.f32 %v2896_v54, 0.0 }
 0x210   : > { %v2897_v8 = vadd.f32 %v4256_v3, %v5223_v40 }
 0x211   : > { %3559 = vst [vmem:[%s5237_s13 + $0x20] sm:$0xff] %v3082_v60  ;;  %v2926_v49 = vmax.f32 %v2894_v62, 0.0  ;;  %v2895_v7 = vadd.f32 %v4257_v63, %v5223_v40  ;;  %2960 = vst [vmem:[#allocation2 + $0xd0] sm:$0xff] %v2928_v5  ;;  %v4020_v22 = vpop.f32.mrb[28].mxu1 }
 0x212   : > { %v2929_v10 = vmax.f32 %v2897_v8, 0.0  ;;  %v4212_v4 = vpop.f32.mrb[28].mxu0  ;;  %v1591_v51 = vpop.f32.mrb[29].mxu1 }
 0x213   : > { %v2988_v24 = vld [vmem:[#allocation2 + $0xb0] ss:$2 sm:$0xff]  ;;  %v3020_v36 = vld [vmem:[#allocation2 + $0xb1] ss:$2 sm:$0xff]  ;;  %2958 = vst [vmem:[#allocation2 + $0xc0] sm:$0xff] %v2926_v49  ;;  %v2927_v38 = vmax.f32 %v2895_v7, 0.0  ;;  %v4258_v42 = vadd.f32 %v4212_v4, %v4020_v22 }
 0x214   : > { %v3040_v21 = vmax.f32 %v2988_v24, %v3020_v36  ;;  %v2986_v26 = vld [vmem:[#allocation2 + $0xa0] ss:$2 sm:$0xff]  ;;  %v3018_v27 = vld [vmem:[#allocation2 + $0xa1] ss:$2 sm:$0xff]  ;;  %2961 = vst [vmem:[#allocation2 + $0xd8] sm:$0xff] %v2929_v10  ;;  %v2816_v43 = vpop.f32.mrb[29].mxu0 }
 0x215   : > { %v3039_v44 = vmax.f32 %v2986_v26, %v3018_v27  ;;  %2959 = vst [vmem:[#allocation2 + $0xc8] sm:$0xff] %v2927_v38  ;;  %v4259_v45 = vadd.f32 %v2816_v43, %v1591_v51  ;;  %v4021_v58 = vpop.f32.mrb[30].mxu1  ;;  %v4213_v0 = vpop.f32.mrb[30].mxu0  ;;  %v2900_v59 = vadd.f32 %v4258_v42, %v5223_v40 }
 0x216   : > { %3056 = vst [vmem:[#allocation2 + $0x58] sm:$0xff] %v3040_v21  ;;  %v4260_v9 = vadd.f32 %v4213_v0, %v4021_v58  ;;  %v1594_v61 = vpop.f32.mrb[31].mxu1  ;;  %v2819_v14 = vpop.f32.mrb[31].mxu0 }
 0x217   : > { %3055 = vst [vmem:[#allocation2 + $0x50] sm:$0xff] %v3039_v44  ;;  %v3087_v6 = vmax.f32 %v3039_v44, %v3040_v21  ;;  %v2898_v12 = vadd.f32 %v4259_v45, %v5223_v40  ;;  %v4261_v11 = vadd.f32 %v2819_v14, %v1594_v61  ;;  %v2932_v23 = vmax.f32 %v2900_v59, 0.0 }
 0x218   : > { %v2901_v16 = vadd.f32 %v4260_v9, %v5223_v40 }
 0x219   : > { %3560 = vst [vmem:[%s5237_s13 + $0x28] sm:$0xff] %v3087_v6  ;;  %v2930_v15 = vmax.f32 %v2898_v12, 0.0  ;;  %v2899_v29 = vadd.f32 %v4261_v11, %v5223_v40  ;;  %2964 = vst [vmem:[#allocation2 + $0xf0] sm:$0xff] %v2932_v23 }
 0x21a   : > { %v2933_v30 = vmax.f32 %v2901_v16, 0.0 }
 0x21b   : > { %v2992_v20 = vld [vmem:[#allocation2 + $0xd0] ss:$2 sm:$0xff]  ;;  %v3024_v37 = vld [vmem:[#allocation2 + $0xd1] ss:$2 sm:$0xff]  ;;  %2962 = vst [vmem:[#allocation2 + $0xe0] sm:$0xff] %v2930_v15  ;;  %v2931_v17 = vmax.f32 %v2899_v29, 0.0 }
 0x21c   : > { %v3042_v28 = vmax.f32 %v2992_v20, %v3024_v37  ;;  %v2990_v1 = vld [vmem:[#allocation2 + $0xc0] ss:$2 sm:$0xff]  ;;  %v3022_v31 = vld [vmem:[#allocation2 + $0xc1] ss:$2 sm:$0xff]  ;;  %2965 = vst [vmem:[#allocation2 + $0xf8] sm:$0xff] %v2933_v30 }
 0x21d   : > { %v3041_v41 = vmax.f32 %v2990_v1, %v3022_v31  ;;  %2963 = vst [vmem:[#allocation2 + $0xe8] sm:$0xff] %v2931_v17 }
 0x21e   : > { %3058 = vst [vmem:[#allocation2 + $0x68] sm:$0xff] %v3042_v28 }
 0x21f   : > { %3057 = vst [vmem:[#allocation2 + $0x60] sm:$0xff] %v3041_v41  ;;  %v3092_v32 = vmax.f32 %v3041_v41, %v3042_v28 }
 0x221   : > { %3561 = vst [vmem:[%s5237_s13 + $0x30] sm:$0xff] %v3092_v32 }
 0x223   : > { %v2996_v56 = vld [vmem:[#allocation2 + $0xf0] ss:$2 sm:$0xff]  ;;  %v3028_v40 = vld [vmem:[#allocation2 + $0xf1] ss:$2 sm:$0xff] }
 0x224   : > { %v3044_v33 = vmax.f32 %v2996_v56, %v3028_v40  ;;  %v2994_v34 = vld [vmem:[#allocation2 + $0xe0] ss:$2 sm:$0xff]  ;;  %v3026_v39 = vld [vmem:[#allocation2 + $0xe1] ss:$2 sm:$0xff] }
 0x225   : > { %v3043_v52 = vmax.f32 %v2994_v34, %v3026_v39 }
 0x226   : > { %3060 = vst [vmem:[#allocation2 + $0x78] sm:$0xff] %v3044_v33 }
 0x227   : > { %3059 = vst [vmem:[#allocation2 + $0x70] sm:$0xff] %v3043_v52  ;;  %v3097_v18 = vmax.f32 %v3043_v52, %v3044_v33 }
 0x229   : > { %3562 = vst [vmem:[%s5237_s13 + $0x38] sm:$0xff] %v3097_v18 }
 0x22a PF: > { %s13_s12 = sadd.s32 1, %s4581_s12  }
 0x22b   : > { %p10_p4 = scmp.ge.s32.totalorder %s13_s12, 4  }
 0x22d   :  { %12 = sbr.rel (!%p10_p4) target bundleno = 1 (0x1), region = 110 }

</bundles_post_ra>
